<compile_context>
chip_gen: v5e
topology: v5e:2x2
jax: 0.10.0
libtpu: 0.0.40
codegen_flags: <defaults>
</compile_context>

<pallas_src>
import functools

import jax
import jax.numpy as jnp
from jax.experimental import pallas as pl
from jax.experimental.pallas import tpu as pltpu


# Worst-case per-call working set here is small; keep headroom for v7x (64 MiB VMEM).
_VMEM_LIMIT = 32 * 1024 * 1024


# ----------------------------- Pallas kernels ------------------------------

def _conv_kernel(*refs, K, TH, W, act, pre_relu, has_mask, has_prev):
    """Row-tiled direct stride-1 convolution (+ optional fused EMA blend).

    x_ref: (1, Hp, Wp, Cin)   padded sample (resident across cout/row axes)
    w_ref: (K*K, Cin, TCout)  bf16, one (Cin, TCout) MXU matmul per tap
    b_ref: (1, TCout)         f32 bias
    m_ref: (1, 1, Cin)        optional per-(sample, channel) dropout scale
    a_ref: (1,)               optional pre-sigmoided EMA alpha (SMEM)
    p_ref: (1, TH, W, TCout)  optional previous-state block (f32)
    o_ref: (1, TH, W, TCout)  one row tile of the output
    """
    if has_mask and has_prev:
        x_ref, w_ref, b_ref, m_ref, a_ref, p_ref, o_ref = refs
    elif has_mask:
        x_ref, w_ref, b_ref, m_ref, o_ref = refs
        a_ref = p_ref = None
    elif has_prev:
        x_ref, w_ref, b_ref, a_ref, p_ref, o_ref = refs
        m_ref = None
    else:
        x_ref, w_ref, b_ref, o_ref = refs
        m_ref = a_ref = p_ref = None

    r = pl.program_id(2)
    h0 = r * TH
    Cin = x_ref.shape[-1]
    TCout = o_ref.shape[-1]
    M = TH * W

    acc = jnp.broadcast_to(b_ref[...], (M, TCout))              # f32, bias-initialised
    mval = m_ref[0] if has_mask else None                       # (1, Cin) bf16, hoisted
    for i in range(K):
        rows = x_ref[0, pl.ds(h0 + i, TH), :, :].astype(jnp.bfloat16)  # (TH, Wp, Cin)
        if has_mask:
            rows = rows * mval                                  # channel dropout scale
        if pre_relu:
            rows = jnp.maximum(rows, 0)                         # hoisted: once per row read
        for j in range(K):
            # (TH, W, Cin) -> (TH*W, Cin): layout no-op (W % 8 == 0 or TH == 1)
            lhs = rows[:, j:j + W, :].reshape(M, Cin)
            acc = acc + jnp.dot(lhs, w_ref[i * K + j],
                                preferred_element_type=jnp.float32)

    if act == "relu":
        acc = jnp.maximum(acc, 0.0)
    elif act == "sigmoid":
        acc = jax.nn.sigmoid(acc)

    out = acc.reshape(TH, W, TCout)
    if has_prev:
        s = a_ref[0]                                            # sigmoid(alpha), SMEM
        out = s * out + (1.0 - s) * p_ref[0].astype(jnp.float32)
    o_ref[0] = out.astype(o_ref.dtype)


def _pool_kernel(x_ref, o_ref):
    """2x2 / stride-2 max pool.  x_ref: (1, 2*Ho, Wo, 2*C) where the horizontal
    pixel pair has been folded onto the lane axis (free NHWC reshape)."""
    Ho, Wo, C = o_ref.shape[1], o_ref.shape[2], o_ref.shape[3]
    x = x_ref[0]                                # (2*Ho, Wo, 2C)
    x = x.reshape(Ho, 2, Wo, 2 * C)             # major-dim split only
    m = jnp.maximum(x[:, 0], x[:, 1])           # row-pair max
    o_ref[0] = jnp.maximum(m[:, :, :C], m[:, :, C:]).astype(o_ref.dtype)  # column-pair max


def _up2x_kernel(x_ref, o_ref):
    """Nearest-2x upsample.  x_ref: (1, TH, W, C).  o_ref: (1, 2*TH, W, 2*C),
    which the wrapper reinterprets (free contiguous reshape) as (.., 2W, C):
    the lane-axis duplicate becomes the horizontal pixel pair."""
    TH, W, C = x_ref.shape[1], x_ref.shape[2], x_ref.shape[3]
    x = x_ref[0]                                               # (TH, W, C)
    row = jnp.concatenate([x, x], axis=-1)                     # (TH, W, 2C): x2 along W
    up = jnp.broadcast_to(row[:, None], (TH, 2, W, 2 * C))     # x2 along H (major dim)
    o_ref[0] = up.reshape(2 * TH, W, 2 * C)                    # major-dim merge only


def _head_kernel(x_ref, w_ref, b_ref, o_ref):
    """Final Conv1x1(C->1) + Sigmoid, written lane-dense as (N, H, W)."""
    x = x_ref[0].astype(jnp.float32)            # (H, W, C)
    w = w_ref[...].astype(jnp.float32)          # (1, C)
    s = jnp.sum(x * w, axis=-1) + b_ref[0]      # channel reduce -> (H, W)
    o_ref[0] = jax.nn.sigmoid(s).astype(o_ref.dtype)


# ------------------------- pallas_call builders -----------------------------

def _pick_row_tile(H, W):
    # Target M = TH*W ~ 256 so the MXU sees a fat LHS; keep the in-kernel
    # reshape layout-trivial (W multiple of 8) and TH dividing H.
    if W < 8:
        return 1
    th = min(H, max(1, 256 // W))
    while H % th:
        th -= 1
    return th


def _pick_cout_tile(Cout, M):
    # Cap the f32 accumulator at ~128 KiB (~32 vregs).
    cap = max(128, (128 * 1024 // 4) // max(M, 1))
    return Cout if Cout <= cap else 128


@functools.lru_cache(maxsize=None)
def _build_conv(N, H, W, Cin, Cout, K, pad, TH, TCout, act, pre_relu,
                has_mask, has_prev, out_dtype):
    Hp, Wp = H + 2 * pad, W + 2 * pad
    kernel = functools.partial(_conv_kernel, K=K, TH=TH, W=W, act=act,
                               pre_relu=pre_relu, has_mask=has_mask,
                               has_prev=has_prev)
    in_specs = [
        pl.BlockSpec((1, Hp, Wp, Cin), lambda n, c, r: (n, 0, 0, 0)),
        pl.BlockSpec((K * K, Cin, TCout), lambda n, c, r: (0, 0, c)),
        pl.BlockSpec((1, TCout), lambda n, c, r: (0, c)),
    ]
    if has_mask:
        in_specs.append(pl.BlockSpec((1, 1, Cin), lambda n, c, r: (n, 0, 0)))
    if has_prev:
        in_specs.append(pl.BlockSpec(memory_space=pltpu.MemorySpace.SMEM))
        in_specs.append(pl.BlockSpec((1, TH, W, TCout), lambda n, c, r: (n, r, 0, c)))
    return pl.pallas_call(
        kernel,
        out_shape=jax.ShapeDtypeStruct((N, H, W, Cout), jnp.dtype(out_dtype)),
        grid=(N, Cout // TCout, H // TH),
        in_specs=in_specs,
        out_specs=pl.BlockSpec((1, TH, W, TCout), lambda n, c, r: (n, r, 0, c)),
        compiler_params=pltpu.CompilerParams(
            dimension_semantics=("parallel", "parallel", "parallel"),
            vmem_limit_bytes=_VMEM_LIMIT),
    )


def conv2d(x, w, b, *, act, out_dtype, pre_relu=False, channel_mask=None,
           prev=None, alpha_sig=None):
    """x: (N,H,W,Cin)  w: (K*K, Cin_padded, Cout) bf16  b: (1, Cout) f32.

    If `prev`/`alpha_sig` are given, the EMA blend
    sigmoid(alpha)*conv(x) + (1-sigmoid(alpha))*prev is fused into the epilogue.
    """
    N, H, W, Cin_x = x.shape
    KK, Cin_w, Cout = w.shape
    K = int(round(KK ** 0.5))
    pad = (K - 1) // 2
    if Cin_x < Cin_w:                                    # e.g. RGB=3 -> padded 8
        x = jnp.pad(x, ((0, 0), (0, 0), (0, 0), (0, Cin_w - Cin_x)))
    if pad:
        # TODO(synk): fold the zero padding into the kernel (VMEM scratch) to
        # drop this XLA pad pass entirely at larger resolutions.
        x = jnp.pad(x, ((0, 0), (pad, pad), (pad, pad), (0, 0)))
    TH = _pick_row_tile(H, W)
    TCout = _pick_cout_tile(Cout, TH * W)
    has_mask = channel_mask is not None
    has_prev = prev is not None
    call = _build_conv(N, H, W, Cin_w, Cout, K, pad, TH, TCout, act, pre_relu,
                       has_mask, has_prev, jnp.dtype(out_dtype).name)
    args = [x, w, b]
    if has_mask:
        args.append(channel_mask)
    if has_prev:
        args.append(alpha_sig)
        args.append(prev)
    return call(*args)


@functools.lru_cache(maxsize=None)
def _build_pool(N, H, Wo, C, dtype):
    return pl.pallas_call(
        _pool_kernel,
        out_shape=jax.ShapeDtypeStruct((N, H // 2, Wo, C), jnp.dtype(dtype)),
        grid=(N,),
        in_specs=[pl.BlockSpec((1, H, Wo, 2 * C), lambda n: (n, 0, 0, 0))],
        out_specs=pl.BlockSpec((1, H // 2, Wo, C), lambda n: (n, 0, 0, 0)),
        compiler_params=pltpu.CompilerParams(
            dimension_semantics=("parallel",),
            vmem_limit_bytes=_VMEM_LIMIT),
    )


def maxpool2x2(x):
    # (N,H,W,C) -> (N,H,W//2,2C) is a free reshape of a contiguous NHWC array:
    # it folds each horizontal pixel pair onto the lane axis, so the pool kernel
    # needs no strided loads and no strided HBM copies are materialised.
    N, H, W, C = x.shape
    return _build_pool(N, H, W // 2, C, x.dtype.name)(x.reshape(N, H, W // 2, 2 * C))


def _pick_up_tile(H, W, C):
    # Keep the per-step input tile under ~2 MiB (bf16) while dividing H.
    budget = max(1, (2 << 20) // max(W * C * 2, 1))
    th = min(H, budget)
    while H % th:
        th -= 1
    return th


@functools.lru_cache(maxsize=None)
def _build_up2x(N, H, W, C, THu, dtype):
    return pl.pallas_call(
        _up2x_kernel,
        out_shape=jax.ShapeDtypeStruct((N, 2 * H, W, 2 * C), jnp.dtype(dtype)),
        grid=(N, H // THu),
        in_specs=[pl.BlockSpec((1, THu, W, C), lambda n, r: (n, r, 0, 0))],
        out_specs=pl.BlockSpec((1, 2 * THu, W, 2 * C), lambda n, r: (n, r, 0, 0)),
        compiler_params=pltpu.CompilerParams(
            dimension_semantics=("parallel", "parallel"),
            vmem_limit_bytes=_VMEM_LIMIT),
    )


def upsample_nearest2x(x):
    # Kernel writes (N, 2H, W, 2C); viewing that contiguous buffer as
    # (N, 2H, 2W, C) is a free reshape that realises the horizontal pixel pair.
    N, H, W, C = x.shape
    THu = _pick_up_tile(H, W, C)
    out = _build_up2x(N, H, W, C, THu, x.dtype.name)(x)
    return out.reshape(N, 2 * H, 2 * W, C)


@functools.lru_cache(maxsize=None)
def _build_head(N, H, W, C):
    return pl.pallas_call(
        _head_kernel,
        out_shape=jax.ShapeDtypeStruct((N, H, W), jnp.float32),
        grid=(N,),
        in_specs=[
            pl.BlockSpec((1, H, W, C), lambda n: (n, 0, 0, 0)),
            pl.BlockSpec((1, C), lambda n: (0, 0)),
            pl.BlockSpec(memory_space=pltpu.MemorySpace.SMEM),
        ],
        out_specs=pl.BlockSpec((1, H, W), lambda n: (n, 0, 0)),
        compiler_params=pltpu.CompilerParams(
            dimension_semantics=("parallel",),
            vmem_limit_bytes=_VMEM_LIMIT),
    )


# ------------------------------ model wrapper -------------------------------

_VGG16_ENCODER = [                               # salgan[:30], ReLUs fused
    ("conv", 3, 64), ("conv", 64, 64), ("pool",),
    ("conv", 64, 128), ("conv", 128, 128), ("pool",),
    ("conv", 128, 256), ("conv", 256, 256), ("conv", 256, 256), ("pool",),
    ("conv", 256, 512), ("conv", 512, 512), ("conv", 512, 512), ("pool",),
    ("conv", 512, 512), ("conv", 512, 512), ("conv", 512, 512),
]

# Layers AFTER the EMA conv (salgan[31:]); the leading ReLU (salgan[31]) is
# fused into the first conv via `pre_relu`.
_DECODER_TAIL = [
    ("conv", 512, 512), ("conv", 512, 512), ("up",),
    ("conv", 512, 512), ("conv", 512, 512), ("conv", 512, 512), ("up",),
    ("conv", 512, 256), ("conv", 256, 256), ("conv", 256, 256), ("up",),
    ("conv", 256, 128), ("conv", 128, 128), ("up",),
    ("conv", 128, 64), ("conv", 64, 64),
    ("conv1x1", 64, 1),
]


class EquatorPallas:
    def __init__(self, alpha=None, ema_loc=30, param_key=None):
        assert ema_loc == 30, "this implementation hard-codes ema_loc=30"
        a = 0.25 if alpha is None else float(alpha)
        assert 0.0 <= a <= 1.0
        self.alpha = jnp.array([a], jnp.float32)          # nn.Parameter([0.25])
        if param_key is None:
            param_key = jax.random.PRNGKey(1)

        def init_conv(k, cin, cout, ksz):
            kw, kb = jax.random.split(k)
            std = (2.0 / (cin * ksz * ksz)) ** 0.5
            w = std * jax.random.normal(kw, (ksz * ksz, cin, cout), jnp.float32)
            cpad = (-cin) % 8                  # pad tiny Cin (RGB=3) for MXU lanes
            if cpad:
                w = jnp.pad(w, ((0, 0), (0, cpad), (0, 0)))
            b = 0.01 * jax.random.normal(kb, (1, cout), jnp.float32)
            return w.astype(jnp.bfloat16), b

        idx = 0
        self.enc_params = []
        for layer in _VGG16_ENCODER:
            if layer[0] == "conv":
                self.enc_params.append(
                    init_conv(jax.random.fold_in(param_key, idx), layer[1], layer[2], 3))
            else:
                self.enc_params.append(None)
            idx += 1
        self.ema_params = init_conv(jax.random.fold_in(param_key, idx), 512, 512, 3)
        idx += 1
        self.dec_params = []
        for layer in _DECODER_TAIL:
            if layer[0] == "conv":
                self.dec_params.append(
                    init_conv(jax.random.fold_in(param_key, idx), layer[1], layer[2], 3))
            elif layer[0] == "conv1x1":
                kw, kb = jax.random.split(jax.random.fold_in(param_key, idx))
                std = (2.0 / layer[1]) ** 0.5
                w = std * jax.random.normal(kw, (1, layer[1]), jnp.float32)
                b = 0.01 * jax.random.normal(kb, (1,), jnp.float32)
                self.dec_params.append((w, b))             # head kept in f32
            else:
                self.dec_params.append(None)
            idx += 1

    def __call__(self, input_nchw, prev_state=None, *, dropout_key):
        x = jnp.transpose(input_nchw.astype(jnp.float32), (0, 2, 3, 1))  # -> NHWC

        # --- salgan[:30] : VGG16 encoder (bf16 activations between layers) ---
        for layer, p in zip(_VGG16_ENCODER, self.enc_params):
            if layer[0] == "conv":
                x = conv2d(x, p[0], p[1], act="relu", out_dtype=jnp.bfloat16)
            else:
                x = maxpool2x2(x)

        # --- dropout2d (p=0.5, F.dropout2d training semantics), fused as a
        #     per-(sample, channel) scale on the EMA conv's input rows ---
        # TODO(synk): mask uses the JAX PRNG; it cannot bit-match torch's RNG stream.
        N, _, _, C = x.shape
        keep = jax.random.bernoulli(dropout_key, 0.5, (N, 1, C))
        mask = (keep.astype(jnp.float32) * 2.0).astype(jnp.bfloat16)   # 0 or 1/(1-p)

        # --- salgan[30] : EMA conv (no activation, f32 output); the EMA blend
        #     with prev_state is fused into the conv epilogue ---
        if prev_state is None:
            current_state = conv2d(x, self.ema_params[0], self.ema_params[1],
                                   act=None, out_dtype=jnp.float32, channel_mask=mask)
        else:
            prev_nhwc = jnp.transpose(prev_state.astype(jnp.float32), (0, 2, 3, 1))
            sig_a = jax.nn.sigmoid(self.alpha)             # (1,) scalar via SMEM
            current_state = conv2d(x, self.ema_params[0], self.ema_params[1],
                                   act=None, out_dtype=jnp.float32, channel_mask=mask,
                                   prev=prev_nhwc, alpha_sig=sig_a)

        # --- salgan[31:] : ReLU (fused) + SalGAN decoder ---
        y = current_state
        first_conv = True
        for layer, p in zip(_DECODER_TAIL, self.dec_params):
            if layer[0] == "conv":
                y = conv2d(y, p[0], p[1], act="relu", out_dtype=jnp.bfloat16,
                           pre_relu=first_conv)
                first_conv = False
            elif layer[0] == "conv1x1":
                Nh, Hh, Wh, Ch = y.shape
                y = _build_head(Nh, Hh, Wh, Ch)(y, p[0], p[1])   # (N, H, W) f32
            else:  # nearest x2 upsample (Pallas)
                y = upsample_nearest2x(y)

        current_nchw = jnp.transpose(current_state, (0, 3, 1, 2))   # NCHW out
        out_nchw = y[:, None, :, :]                                 # (N, 1, H, W)
        return current_nchw, out_nchw


if __name__ == "__main__":
    key = jax.random.PRNGKey(0)
    k_in, k_drop1, k_drop2 = jax.random.split(key, 3)

    model = EquatorPallas(alpha=None, ema_loc=30, param_key=jax.random.PRNGKey(1))

    # Small input consistent with the module: NCHW, 3 channels, spatial 32
    # (must be divisible by 16 for the 4 maxpools / 4 upsamples).
    x = jax.random.normal(k_in, (2, 3, 32, 32), jnp.float32)

    # First frame: no previous state (prev_state=None branch).
    state1, sal1 = model(x, prev_state=None, dropout_key=k_drop1)
    # Second frame: EMA blend with the previous state (fused into the EMA conv).
    state2, sal2 = model(x, prev_state=state1, dropout_key=k_drop2)

    jax.block_until_ready((state1, sal1, state2, sal2))

    assert state1.shape == (2, 512, 2, 2) and sal1.shape == (2, 1, 32, 32)
    assert state2.shape == (2, 512, 2, 2) and sal2.shape == (2, 1, 32, 32)
    assert bool(jnp.isfinite(sal1).all()) and bool(jnp.isfinite(sal2).all())
    assert float(sal1.min()) >= 0.0 and float(sal1.max()) <= 1.0
    assert float(sal2.min()) >= 0.0 and float(sal2.max()) <= 1.0

    print("KERNEL_OK")
</pallas_src>

<mosaic_0001>
module attributes {stable_mosaic.version = 11 : i64} {
  func.func @_conv_kernel(%arg0: i32, %arg1: i32, %arg2: i32, %arg3: memref<1x34x34x8xf32, #tpu.memory_space<vmem>>, %arg4: memref<9x8x64xbf16, #tpu.memory_space<vmem>>, %arg5: memref<1x64xf32, #tpu.memory_space<vmem>>, %arg6: memref<1x8x32x64xbf16, #tpu.memory_space<vmem>>) attributes {dimension_semantics = [#tpu.dimension_semantics<parallel>, #tpu.dimension_semantics<parallel>, #tpu.dimension_semantics<parallel>], iteration_bounds = array<i64: 2, 1, 4>, scalar_prefetch = 0 : i64, scratch_operands = 0 : i64, tpu.core_type = #tpu.core_type<tc>, window_params = [{transform_indices = @transform_0, window_bounds = array<i64: 1, 34, 34, 8>}, {transform_indices = @transform_1, window_bounds = array<i64: 9, 8, 64>}, {transform_indices = @transform_2, window_bounds = array<i64: 1, 64>}, {transform_indices = @transform_3, window_bounds = array<i64: 1, 8, 32, 64>}]} {
    %c8_i32 = arith.constant 8 : i32
    %0 = arith.muli %arg2, %c8_i32 : i32
    %c0 = arith.constant 0 : index
    %c0_0 = arith.constant 0 : index
    %1 = vector.load %arg5[%c0, %c0_0] : memref<1x64xf32, #tpu.memory_space<vmem>>, vector<1x64xf32>
    %2 = vector.shape_cast %1 : vector<1x64xf32> to vector<1x64xf32>
    %3 = vector.broadcast %2 : vector<1x64xf32> to vector<256x64xf32>
    %c0_i32 = arith.constant 0 : i32
    %4 = arith.addi %0, %c0_i32 : i32
    %c0_1 = arith.constant 0 : index
    %5 = arith.index_cast %4 : i32 to index
    %c0_2 = arith.constant 0 : index
    %c0_3 = arith.constant 0 : index
    %6 = vector.load %arg3[%c0_1, %5, %c0_2, %c0_3] : memref<1x34x34x8xf32, #tpu.memory_space<vmem>>, vector<1x8x34x8xf32>
    %7 = vector.shape_cast %6 : vector<1x8x34x8xf32> to vector<8x34x8xf32>
    %8 = arith.truncf %7 : vector<8x34x8xf32> to vector<8x34x8xbf16>
    %9 = vector.extract_strided_slice %8 {offsets = [0, 0, 0], sizes = [8, 32, 8], strides = [1, 1, 1]} : vector<8x34x8xbf16> to vector<8x32x8xbf16>
    %10 = vector.shape_cast %9 : vector<8x32x8xbf16> to vector<256x8xbf16>
    %c0_4 = arith.constant 0 : index
    %c0_5 = arith.constant 0 : index
    %c0_6 = arith.constant 0 : index
    %11 = vector.load %arg4[%c0_4, %c0_5, %c0_6] : memref<9x8x64xbf16, #tpu.memory_space<vmem>>, vector<1x8x64xbf16>
    %12 = vector.shape_cast %11 : vector<1x8x64xbf16> to vector<8x64xbf16>
    %cst = arith.constant dense<0.000000e+00> : vector<256x64xf32>
    %13 = tpu.matmul %10, %12, %cst {dimension_numbers = #tpu.dot_dimension_numbers<[1], [0], [0], [1], [0, 0, 1, 1], [], []>} : vector<256x8xbf16>, vector<8x64xbf16>, vector<256x64xf32> -> vector<256x64xf32>
    %14 = arith.addf %3, %13 : vector<256x64xf32>
    %15 = vector.extract_strided_slice %8 {offsets = [0, 1, 0], sizes = [8, 32, 8], strides = [1, 1, 1]} : vector<8x34x8xbf16> to vector<8x32x8xbf16>
    %16 = vector.shape_cast %15 : vector<8x32x8xbf16> to vector<256x8xbf16>
    %c1 = arith.constant 1 : index
    %c0_7 = arith.constant 0 : index
    %c0_8 = arith.constant 0 : index
    %17 = vector.load %arg4[%c1, %c0_7, %c0_8] : memref<9x8x64xbf16, #tpu.memory_space<vmem>>, vector<1x8x64xbf16>
    %18 = vector.shape_cast %17 : vector<1x8x64xbf16> to vector<8x64xbf16>
    %cst_9 = arith.constant dense<0.000000e+00> : vector<256x64xf32>
    %19 = tpu.matmul %16, %18, %cst_9 {dimension_numbers = #tpu.dot_dimension_numbers<[1], [0], [0], [1], [0, 0, 1, 1], [], []>} : vector<256x8xbf16>, vector<8x64xbf16>, vector<256x64xf32> -> vector<256x64xf32>
    %20 = arith.addf %14, %19 : vector<256x64xf32>
    %21 = vector.extract_strided_slice %8 {offsets = [0, 2, 0], sizes = [8, 32, 8], strides = [1, 1, 1]} : vector<8x34x8xbf16> to vector<8x32x8xbf16>
    %22 = vector.shape_cast %21 : vector<8x32x8xbf16> to vector<256x8xbf16>
    %c2 = arith.constant 2 : index
    %c0_10 = arith.constant 0 : index
    %c0_11 = arith.constant 0 : index
    %23 = vector.load %arg4[%c2, %c0_10, %c0_11] : memref<9x8x64xbf16, #tpu.memory_space<vmem>>, vector<1x8x64xbf16>
    %24 = vector.shape_cast %23 : vector<1x8x64xbf16> to vector<8x64xbf16>
    %cst_12 = arith.constant dense<0.000000e+00> : vector<256x64xf32>
    %25 = tpu.matmul %22, %24, %cst_12 {dimension_numbers = #tpu.dot_dimension_numbers<[1], [0], [0], [1], [0, 0, 1, 1], [], []>} : vector<256x8xbf16>, vector<8x64xbf16>, vector<256x64xf32> -> vector<256x64xf32>
    %26 = arith.addf %20, %25 : vector<256x64xf32>
    %c1_i32 = arith.constant 1 : i32
    %27 = arith.addi %0, %c1_i32 : i32
    %c0_13 = arith.constant 0 : index
    %28 = arith.index_cast %27 : i32 to index
    %c0_14 = arith.constant 0 : index
    %c0_15 = arith.constant 0 : index
    %29 = vector.load %arg3[%c0_13, %28, %c0_14, %c0_15] : memref<1x34x34x8xf32, #tpu.memory_space<vmem>>, vector<1x8x34x8xf32>
    %30 = vector.shape_cast %29 : vector<1x8x34x8xf32> to vector<8x34x8xf32>
    %31 = arith.truncf %30 : vector<8x34x8xf32> to vector<8x34x8xbf16>
    %32 = vector.extract_strided_slice %31 {offsets = [0, 0, 0], sizes = [8, 32, 8], strides = [1, 1, 1]} : vector<8x34x8xbf16> to vector<8x32x8xbf16>
    %33 = vector.shape_cast %32 : vector<8x32x8xbf16> to vector<256x8xbf16>
    %c3 = arith.constant 3 : index
    %c0_16 = arith.constant 0 : index
    %c0_17 = arith.constant 0 : index
    %34 = vector.load %arg4[%c3, %c0_16, %c0_17] : memref<9x8x64xbf16, #tpu.memory_space<vmem>>, vector<1x8x64xbf16>
    %35 = vector.shape_cast %34 : vector<1x8x64xbf16> to vector<8x64xbf16>
    %cst_18 = arith.constant dense<0.000000e+00> : vector<256x64xf32>
    %36 = tpu.matmul %33, %35, %cst_18 {dimension_numbers = #tpu.dot_dimension_numbers<[1], [0], [0], [1], [0, 0, 1, 1], [], []>} : vector<256x8xbf16>, vector<8x64xbf16>, vector<256x64xf32> -> vector<256x64xf32>
    %37 = arith.addf %26, %36 : vector<256x64xf32>
    %38 = vector.extract_strided_slice %31 {offsets = [0, 1, 0], sizes = [8, 32, 8], strides = [1, 1, 1]} : vector<8x34x8xbf16> to vector<8x32x8xbf16>
    %39 = vector.shape_cast %38 : vector<8x32x8xbf16> to vector<256x8xbf16>
    %c4 = arith.constant 4 : index
    %c0_19 = arith.constant 0 : index
    %c0_20 = arith.constant 0 : index
    %40 = vector.load %arg4[%c4, %c0_19, %c0_20] : memref<9x8x64xbf16, #tpu.memory_space<vmem>>, vector<1x8x64xbf16>
    %41 = vector.shape_cast %40 : vector<1x8x64xbf16> to vector<8x64xbf16>
    %cst_21 = arith.constant dense<0.000000e+00> : vector<256x64xf32>
    %42 = tpu.matmul %39, %41, %cst_21 {dimension_numbers = #tpu.dot_dimension_numbers<[1], [0], [0], [1], [0, 0, 1, 1], [], []>} : vector<256x8xbf16>, vector<8x64xbf16>, vector<256x64xf32> -> vector<256x64xf32>
    %43 = arith.addf %37, %42 : vector<256x64xf32>
    %44 = vector.extract_strided_slice %31 {offsets = [0, 2, 0], sizes = [8, 32, 8], strides = [1, 1, 1]} : vector<8x34x8xbf16> to vector<8x32x8xbf16>
    %45 = vector.shape_cast %44 : vector<8x32x8xbf16> to vector<256x8xbf16>
    %c5 = arith.constant 5 : index
    %c0_22 = arith.constant 0 : index
    %c0_23 = arith.constant 0 : index
    %46 = vector.load %arg4[%c5, %c0_22, %c0_23] : memref<9x8x64xbf16, #tpu.memory_space<vmem>>, vector<1x8x64xbf16>
    %47 = vector.shape_cast %46 : vector<1x8x64xbf16> to vector<8x64xbf16>
    %cst_24 = arith.constant dense<0.000000e+00> : vector<256x64xf32>
    %48 = tpu.matmul %45, %47, %cst_24 {dimension_numbers = #tpu.dot_dimension_numbers<[1], [0], [0], [1], [0, 0, 1, 1], [], []>} : vector<256x8xbf16>, vector<8x64xbf16>, vector<256x64xf32> -> vector<256x64xf32>
    %49 = arith.addf %43, %48 : vector<256x64xf32>
    %c2_i32 = arith.constant 2 : i32
    %50 = arith.addi %0, %c2_i32 : i32
    %c0_25 = arith.constant 0 : index
    %51 = arith.index_cast %50 : i32 to index
    %c0_26 = arith.constant 0 : index
    %c0_27 = arith.constant 0 : index
    %52 = vector.load %arg3[%c0_25, %51, %c0_26, %c0_27] : memref<1x34x34x8xf32, #tpu.memory_space<vmem>>, vector<1x8x34x8xf32>
    %53 = vector.shape_cast %52 : vector<1x8x34x8xf32> to vector<8x34x8xf32>
    %54 = arith.truncf %53 : vector<8x34x8xf32> to vector<8x34x8xbf16>
    %55 = vector.extract_strided_slice %54 {offsets = [0, 0, 0], sizes = [8, 32, 8], strides = [1, 1, 1]} : vector<8x34x8xbf16> to vector<8x32x8xbf16>
    %56 = vector.shape_cast %55 : vector<8x32x8xbf16> to vector<256x8xbf16>
    %c6 = arith.constant 6 : index
    %c0_28 = arith.constant 0 : index
    %c0_29 = arith.constant 0 : index
    %57 = vector.load %arg4[%c6, %c0_28, %c0_29] : memref<9x8x64xbf16, #tpu.memory_space<vmem>>, vector<1x8x64xbf16>
    %58 = vector.shape_cast %57 : vector<1x8x64xbf16> to vector<8x64xbf16>
    %cst_30 = arith.constant dense<0.000000e+00> : vector<256x64xf32>
    %59 = tpu.matmul %56, %58, %cst_30 {dimension_numbers = #tpu.dot_dimension_numbers<[1], [0], [0], [1], [0, 0, 1, 1], [], []>} : vector<256x8xbf16>, vector<8x64xbf16>, vector<256x64xf32> -> vector<256x64xf32>
    %60 = arith.addf %49, %59 : vector<256x64xf32>
    %61 = vector.extract_strided_slice %54 {offsets = [0, 1, 0], sizes = [8, 32, 8], strides = [1, 1, 1]} : vector<8x34x8xbf16> to vector<8x32x8xbf16>
    %62 = vector.shape_cast %61 : vector<8x32x8xbf16> to vector<256x8xbf16>
    %c7 = arith.constant 7 : index
    %c0_31 = arith.constant 0 : index
    %c0_32 = arith.constant 0 : index
    %63 = vector.load %arg4[%c7, %c0_31, %c0_32] : memref<9x8x64xbf16, #tpu.memory_space<vmem>>, vector<1x8x64xbf16>
    %64 = vector.shape_cast %63 : vector<1x8x64xbf16> to vector<8x64xbf16>
    %cst_33 = arith.constant dense<0.000000e+00> : vector<256x64xf32>
    %65 = tpu.matmul %62, %64, %cst_33 {dimension_numbers = #tpu.dot_dimension_numbers<[1], [0], [0], [1], [0, 0, 1, 1], [], []>} : vector<256x8xbf16>, vector<8x64xbf16>, vector<256x64xf32> -> vector<256x64xf32>
    %66 = arith.addf %60, %65 : vector<256x64xf32>
    %67 = vector.extract_strided_slice %54 {offsets = [0, 2, 0], sizes = [8, 32, 8], strides = [1, 1, 1]} : vector<8x34x8xbf16> to vector<8x32x8xbf16>
    %68 = vector.shape_cast %67 : vector<8x32x8xbf16> to vector<256x8xbf16>
    %c8 = arith.constant 8 : index
    %c0_34 = arith.constant 0 : index
    %c0_35 = arith.constant 0 : index
    %69 = vector.load %arg4[%c8, %c0_34, %c0_35] : memref<9x8x64xbf16, #tpu.memory_space<vmem>>, vector<1x8x64xbf16>
    %70 = vector.shape_cast %69 : vector<1x8x64xbf16> to vector<8x64xbf16>
    %cst_36 = arith.constant dense<0.000000e+00> : vector<256x64xf32>
    %71 = tpu.matmul %68, %70, %cst_36 {dimension_numbers = #tpu.dot_dimension_numbers<[1], [0], [0], [1], [0, 0, 1, 1], [], []>} : vector<256x8xbf16>, vector<8x64xbf16>, vector<256x64xf32> -> vector<256x64xf32>
    %72 = arith.addf %66, %71 : vector<256x64xf32>
    %cst_37 = arith.constant 0.000000e+00 : f32
    %73 = vector.broadcast %cst_37 : f32 to vector<256x64xf32>
    %74 = arith.maximumf %72, %73 : vector<256x64xf32>
    %75 = vector.shape_cast %74 : vector<256x64xf32> to vector<8x32x64xf32>
    %76 = arith.truncf %75 : vector<8x32x64xf32> to vector<8x32x64xbf16>
    %c0_38 = arith.constant 0 : index
    %c0_39 = arith.constant 0 : index
    %c0_40 = arith.constant 0 : index
    %c0_41 = arith.constant 0 : index
    %77 = vector.load %arg6[%c0_38, %c0_39, %c0_40, %c0_41] : memref<1x8x32x64xbf16, #tpu.memory_space<vmem>>, vector<1x8x32x64xbf16>
    %78 = vector.shape_cast %77 : vector<1x8x32x64xbf16> to vector<8x32x64xbf16>
    %79 = vector.shape_cast %76 : vector<8x32x64xbf16> to vector<1x8x32x64xbf16>
    tpu.vector_store %arg6[%c0_38, %c0_39, %c0_40, %c0_41], %79 {strides = array<i32>} : memref<1x8x32x64xbf16, #tpu.memory_space<vmem>>, vector<1x8x32x64xbf16>,
    return
  }
  func.func @transform_0(%arg0: i32, %arg1: i32, %arg2: i32) -> (i32, i32, i32, i32) {
    %c0_i32 = arith.constant 0 : i32
    %c0_i32_0 = arith.constant 0 : i32
    %c0_i32_1 = arith.constant 0 : i32
    %c0_i32_2 = arith.constant 0 : i32
    return %arg0, %c0_i32, %c0_i32_0, %c0_i32_1 : i32, i32, i32, i32
  }
  func.func @transform_1(%arg0: i32, %arg1: i32, %arg2: i32) -> (i32, i32, i32) {
    %c0_i32 = arith.constant 0 : i32
    %c0_i32_0 = arith.constant 0 : i32
    %c0_i32_1 = arith.constant 0 : i32
    return %c0_i32, %c0_i32_0, %arg1 : i32, i32, i32
  }
  func.func @transform_2(%arg0: i32, %arg1: i32, %arg2: i32) -> (i32, i32) {
    %c0_i32 = arith.constant 0 : i32
    %c0_i32_0 = arith.constant 0 : i32
    return %c0_i32, %arg1 : i32, i32
  }
  func.func @transform_3(%arg0: i32, %arg1: i32, %arg2: i32) -> (i32, i32, i32, i32) {
    %c0_i32 = arith.constant 0 : i32
    %c0_i32_0 = arith.constant 0 : i32
    return %arg0, %arg2, %c0_i32, %arg1 : i32, i32, i32, i32
  }
}

</mosaic_0001>

<bundles_post_ra>
// kernel: tpu_custom_call.1
= control target key start
LH: loop header
LB: loop body
LE: loop exit
PB: predicated region body
PF: predicated region fallthrough
CT: control target
= control target key end

     0   :  { %8 = vsyncpa [#allocation3], 0  ;;  %s6559_s0 = inlined_call_operand.vmem [shape: f32[2,34,34,8], index: 0, kind: input, shape index: {}]   ;;  %s6560_s1 = inlined_call_operand.vmem [shape: bf16[9,8,64], index: 1, kind: input, shape index: {}]   ;;  %s6561_s2 = inlined_call_operand.vmem [shape: f32[1,64], index: 2, kind: input, shape index: {}]   ;;  %s6562_s3 = inlined_call_operand.hbm [shape: bf16[2,32,32,64], index: 3, kind: output, shape index: {}]  }
   0x1   :  { %10 = vsyncpa [#allocation3 + $0x1], 0  ;;  %s4681_s12 = smov 0   ;;  %s4683_s13 = smov 0  }
   0x2   :  { %s4685_s14 = smov 0   ;;  %s4687_s15 = smov 0  }
   0x3   :  { %s4689_s16 = smov 0   ;;  %s4691_s17 = smov 0  }
   0x4   :  { %s4693_s18 = smov 0   ;;  %s4695_s19 = smov 0  }
   0x5 LB: > { %s4205_s20 = sadd.s32 4294967295, %s4657_s19   ;;  %s4206_s21 = sadd.s32 4294967294, %s4657_s19   ;;  %s4657_s19 = sphi %s4695_s19, %s16_s19   ;;  %s4653_s18 = sphi %s4693_s18, %s6758_s18   ;;  %s4649_s17 = sphi %s4691_s17, %s6757_s17   ;;  %s4645_s16 = sphi %s4689_s16, %s6756_s16   ;;  %s4641_s15 = sphi %s4687_s15, %s6755_s15   ;;  %s4637_s14 = sphi %s4685_s14, %s6754_s14   ;;  %s4633_s13 = sphi %s4683_s13, %s6753_s13   ;;  %s4629_s12 = sphi %s4681_s12, %s6752_s12  }
   0x6   : > { %s28_s22 = sadd.s32 1, %s4649_s17  ;;  %s35_s23 = sadd.s32 1, %s4653_s18 }
   0x7   : > { %p29_p0 = scmp.ge.s32.totalorder %s28_s22, 4  ;;  %p134_p1 = scmp.ne.s32.totalorder %s4637_s14, %s4633_s13 }
   0x8   : > { %p135_p2 = scmp.eq.s32.totalorder %s4205_s20, 7  ;;  %p140_p5 = scmp.ne.s32.totalorder %s4633_s13, %s4629_s12 }
   0x9   : > { %s6760_s22 = smov (%p29_p0, %s28_s22), 0  ;;  %s6762_s23 = smov (!%p29_p0, %s35_s23), %s4653_s18 }
   0xa   : > { %s118_s24 = ssub.s32 %s4649_s17, %s6760_s22  ;;  %p4732_p3 = por %p135_p2, %p134_p1 }
   0xb   : > { %p37_p4 = scmp.ge.s32.totalorder %s6762_s23, 2  ;;  %p141_p6 = scmp.eq.s32.totalorder %s4206_s21, 7 }
   0xc   : > { %p4211_p7 = scmp.ge.s32.totalorder %s4657_s19, 1  ;;  %p180_p9 = scmp.lt.s32.totalorder %s4657_s19, 9 }
   0xd   : > { %s6764_s23 = smov (%p37_p4, %s6762_s23), 0  ;;  %p4741_p8 = por %p141_p6, %p140_p5 }
   0xe   : > { %s117_s27 = ssub.s32 %s4653_s18, %s6764_s23  ;;  %s124_s28 = sadd.s32 1, %s4637_s14 }
   0xf   : > { %s119_s29 = sor.u32 %s118_s24, %s117_s27  ;;  %p181_p10 = pnand %p4211_p7, %p180_p9 }
  0x10   : > { %p122_p11 = scmp.eq.s32.totalorder %s119_s29, 0 }
  0x11   : > { %184 = sbr.rel (%p181_p10) target bundleno = 752 (0x2f0), region = 32 }
  0x12   : > { %s4750_s30 = scalar_select %p122_p11, %s4637_s14, %s124_s28  }
  0x16   : > { %v312_v0 = vld [vmem:[%s6560_s1] sm:$0xf]  ;;  %vm442_vm0 = vcmask 1043456   ;;  %p211_p12 = scmp.lt.s32.totalorder %s4645_s16, 1  ;;  %v4257_v2 = vld [vmem:[%s6560_s1 + $0x8] sm:$0xf] }
  0x17   : > { %v444_v1 = vsel %vm442_vm0, %v312_v0, 0  ;;  %v4316_v3 = vld [vmem:[%s6560_s1 + $0xc] sm:$0xf]  ;;  %v1358_v4 = vsel %vm442_vm0, %v4257_v2, 0  ;;  %v4232_v6 = vld [vmem:[%s6560_s1 + $0x4] sm:$0xf] }
  0x18   : > { %4484 = vmatpush.bf16.msra.mxu1 %v444_v1  ;;  %4485 = vmatpush.bf16.msra.mxu2 %v444_v1  ;;  %s212_s10 = scalar_select %p211_p12, %s4645_s16, 1  ;;  %v1695_v5 = vsel %vm442_vm0, %v4316_v3, 0  ;;  %v1021_v7 = vsel %vm442_vm0, %v4232_v6, 0  ;;  %v4333_v8 = vld [vmem:[%s6560_s1 + $0x10] sm:$0xf]  ;;  %vm393_vm1 = vcmask 64512  }
  0x19   : > { %4486 = vmatpush.bf16.msra.mxu3 %v444_v1  ;;  %453 = vmatpush.bf16.msra.mxu0 %v444_v1  ;;  %s4215_s21 = smul.u32 320, %s4641_s15  ;;  %v2269_v9 = vsel %vm442_vm0, %v4333_v8, 0  ;;  %vm567_vm2 = vsmask.f32 3328  ;;  %vm568_vm3 = vsmask.f32 7440 }
  0x1a   : > { %s4487_s28 = smul.u32 1360, %s212_s10  ;;  %vm1152_vm4 = vcmask 1042432   ;;  %vm1153_vm5 = vcmask 1046532   ;;  %vm4963_vm6 = vmor %vm567_vm2, %vm568_vm3  ;;  %vm4035_vm8 = vcmask 519168   ;;  %s4479_s9 = sshll.u32 %s4645_s16, 7 }
  0x1b   : > { %vm4970_vm7 = vmor %vm1152_vm4, %vm1153_vm5 }
  0x1c   : > { %1367 = vmatpush.bf16.msrb.mxu2 %v1358_v4  ;;  %1030 = vmatpush.bf16.msrb.mxu1 %v1021_v7  ;;  %s215_s5 = scalar_lea.vmem %s6559_s0, %s4487_s28 }
  0x1d   : > { %1704 = vmatpush.bf16.msrb.mxu3 %v1695_v5  ;;  %2278 = vmatpush.bf16.msrb.mxu0 %v2269_v9  ;;  %s4778_s6 = scalar_lea.vmem %s215_s5, %s4215_s21  ;;  %s208_s5 = sand.u32 1, %s4633_s13  }
  0x1e   : > { %v242_v10 = vld [vmem:[%s4778_s6 + $0x50] sm:$0xff]  ;;  %v243_v11 = vld [vmem:[%s4778_s6 + $0x58] sm:$0xff]  ;;  %v252_v12 = vld [vmem:[%s4778_s6 + $0xa0] sm:$0xff]  ;;  %s4212_s7 = sshll.u32 %s208_s5, 7  ;;  %s4069_s27 = scalar_lea.sflag [#allocation3], %s208_s5 }
  0x1f   : > { %v4783_v13 = vpack.c.bf16 %v242_v10, %v242_v10  ;;  %v4785_v14 = vpack.c.bf16 %v243_v11, %v243_v11  ;;  %v253_v15 = vld [vmem:[%s4778_s6 + $0xa8] sm:$0xff]  ;;  %v4788_v16 = vpack.c.bf16 %v252_v12, %v252_v12  ;;  %v262_v17 = vld [vmem:[%s4778_s6 + $0xf0] sm:$0xff]  ;;  %v263_v18 = vld [vmem:[%s4778_s6 + $0xf8] sm:$0xff]  ;;  %s6185_s8 = scalar_lea.vmem [#allocation2], %s4212_s7 }
  0x20   : > { %v4792_v19 = vpack.c.bf16 %v253_v15, %v253_v15  ;;  %v4794_v20 = vpack.c.bf16 %v262_v17, %v262_v17  ;;  %v4796_v21 = vpack.c.bf16 %v263_v18, %v263_v18  ;;  %v232_v22 = vld [vmem:[%s4778_s6] sm:$0xff]  ;;  %v233_v23 = vld [vmem:[%s4778_s6 + $0x8] sm:$0xff]  ;;  %v254_v40 = vld [vmem:[%s4778_s6 + $0xb0] sm:$0xff]  ;;  %s4085_s21 = sshll.u32 %s6185_s8, 4  ;;  %s4086_s21 = int_to_ptr.vmem [resolvable:$true] %s4085_s21 }
  0x21   : > { %v353_v24 = vunpack.c.l.b16 %v4783_v13  ;;  %v354_v25 = vunpack.c.l.b16 %v4785_v14  ;;  %v361_v26 = vunpack.c.l.b16 %v4788_v16  ;;  %v4803_v27 = vpack.c.bf16 %v232_v22, %v232_v22  ;;  %v244_v38 = vld [vmem:[%s4778_s6 + $0x60] sm:$0xff]  ;;  %v245_v39 = vld [vmem:[%s4778_s6 + $0x68] sm:$0xff]  ;;  %v255_v41 = vld [vmem:[%s4778_s6 + $0xb8] sm:$0xff] }
  0x22   : > { %6613 = vst [vmem:[#allocation5_spill] sm:$0xff] %v4794_v20  ;;  %v362_v28 = vunpack.c.l.b16 %v4792_v19  ;;  %v369_v29 = vunpack.c.l.b16 %v4794_v20  ;;  %v370_v30 = vunpack.c.l.b16 %v4796_v21  ;;  %v4808_v31 = vpack.c.bf16 %v233_v23, %v233_v23  ;;  %v264_v42 = vld [vmem:[%s4778_s6 + $0x100] sm:$0xff]  ;;  %v265_v43 = vld [vmem:[%s4778_s6 + $0x108] sm:$0xff]  ;;  %v234_v46 = vld [vmem:[%s4778_s6 + $0x10] sm:$0xff] }
  0x23   : > { %6614 = vst [vmem:[#allocation6_spill] sm:$0xff] %v4796_v21  ;;  %v4810_v32 = vpack.c.b16 %v354_v25, %v353_v24  ;;  %v345_v33 = vunpack.c.l.b16 %v4803_v27  ;;  %v4825_v44 = vpack.c.bf16 %v244_v38, %v244_v38  ;;  %v4827_v45 = vpack.c.bf16 %v245_v39, %v245_v39  ;;  %v235_v47 = vld [vmem:[%s4778_s6 + $0x18] sm:$0xff]  ;;  %v248_v3 = vld [vmem:[%s4778_s6 + $0x80] sm:$0xff]  ;;  %v257_v4 = vld [vmem:[%s4778_s6 + $0xc8] sm:$0xff] }
  0x24   : > { %v385_v34 = vpack.c.b16 %v362_v28, %v361_v26  ;;  %v389_v35 = vpack.c.b16 %v370_v30, %v369_v29  ;;  %v346_v36 = vunpack.c.l.b16 %v4808_v31  ;;  %v4831_v48 = vpack.c.bf16 %v254_v40, %v254_v40  ;;  %v247_v2 = vld [vmem:[%s4778_s6 + $0x78] sm:$0xff]  ;;  %v258_v5 = vld [vmem:[%s4778_s6 + $0xd0] sm:$0xff]  ;;  %v268_v7 = vld [vmem:[%s4778_s6 + $0x120] sm:$0xff] }
  0x25   : > { %4220 = vmatmul.msk.bf16.vlgmr.msra.gmra.mxu1 %vm393_vm1, %v4810_v32  ;;  %v4833_v49 = vpack.c.bf16 %v255_v41, %v255_v41  ;;  %v4835_v50 = vpack.c.bf16 %v264_v42, %v264_v42  ;;  %v4837_v51 = vpack.c.bf16 %v265_v43, %v265_v43  ;;  %v4839_v52 = vpack.c.bf16 %v234_v46, %v234_v46  ;;  %v267_v6 = vld [vmem:[%s4778_s6 + $0x118] sm:$0xff]  ;;  %v237_v10 = vld [vmem:[%s4778_s6 + $0x28] sm:$0xff]  ;;  %v238_v11 = vld [vmem:[%s4778_s6 + $0x30] sm:$0xff] }
  0x26   : > { %4224 = vmatmul.msk.bf16.vlgmr.msra.gmra.mxu2 %vm393_vm1, %v385_v34  ;;  %4228 = vmatmul.msk.bf16.vlgmr.msra.gmra.mxu3 %vm393_vm1, %v389_v35  ;;  %v377_v37 = vpack.c.b16 %v346_v36, %v345_v33  ;;  %v4841_v53 = vpack.c.bf16 %v235_v47, %v235_v47  ;;  %v355_v54 = vunpack.c.l.b16 %v4825_v44  ;;  %v356_v55 = vunpack.c.l.b16 %v4827_v45  ;;  %v249_v38 = vld [vmem:[%s4778_s6 + $0x88] sm:$0xff]  ;;  %v250_v40 = vld [vmem:[%s4778_s6 + $0x90] sm:$0xff]  ;;  %v259_v41 = vld [vmem:[%s4778_s6 + $0xd8] sm:$0xff] }
  0x27   : > { %6615 = vst [vmem:[#allocation7_spill] sm:$0xff] %v4835_v50  ;;  %v363_v56 = vunpack.c.l.b16 %v4831_v48  ;;  %v364_v57 = vunpack.c.l.b16 %v4833_v49  ;;  %v371_v58 = vunpack.c.l.b16 %v4835_v50  ;;  %v372_v59 = vunpack.c.l.b16 %v4837_v51  ;;  %v260_v42 = vld [vmem:[%s4778_s6 + $0xe0] sm:$0xff]  ;;  %v269_v46 = vld [vmem:[%s4778_s6 + $0x128] sm:$0xff]  ;;  %v270_v47 = vld [vmem:[%s4778_s6 + $0x130] sm:$0xff] }
  0x28   : > { %4216 = vmatmul.msk.bf16.vlgmr.msra.gmra.mxu0 %vm393_vm1, %v377_v37  ;;  %6616 = vst [vmem:[#allocation8_spill] sm:$0xff] %v4837_v51  ;;  %v347_v60 = vunpack.c.l.b16 %v4839_v52  ;;  %v348_v61 = vunpack.c.l.b16 %v4841_v53  ;;  %v4851_v62 = vpack.c.b16 %v356_v55, %v355_v54  ;;  %v4864_v8 = vpack.c.bf16 %v247_v2, %v247_v2  ;;  %v4417_v55 = vld [vmem:[%s6560_s1 + $0x18] sm:$0xf]  ;;  %v4434_v2 = vld [vmem:[%s6560_s1 + $0x1c] sm:$0xf] }
  0x29   : > { %v386_v63 = vpack.c.b16 %v364_v57, %v363_v56  ;;  %v390_v0 = vpack.c.b16 %v372_v59, %v371_v58  ;;  %v4866_v9 = vpack.c.bf16 %v248_v3, %v248_v3  ;;  %v4870_v12 = vpack.c.bf16 %v257_v4, %v257_v4  ;;  %v239_v56 = vld [vmem:[%s4778_s6 + $0x38] sm:$0xff]  ;;  %v240_v57 = vld [vmem:[%s4778_s6 + $0x40] sm:$0xff]  ;;  %v4358_v3 = vld [vmem:[%s6560_s1 + $0x14] sm:$0xf] }
  0x2a   : > { %v378_v1 = vpack.c.b16 %v348_v61, %v347_v60  ;;  %v4872_v15 = vpack.c.bf16 %v258_v5, %v258_v5  ;;  %v4874_v17 = vpack.c.bf16 %v267_v6, %v267_v6  ;;  %v4876_v18 = vpack.c.bf16 %v268_v7, %v268_v7  ;;  %v4459_v4 = vld [vmem:[%s6560_s1 + $0x20] sm:$0xf] }
  0x2b   : > { %v4878_v22 = vpack.c.bf16 %v237_v10, %v237_v10  ;;  %v4880_v23 = vpack.c.bf16 %v238_v11, %v238_v11  ;;  %v357_v24 = vunpack.c.l.b16 %v4864_v8  ;;  %v358_v25 = vunpack.c.l.b16 %v4866_v9 }
  0x2c   : > { %6617 = vst [vmem:[#allocation9_spill] sm:$0xff] %v4874_v17  ;;  %v365_v26 = vunpack.c.l.b16 %v4870_v12  ;;  %v366_v28 = vunpack.c.l.b16 %v4872_v15  ;;  %v373_v29 = vunpack.c.l.b16 %v4874_v17  ;;  %v374_v30 = vunpack.c.l.b16 %v4876_v18 }
  0x2d   : > { %6618 = vst [vmem:[#allocation10_spill] sm:$0xff] %v4876_v18  ;;  %v349_v33 = vunpack.c.l.b16 %v4878_v22  ;;  %v350_v34 = vunpack.c.l.b16 %v4880_v23  ;;  %v4890_v35 = vpack.c.b16 %v358_v25, %v357_v24  ;;  %v4902_v43 = vpack.c.bf16 %v249_v38, %v249_v38 }
  0x2e   : > { %v387_v36 = vpack.c.b16 %v366_v28, %v365_v26  ;;  %v391_v37 = vpack.c.b16 %v374_v30, %v373_v29  ;;  %v571_v54 = vshrl.u32 %v4803_v27, 16  ;;  %v574_v58 = vshll.u32 %v4803_v27, 16 }
  0x2f   : > { %v4893_v39 = vpack.c.b16 %v350_v34, %v349_v33  ;;  %v580_v59 = vshll.u32 %v4808_v31, 16  ;;  %v584_v60 = vshrl.u32 %v4808_v31, 16  ;;  %v2940_v61 = vsel %vm442_vm0, %v4417_v55, 0 }
  0x30   : > { %2949 = vmatpush.bf16.msra.mxu2 %v2940_v61  ;;  %v4933_v5 = vpack.c.bf16 %v269_v46, %v269_v46  ;;  %v3514_v6 = vsel %vm442_vm0, %v4434_v2, 0  ;;  %v2603_v7 = vsel %vm442_vm0, %v4358_v3, 0  ;;  %v3848_v10 = vsel %vm442_vm0, %v4459_v4, 0 }
  0x31   : > { %v4938_v11 = vpack.c.bf16 %v270_v47, %v270_v47  ;;  %v4940_v24 = vpack.c.bf16 %v239_v56, %v239_v56  ;;  %v4942_v25 = vpack.c.bf16 %v240_v57, %v240_v57  ;;  %3523 = vmatpush.bf16.msra.mxu3 %v3514_v6  ;;  %2612 = vmatpush.bf16.msra.mxu1 %v2603_v7  ;;  %v573_v26 = vrot.slane %v571_v54, 4 }
  0x32   : > { %6619 = vst [vmem:[#allocation11_spill] sm:$0xff] %v4933_v5  ;;  %v576_v28 = vrot.slane %v574_v58, 5  ;;  %v582_v29 = vrot.slane %v580_v59, 5  ;;  %v586_v30 = vrot.slane %v584_v60, 4  ;;  %3857 = vmatpush.bf16.msra.mxu0 %v3848_v10  ;;  %v1819_v33 = vshrl.u32 %v4878_v22, 16 }
  0x33   : > { %6620 = vst [vmem:[#allocation12_spill] sm:$0xff] %v4938_v11  ;;  %v1822_v34 = vshll.u32 %v4878_v22, 16  ;;  %v359_v38 = vunpack.c.l.b16 %v4902_v43  ;;  %v375_v46 = vunpack.c.l.b16 %v4933_v5  ;;  %v376_v47 = vunpack.c.l.b16 %v4938_v11 }
  0x34   : > { %v351_v54 = vunpack.c.l.b16 %v4940_v24  ;;  %v352_v55 = vunpack.c.l.b16 %v4942_v25  ;;  %v577_v56 = vor.u32 %v576_v28, %v573_v26  ;;  %v587_v57 = vor.u32 %v586_v30, %v582_v29 }
  0x35   : > { %4221 = vmatmul.msk.bf16.gmra.mxu1 %vm393_vm1, %v4851_v62  ;;  %v590_v58 = vshll.u32 %v4839_v52, 16  ;;  %v1157_v59 = vrot.slane %v4808_v31, 5  ;;  %v1821_v60 = vrot.slane %v1819_v33, 4  ;;  %v1824_v61 = vrot.slane %v1822_v34, 5 }
  0x36   : > { %4225 = vmatmul.msk.bf16.gmra.mxu2 %vm393_vm1, %v386_v63  ;;  %4229 = vmatmul.msk.bf16.gmra.mxu3 %vm393_vm1, %v390_v0  ;;  %v4918_v63 = vpack.c.bf16 %v250_v40, %v250_v40  ;;  %v4920_v0 = vpack.c.bf16 %v259_v41, %v259_v41  ;;  %v392_v7 = vpack.c.b16 %v376_v47, %v375_v46  ;;  %v578_v26 = vrot.slane %v577_v56, 4  ;;  %v236_v56 = vld [vmem:[%s4778_s6 + $0x20] sm:$0x3] }
  0x37   : > { %v4960_v10 = vpack.c.b16 %v352_v55, %v351_v54  ;;  %v588_v28 = vrot.slane %v587_v57, 4  ;;  %v592_v30 = vrot.slane %v590_v58, 5  ;;  %v4249_v11 = vrot.slane %v4803_v27, 9 }
  0x38   : > { %4217 = vmatmul.msk.bf16.gmra.mxu0 %vm393_vm1, %v378_v1  ;;  %v4922_v1 = vpack.c.bf16 %v260_v42, %v260_v42  ;;  %v360_v40 = vunpack.c.l.b16 %v4918_v63  ;;  %v367_v41 = vunpack.c.l.b16 %v4920_v0  ;;  %v1159_v33 = vrot.slane %v1157_v59, 4 }
  0x39   : > { %v1160_v34 = vrot.slane %v4839_v52, 5  ;;  %v583_v27 = vsel %vm4963_vm6, %v578_v26, %v582_v29  ;;  %v594_v57 = vshrl.u32 %v4839_v52, 16  ;;  %v600_v29 = vshll.u32 %v4841_v53, 16 }
  0x3a   : > { %v368_v42 = vunpack.c.l.b16 %v4922_v1  ;;  %v4958_v4 = vpack.c.b16 %v360_v40, %v359_v38  ;;  %v1838_v40 = vshll.u32 %v4940_v24, 16  ;;  %v604_v58 = vshrl.u32 %v4841_v53, 16 }
  0x3b   : > { %v1161_v46 = vsel %vm4970_vm7, %v1159_v33, %v1160_v34  ;;  %v276_v33 = vpack.c.bf16 %v236_v56, %v236_v56 }
  0x3c   : > { %v388_v6 = vpack.c.b16 %v368_v42, %v367_v41  ;;  %v593_v41 = vsel %vm4963_vm6, %v588_v28, %v592_v30  ;;  %v1158_v42 = vsel %vm4970_vm7, %v4249_v11, %v1157_v59  ;;  %v1840_v55 = vrot.slane %v1838_v40, 5 }
  0x3d   : > { %v924_v11 = vunpack.c.l.b16 %v583_v27  ;;  %v925_v59 = vunpack.c.l.b16 %v593_v41  ;;  %v1262_v26 = vunpack.c.l.b16 %v1161_v46  ;;  %v606_v40 = vrot.slane %v604_v58, 4 }
  0x3e   : > { %v610_v50 = vshll.u32 %v276_v33, 16 }
  0x45   : > { %4222 = vmatmul.msk.bf16.gmra.mxu1 %vm393_vm1, %v4890_v35 }
  0x46   : > { %4226 = vmatmul.msk.bf16.gmra.mxu2 %vm393_vm1, %v387_v36  ;;  %4230 = vmatmul.msk.bf16.gmra.mxu3 %vm393_vm1, %v391_v37  ;;  %v1828_v36 = vshll.u32 %v4880_v23, 16  ;;  %v1832_v37 = vshrl.u32 %v4880_v23, 16 }
  0x48   : > { %4218 = vmatmul.msk.bf16.gmra.mxu0 %vm393_vm1, %v4893_v39  ;;  %v1830_v2 = vrot.slane %v1828_v36, 5  ;;  %v1834_v3 = vrot.slane %v1832_v37, 4  ;;  %v1825_v36 = vor.u32 %v1824_v61, %v1821_v60  ;;  %v1842_v60 = vshrl.u32 %v4940_v24, 16 }
  0x49   : > { %v1848_v61 = vshll.u32 %v4942_v25, 16 }
  0x4a   : > { %v1835_v37 = vor.u32 %v1834_v3, %v1830_v2  ;;  %v1826_v47 = vrot.slane %v1825_v36, 4  ;;  %v1852_v3 = vshrl.u32 %v4942_v25, 16  ;;  %v596_v36 = vrot.slane %v594_v57, 4 }
  0x4b   : > { %v1844_v18 = vrot.slane %v1842_v60, 4  ;;  %v1850_v17 = vrot.slane %v1848_v61, 5  ;;  %v1162_v60 = vrot.slane %v1160_v34, 4 }
  0x4c   : > { %v1836_v54 = vrot.slane %v1835_v37, 4  ;;  %v1831_v28 = vsel %vm4963_vm6, %v1826_v47, %v1830_v2  ;;  %v602_v37 = vrot.slane %v600_v29, 5  ;;  %v1854_v51 = vrot.slane %v1852_v3, 4 }
  0x4d   : > { %v2172_v27 = vunpack.c.l.b16 %v1831_v28  ;;  %v597_v21 = vor.u32 %v596_v36, %v592_v30  ;;  %v1163_v2 = vrot.slane %v4841_v53, 5  ;;  %v1845_v56 = vor.u32 %v1844_v18, %v1840_v55 }
  0x4e   : > { %v1841_v52 = vsel %vm4963_vm6, %v1836_v54, %v1840_v55  ;;  %v607_v47 = vor.u32 %v606_v40, %v602_v37  ;;  %v1855_v20 = vor.u32 %v1854_v51, %v1850_v17  ;;  %v612_v29 = vrot.slane %v610_v50, 5 }
  0x4f   : > { %v2173_v41 = vunpack.c.l.b16 %v1841_v52  ;;  %v598_v58 = vrot.slane %v597_v21, 4  ;;  %v1165_v61 = vrot.slane %v1163_v2, 4  ;;  %v1166_v3 = vrot.slane %v276_v33, 5 }
  0x50   : > { %v608_v53 = vrot.slane %v607_v47, 4  ;;  %v1846_v30 = vrot.slane %v1845_v56, 4  ;;  %v5009_v18 = vrot.slane %v1855_v20, 4  ;;  %v1164_v21 = vsel %vm4970_vm7, %v1162_v60, %v1163_v2 }
  0x51   : > { %v5003_v57 = vpack.c.b16 %v2173_v41, %v2172_v27  ;;  %v603_v50 = vsel %vm4963_vm6, %v598_v58, %v602_v37  ;;  %v1263_v33 = vunpack.c.l.b16 %v1164_v21  ;;  %v1170_v47 = vrot.slane %v4880_v23, 5 }
  0x52   : > { %v613_v34 = vsel %vm4963_vm6, %v608_v53, %v612_v29  ;;  %v1851_v20 = vsel %vm4963_vm6, %v1846_v30, %v1850_v17  ;;  %v1882_v29 = vshll.u32 %v4825_v44, 16  ;;  %v4250_v58 = vrot.slane %v4878_v22, 9  ;;  %v241_v30 = vld [vmem:[%s4778_s6 + $0x48] sm:$0x3] }
  0x53   : > { %v927_v28 = vunpack.c.l.b16 %v613_v34  ;;  %v5030_v36 = vunpack.c.l.b16 %v1851_v20  ;;  %v1172_v60 = vrot.slane %v1170_v47, 4  ;;  %v1892_v21 = vshll.u32 %v4827_v45, 16  ;;  %v4285_v20 = vld [vmem:[%s4778_s6 + $0x70] sm:$0x3] }
  0x54   : > { %v1884_v53 = vrot.slane %v1882_v29, 5  ;;  %v1896_v34 = vshrl.u32 %v4827_v45, 16 }
  0x55   : > { %4223 = vmatmul.msk.bf16.gmra.mxu1 %vm393_vm1, %v4958_v4 }
  0x56   : > { %4227 = vmatmul.msk.bf16.gmra.mxu2 %vm393_vm1, %v388_v6  ;;  %4231 = vmatmul.msk.bf16.gmra.mxu3 %vm393_vm1, %v392_v7  ;;  %v4280_v6 = vld [vmem:[%s4778_s6 + $0x48] sm:$0x3]  ;;  %v1261_v7 = vunpack.c.l.b16 %v1158_v42  ;;  %v956_v42 = vpack.c.b16 %v925_v59, %v924_v11  ;;  %v1863_v11 = vshrl.u32 %v4783_v13, 16  ;;  %v1866_v59 = vshll.u32 %v4783_v13, 16 }
  0x57   : > { %v4999_v5 = vpack.c.bf16 %v4280_v6, %v4280_v6  ;;  %v1872_v6 = vshll.u32 %v4785_v14, 16 }
  0x58   : > { %4219 = vmatmul.msk.bf16.gmra.mxu0 %vm393_vm1, %v4960_v10  ;;  %v1293_v46 = vpack.c.b16 %v1262_v26, %v1261_v7  ;;  %v1876_v7 = vshrl.u32 %v4785_v14, 16  ;;  %v926_v26 = vunpack.c.l.b16 %v603_v50  ;;  %v1865_v17 = vrot.slane %v1863_v11, 4 }
  0x59   : > { %v1858_v54 = vshll.u32 %v4999_v5, 16  ;;  %v1868_v40 = vrot.slane %v1866_v59, 5  ;;  %v1874_v27 = vrot.slane %v1872_v6, 5  ;;  %v1171_v50 = vsel %vm4970_vm7, %v4250_v58, %v1170_v47 }
  0x5a   : > { %v1878_v41 = vrot.slane %v1876_v7, 4 }
  0x5b   : > { %v1860_v51 = vrot.slane %v1858_v54, 5  ;;  %v1869_v56 = vor.u32 %v1868_v40, %v1865_v17  ;;  %v1176_v17 = vrot.slane %v4942_v25, 5 }
  0x5c   : > { %v1879_v54 = vor.u32 %v1878_v41, %v1874_v27 }
  0x5d   : > { %v1861_v55 = vsel %vm4963_vm6, %v5009_v18, %v1860_v51  ;;  %v1870_v23 = vrot.slane %v1869_v56, 4  ;;  %v1886_v51 = vshrl.u32 %v4825_v44, 16  ;;  %v5069_v47 = vrot.slane %v1176_v17, 4 }
  0x5e   : > { %v2175_v37 = vunpack.c.l.b16 %v1861_v55  ;;  %v1265_v55 = vunpack.c.l.b16 %v1171_v50 }
  0x5f   : > { %v1875_v22 = vsel %vm4963_vm6, %v1870_v23, %v1874_v27  ;;  %v1888_v59 = vrot.slane %v1886_v51, 4  ;;  %6626 = vst [vmem:[#allocation14_spill] sm:$0xff] %v5069_v47  ;;  %v1907_v23 = vshrl.u32 %v4864_v8, 16 }
  0x60   : > { %v2205_v2 = vpack.c.b16 %v2175_v37, %v5030_v36  ;;  %v2176_v6 = vunpack.c.l.b16 %v1875_v22 }
  0x61   : > { %v1889_v40 = vor.u32 %v1888_v59, %v1884_v53 }
  0x63   : > { %v1890_v56 = vrot.slane %v1889_v40, 4 }
  0x65   : > { %4233 = vmatmul.msk.bf16.vlgmr.msrb.gmra.mxu1 %vm393_vm1, %v956_v42  ;;  %v957_v42 = vpack.c.b16 %v927_v28, %v926_v26  ;;  %v5055_v26 = vpack.c.bf16 %v4285_v20, %v4285_v20  ;;  %v1894_v28 = vrot.slane %v1892_v21, 5  ;;  %v1909_v21 = vrot.slane %v1907_v23, 4 }
  0x66   : > { %4258 = vmatmul.msk.bf16.vlgmr.msrb.gmra.mxu2 %vm393_vm1, %v1293_v46  ;;  %4317 = vmatmul.msk.bf16.vlgmr.msrb.gmra.mxu3 %vm393_vm1, %v4893_v39  ;;  %v1167_v39 = vsel %vm4970_vm7, %v1165_v61, %v1166_v3  ;;  %v1173_v61 = vrot.slane %v4940_v24, 5  ;;  %v1880_v3 = vrot.slane %v1879_v54, 4 }
  0x67   : > { %v1264_v52 = vunpack.c.l.b16 %v1167_v39  ;;  %v281_v39 = vpack.c.bf16 %v241_v30, %v241_v30  ;;  %6625 = vst [vmem:[#allocation13_spill] sm:$0xff] %v5055_v26  ;;  %v1920_v30 = vshrl.u32 %v4866_v9, 16 }
  0x68   : > { %4334 = vmatmul.msk.bf16.vlgmr.msrb.gmra.mxu0 %vm393_vm1, %v5003_v57  ;;  %v1885_v24 = vsel %vm4963_vm6, %v1880_v3, %v1884_v53  ;;  %v1910_v3 = vshll.u32 %v4864_v8, 16  ;;  %v1916_v53 = vshll.u32 %v4866_v9, 16 }
  0x69   : > { %v1294_v46 = vpack.c.b16 %v1264_v52, %v1263_v33  ;;  %v2177_v7 = vunpack.c.l.b16 %v1885_v24  ;;  %v1898_v33 = vrot.slane %v1896_v34, 4  ;;  %v654_v52 = vshll.u32 %v281_v39, 16 }
  0x6a   : > { %v1179_v25 = vrot.slane %v281_v39, 5  ;;  %v1183_v24 = vrot.slane %v4785_v14, 5  ;;  %v1912_v34 = vrot.slane %v1910_v3, 5  ;;  %v1918_v20 = vrot.slane %v1916_v53, 5  ;;  %v5126_v3 = vld [vmem:[%s6561_s2] ss:$0 sm:$0xff] }
  0x6b   : > { %v5060_v27 = vpack.c.b16 %v2177_v7, %v2176_v6  ;;  %v1899_v41 = vor.u32 %v1898_v33, %v1894_v28  ;;  %v4251_v6 = vrot.slane %v4783_v13, 9 }
  0x6c   : > { %v1185_v7 = vrot.slane %v1183_v24, 4  ;;  %v1913_v33 = vor.u32 %v1912_v34, %v1909_v21  ;;  %v1189_v34 = vrot.slane %v4827_v45, 5 }
  0x6d   : > { %v5073_v54 = vrot.slane %v1899_v41, 4  ;;  %v1184_v13 = vsel %vm4970_vm7, %v4251_v6, %v1183_v24  ;;  %v246_v41 = vld [vmem:[%s4778_s6 + $0x70] sm:$0x3]  ;;  %v4291_v24 = vld [vmem:[%s4778_s6 + $0xa0] sm:$0xff] }
  0x75   : > { %4234 = vmatmul.msk.bf16.gmra.mxu1 %vm393_vm1, %v957_v42  ;;  %v1902_v42 = vshll.u32 %v5055_v26, 16 }
  0x76   : > { %4259 = vmatmul.msk.bf16.gmra.mxu2 %vm393_vm1, %v1294_v46  ;;  %4318 = vmatmul.msk.bf16.gmra.mxu3 %vm393_vm1, %v4960_v10  ;;  %v1174_v10 = vsel %vm4970_vm7, %v1172_v60, %v1173_v61  ;;  %v656_v46 = vrot.slane %v654_v52, 5  ;;  %v1895_v60 = vsel %vm4963_vm6, %v1890_v56, %v1894_v28  ;;  %v1186_v28 = vrot.slane %v4825_v44, 5 }
  0x77   : > { %v1266_v11 = vunpack.c.l.b16 %v1174_v10  ;;  %v1904_v29 = vrot.slane %v1902_v42, 5  ;;  %v5095_v10 = vunpack.c.l.b16 %v1895_v60  ;;  %v1926_v52 = vshll.u32 %v4902_v43, 16 }
  0x78   : > { %4335 = vmatmul.msk.bf16.gmra.mxu0 %vm393_vm1, %v2205_v2  ;;  %v1175_v2 = vrot.slane %v1173_v61, 4  ;;  %v1187_v44 = vsel %vm4970_vm7, %v1185_v7, %v1186_v28  ;;  %v1930_v42 = vshrl.u32 %v4902_v43, 16  ;;  %v5141_v7 = vpack.c.bf16 %v4291_v24, %v4291_v24 }
  0x79   : > { %v5057_v37 = vpack.c.b16 %v1266_v11, %v1265_v55  ;;  %v1905_v61 = vsel %vm4963_vm6, %v5073_v54, %v1904_v29  ;;  %v1922_v55 = vrot.slane %v1920_v30, 4  ;;  %v1928_v40 = vrot.slane %v1926_v52, 5  ;;  %v4290_v29 = vld [vmem:[%s4778_s6 + $0x98] sm:$0x3] }
  0x7a   : > { %v5080_v58 = vsel %vm4970_vm7, %v1175_v2, %v1176_v17  ;;  %v2179_v22 = vunpack.c.l.b16 %v1905_v61  ;;  %v1940_v2 = vshrl.u32 %v4918_v63, 16  ;;  %v1932_v60 = vrot.slane %v1930_v42, 4  ;;  %6630 = vst [vmem:[#allocation18_spill] sm:$0xff] %v5141_v7 }
  0x7b   : > { %6627 = vst [vmem:[#allocation15_spill] sm:$0xff] %v5080_v58  ;;  %v6580_v51 = vunpack.c.l.b16 %v5080_v58  ;;  %v1923_v14 = vor.u32 %v1922_v55, %v1918_v20  ;;  %v4292_v55 = vld [vmem:[%s4778_s6 + $0xa8] sm:$0xff]  ;;  %v1188_v52 = vrot.slane %v1186_v28, 4  ;;  %v1954_v28 = vshll.u32 %v5141_v7, 16 }
  0x7c   : > { %v2207_v59 = vpack.c.b16 %v2179_v22, %v5095_v10  ;;  %v1942_v23 = vrot.slane %v1940_v2, 4  ;;  %v5147_v45 = vpack.c.bf16 %v4292_v55, %v4292_v55 }
  0x7d   : > { %v1924_v17 = vrot.slane %v1923_v14, 4 }
  0x7e   : > { %6631 = vst [vmem:[#allocation19_spill] sm:$0xff] %v5147_v45  ;;  %v1960_v2 = vshll.u32 %v5147_v45, 16 }
  0x85   : > { %4235 = vmatmul.msk.bf16.gmra.mxu1 %vm393_vm1, %v5003_v57  ;;  %v657_v57 = vsel %vm4963_vm6, %v5009_v18, %v656_v46  ;;  %v1936_v46 = vshll.u32 %v4918_v63, 16 }
  0x86   : > { %4260 = vmatmul.msk.bf16.gmra.mxu2 %vm393_vm1, %v5057_v37  ;;  %4319 = vmatmul.msk.bf16.gmra.mxu3 %vm393_vm1, %v4810_v32  ;;  %v1180_v32 = vsel %vm4970_vm7, %v5069_v47, %v1179_v25  ;;  %v931_v18 = vunpack.c.l.b16 %v657_v57  ;;  %v1270_v25 = vunpack.c.l.b16 %v1187_v44  ;;  %v1929_v57 = vsel %vm4963_vm6, %v1924_v17, %v1928_v40 }
  0x87   : > { %v1268_v50 = vunpack.c.l.b16 %v1180_v32  ;;  %v286_v32 = vpack.c.bf16 %v246_v41, %v246_v41  ;;  %v1938_v61 = vrot.slane %v1936_v46, 5  ;;  %v2181_v30 = vunpack.c.l.b16 %v1929_v57 }
  0x88   : > { %4336 = vmatmul.msk.bf16.gmra.mxu0 %vm393_vm1, %v5060_v27  ;;  %v959_v39 = vpack.c.b16 %v931_v18, %v5030_v36  ;;  %v1914_v36 = vrot.slane %v1913_v33, 4  ;;  %v5128_v18 = vpack.c.bf16 %v4290_v29, %v4290_v29  ;;  %v5166_v46 = vsel %vm4970_vm7, %v1188_v52, %v1189_v34 }
  0x89   : > { %v1296_v11 = vpack.c.b16 %v1268_v50, %v6580_v51  ;;  %v698_v22 = vshll.u32 %v286_v32, 16  ;;  %v1192_v44 = vrot.slane %v286_v32, 5  ;;  %6633 = vst [vmem:[#allocation21_spill] sm:$0xff] %v5166_v46  ;;  %v4252_v52 = vrot.slane %v4864_v8, 9 }
  0x8a   : > { %v1919_v56 = vsel %vm4963_vm6, %v1914_v36, %v1918_v20  ;;  %6628 = vst [vmem:[#allocation16_spill] sm:$0xff] %v5128_v18  ;;  %v1943_v20 = vor.u32 %v1942_v23, %v1938_v61 }
  0x8b   : > { %v2180_v53 = vunpack.c.l.b16 %v1919_v56  ;;  %v700_v14 = vrot.slane %v698_v22, 5 }
  0x8c   : > { %v5155_v17 = vrot.slane %v1943_v20, 4  ;;  %v6579_v20 = vunpack.c.l.b16 %v5166_v46 }
  0x8d   : > { %v5139_v6 = vpack.c.b16 %v2181_v30, %v2180_v53  ;;  %v1956_v30 = vrot.slane %v1954_v28, 5 }
  0x95   : > { %4236 = vmatmul.msk.bf16.gmra.mxu1 %vm393_vm1, %v959_v39  ;;  %v1933_v39 = vor.u32 %v1932_v60, %v1928_v40 }
  0x96   : > { %4261 = vmatmul.msk.bf16.gmra.mxu2 %vm393_vm1, %v1296_v11  ;;  %4320 = vmatmul.msk.bf16.gmra.mxu3 %vm393_vm1, %v4851_v62  ;;  %v1269_v62 = vunpack.c.l.b16 %v1184_v13  ;;  %v5153_v13 = vrot.slane %v1189_v34, 4  ;;  %v1962_v34 = vrot.slane %v1960_v2, 5 }
  0x97   : > { %v1934_v36 = vrot.slane %v1933_v39, 4 }
  0x98   : > { %4337 = vmatmul.msk.bf16.gmra.mxu0 %vm393_vm1, %v2207_v59  ;;  %v5130_v50 = vpack.c.b16 %v1270_v25, %v1269_v62  ;;  %v1946_v59 = vshll.u32 %v5128_v18, 16  ;;  %6632 = vst [vmem:[#allocation20_spill] sm:$0xff] %v5153_v13  ;;  %v1964_v62 = vshrl.u32 %v5147_v45, 16  ;;  %v1193_v57 = vsel %vm4970_vm7, %v5153_v13, %v1192_v44 }
  0x99   : > { %v1939_v60 = vsel %vm4963_vm6, %v1934_v36, %v1938_v61  ;;  %v1272_v55 = vunpack.c.l.b16 %v1193_v57  ;;  %v1196_v61 = vrot.slane %v4866_v9, 5 }
  0x9a   : > { %6629 = vst [vmem:[#allocation17_spill] sm:$0xff] %v5130_v50  ;;  %v1948_v40 = vrot.slane %v1946_v59, 5  ;;  %v1966_v39 = vrot.slane %v1964_v62, 4  ;;  %v5193_v59 = vunpack.c.l.b16 %v1939_v60  ;;  %v4294_v60 = vld [vmem:[%s4778_s6 + $0xb8] sm:$0xff] }
  0x9b   : > { %v1298_v8 = vpack.c.b16 %v1272_v55, %v6579_v20  ;;  %v1197_v57 = vsel %vm4970_vm7, %v4252_v52, %v1196_v61 }
  0x9c   : > { %v1949_v23 = vsel %vm4963_vm6, %v5155_v17, %v1948_v40  ;;  %v1967_v28 = vor.u32 %v1966_v39, %v1962_v34  ;;  %v5226_v39 = vpack.c.bf16 %v4294_v60, %v4294_v60  ;;  %v1273_v55 = vunpack.c.l.b16 %v1197_v57  ;;  %v4295_v60 = vld [vmem:[%s4778_s6 + $0xc0] sm:$0x3] }
  0x9e   : > { %6638 = vst [vmem:[#allocation26_spill] sm:$0xff] %v5226_v39 }
  0xa2   : > { %v475_v21 = vpop.f32.mrf.mxu1 }
  0xa3   : > { %v5136_v11 = vadd.f32 %v5126_v3, %v475_v21 }
  0xa5   : > { %v5143_v33 = vpop.f32.mrf.mxu0  ;;  %4237 = vmatmul.msk.bf16.gmra.mxu1 %vm393_vm1, %v5060_v27  ;;  %v1951_v27 = vshrl.u32 %v5141_v7, 16 }
  0xa6   : > { %4262 = vmatmul.msk.bf16.gmra.mxu2 %vm393_vm1, %v5130_v50  ;;  %4321 = vmatmul.msk.bf16.gmra.mxu3 %vm393_vm1, %v4890_v35  ;;  %v701_v35 = vsel %vm4963_vm6, %v5073_v54, %v700_v14  ;;  %v4293_v54 = vld [vmem:[%s4778_s6 + $0xb0] sm:$0xff]  ;;  %v2183_v14 = vunpack.c.l.b16 %v1949_v23 }
  0xa7   : > { %v1953_v53 = vrot.slane %v1951_v27, 4  ;;  %v935_v24 = vunpack.c.l.b16 %v701_v35  ;;  %v5190_v21 = vpack.c.bf16 %v4293_v54, %v4293_v54 }
  0xa8   : > { %4338 = vmatmul.msk.bf16.gmra.mxu0 %vm393_vm1, %v5139_v6  ;;  %v2209_v9 = vpack.c.b16 %v2183_v14, %v5193_v59 }
  0xa9   : > { %v495_v41 = vpop.f32.mrf.mxu2  ;;  %v515_v42 = vpop.f32.mrf.mxu3  ;;  %6635 = vst [vmem:[#allocation23_spill] sm:$0xff] %v5190_v21  ;;  %v1957_v44 = vor.u32 %v1956_v30, %v1953_v53  ;;  %v961_v27 = vpack.c.b16 %v935_v24, %v5095_v10  ;;  %v1198_v10 = vrot.slane %v1196_v61, 4  ;;  %v1968_v53 = vrot.slane %v1967_v28, 4  ;;  %v251_v24 = vld [vmem:[%s4778_s6 + $0x98] sm:$0x3] }
  0xaa   : > { %v5171_v25 = vadd.f32 %v5126_v3, %v495_v41  ;;  %v5174_v56 = vadd.f32 %v5126_v3, %v515_v42  ;;  %v477_v29 = vpop.f32.mrf.mxu1  ;;  %v1970_v41 = vshll.u32 %v5190_v21, 16  ;;  %v1612_v26 = vunpack.c.l.b16 %v5190_v21 }
  0xab   : > { %v5181_v32 = vadd.f32 %v5126_v3, %v477_v29  ;;  %v1199_v29 = vrot.slane %v4902_v43, 5  ;;  %v1958_v54 = vrot.slane %v1957_v44, 4 }
  0xac   : > { %6634 = vst [vmem:[#allocation22_spill] sm:$0xff] %v5174_v56  ;;  %v5218_v30 = vrot.slane %v1970_v41, 5  ;;  %v1974_v41 = vshrl.u32 %v5190_v21, 16 }
  0xad   : > { %v5188_v22 = vpop.f32.mrf.mxu0  ;;  %v1200_v43 = vsel %vm4970_vm7, %v1198_v10, %v1199_v29  ;;  %v1963_v14 = vsel %vm4963_vm6, %v1958_v54, %v1962_v34  ;;  %v1611_v10 = vunpack.c.l.b16 %v5147_v45 }
  0xae   : > { %v1973_v44 = vsel %vm4963_vm6, %v1968_v53, %v5218_v30  ;;  %v1274_v28 = vunpack.c.l.b16 %v1200_v43  ;;  %v2184_v57 = vunpack.c.l.b16 %v1963_v14  ;;  %v1202_v43 = vrot.slane %v4918_v63, 5 }
  0xaf   : > { %v2185_v54 = vunpack.c.l.b16 %v1973_v44 }
  0xb0   : > { %v5256_v51 = vpack.c.b16 %v1274_v28, %v1273_v55  ;;  %v5258_v18 = vrot.slane %v1202_v43, 4  ;;  %v4296_v55 = vld [vmem:[%s4778_s6 + $0xc8] sm:$0xff]  ;;  %v4297_v28 = vld [vmem:[%s4778_s6 + $0xd0] sm:$0xff] }
  0xb1   : > { %v497_v36 = vpop.f32.mrf.mxu2  ;;  %v517_v40 = vpop.f32.mrf.mxu3 }
  0xb2   : > { %v5200_v42 = vadd.f32 %v5126_v3, %v497_v36  ;;  %v5203_v35 = vadd.f32 %v5126_v3, %v517_v40  ;;  %v480_v2 = vpop.f32.mrf.mxu1  ;;  %6642 = vst [vmem:[#allocation30_spill] sm:$0xff] %v5256_v51 }
  0xb3   : > { %v5209_v62 = vadd.f32 %v5126_v3, %v480_v2  ;;  %v1980_v2 = vshll.u32 %v5226_v39, 16  ;;  %6643 = vst [vmem:[#allocation31_spill] sm:$0xff] %v5258_v18 }
  0xb4   : > { %6636 = vst [vmem:[#allocation24_spill] sm:$0xff] %v5200_v42 }
  0xb5   : > { %6637 = vst [vmem:[#allocation25_spill] sm:$0xff] %v5203_v35  ;;  %v5215_v23 = vpop.f32.mrf.mxu0  ;;  %4238 = vmatmul.msk.bf16.gmra.mxu1 %vm393_vm1, %v961_v27  ;;  %v1201_v35 = vrot.slane %v1199_v29, 4 }
  0xb6   : > { %4263 = vmatmul.msk.bf16.gmra.mxu2 %vm393_vm1, %v1298_v8  ;;  %4322 = vmatmul.msk.bf16.gmra.mxu3 %vm393_vm1, %v4958_v4  ;;  %v291_v4 = vpack.c.bf16 %v251_v24, %v251_v24  ;;  %v1984_v8 = vshrl.u32 %v5226_v39, 16 }
  0xb8   : > { %4339 = vmatmul.msk.bf16.gmra.mxu0 %vm393_vm1, %v2209_v9  ;;  %v1610_v9 = vunpack.c.l.b16 %v5141_v7  ;;  %v742_v24 = vshll.u32 %v291_v4, 16  ;;  %v1986_v20 = vrot.slane %v1984_v8, 4 }
  0xb9   : > { %v500_v61 = vpop.f32.mrf.mxu2  ;;  %v520_v52 = vpop.f32.mrf.mxu3 }
  0xba   : > { %v5235_v36 = vadd.f32 %v5126_v3, %v500_v61  ;;  %v5238_v40 = vadd.f32 %v5126_v3, %v520_v52  ;;  %v482_v27 = vpop.f32.mrf.mxu1  ;;  %v1976_v61 = vrot.slane %v1974_v41, 4  ;;  %v5252_v52 = vpack.c.bf16 %v4295_v60, %v4295_v60 }
  0xbb   : > { %v5242_v34 = vadd.f32 %v5126_v3, %v482_v27  ;;  %v5254_v27 = vrot.slane %v1980_v2, 5  ;;  %v1636_v7 = vpack.c.b16 %v1611_v10, %v1610_v9  ;;  %v744_v45 = vrot.slane %v742_v24, 5 }
  0xbc   : > { %6639 = vst [vmem:[#allocation27_spill] sm:$0xff] %v5235_v36  ;;  %v1205_v60 = vrot.slane %v291_v4, 5  ;;  %v1977_v8 = vor.u32 %v1976_v61, %v5218_v30  ;;  %v1990_v29 = vshll.u32 %v5252_v52, 16  ;;  %v756_v24 = vshll.u32 %v4792_v19, 16 }
  0xbd   : > { %6640 = vst [vmem:[#allocation28_spill] sm:$0xff] %v5238_v40  ;;  %v5249_v53 = vpop.f32.mrf.mxu0  ;;  %v2210_v40 = vpack.c.b16 %v2185_v54, %v2184_v57  ;;  %v1987_v10 = vor.u32 %v1986_v20, %v5254_v27  ;;  %v747_v57 = vshrl.u32 %v4788_v16, 16  ;;  %v750_v54 = vshll.u32 %v4788_v16, 16 }
  0xbe   : > { %6641 = vst [vmem:[#allocation29_spill] sm:$0xff] %v5252_v52  ;;  %v5282_v30 = vpack.c.bf16 %v4296_v55, %v4296_v55  ;;  %v5284_v61 = vpack.c.bf16 %v4297_v28, %v4297_v28  ;;  %v745_v20 = vsel %vm4963_vm6, %v5155_v17, %v744_v45  ;;  %v1992_v28 = vrot.slane %v1990_v29, 5  ;;  %v4298_v17 = vld [vmem:[%s4778_s6 + $0xd8] sm:$0xff] }
  0xbf   : > { %v1988_v55 = vrot.slane %v1987_v10, 4  ;;  %v749_v52 = vrot.slane %v747_v57, 4  ;;  %v939_v29 = vunpack.c.l.b16 %v745_v20 }
  0xc0   : > { %6646 = vst [vmem:[#allocation34_spill] sm:$0xff] %v5282_v30  ;;  %v2004_v46 = vshll.u32 %v5284_v61, 16 }
  0xc1   : > { %v502_v14 = vpop.f32.mrf.mxu2  ;;  %v522_v44 = vpop.f32.mrf.mxu3  ;;  %6647 = vst [vmem:[#allocation35_spill] sm:$0xff] %v5284_v61 }
  0xc2   : > { %v5261_v63 = vadd.f32 %v5126_v3, %v502_v14  ;;  %v5264_v41 = vadd.f32 %v5126_v3, %v522_v44  ;;  %v485_v2 = vpop.f32.mrf.mxu1  ;;  %v760_v14 = vshrl.u32 %v4792_v19, 16  ;;  %v5294_v44 = vsel %vm4970_vm7, %v1201_v35, %v1202_v43 }
  0xc3   : > { %v5270_v9 = vadd.f32 %v5126_v3, %v485_v2  ;;  %6648 = vst [vmem:[#allocation36_spill] sm:$0xff] %v5294_v44  ;;  %v1978_v2 = vrot.slane %v1977_v8, 4  ;;  %v1995_v35 = vshrl.u32 %v5282_v30, 16  ;;  %v1998_v43 = vshll.u32 %v5282_v30, 16 }
  0xc4   : > { %6644 = vst [vmem:[#allocation32_spill] sm:$0xff] %v5261_v63  ;;  %v5328_v50 = vrot.slane %v2004_v46, 5 }
  0xc5   : > { %6645 = vst [vmem:[#allocation33_spill] sm:$0xff] %v5264_v41  ;;  %v5278_v4 = vpop.f32.mrf.mxu0  ;;  %4239 = vmatmul.msk.bf16.gmra.mxu1 %vm393_vm1, %v5139_v6  ;;  %v1206_v6 = vsel %vm4970_vm7, %v5258_v18, %v1205_v60  ;;  %v752_v41 = vrot.slane %v750_v54, 5  ;;  %v2008_v60 = vshrl.u32 %v5284_v61, 16  ;;  %v1993_v18 = vsel %vm4963_vm6, %v1988_v55, %v1992_v28 }
  0xc6   : > { %4264 = vmatmul.msk.bf16.gmra.mxu2 %vm393_vm1, %v5256_v51  ;;  %4323 = vmatmul.msk.bf16.gmra.mxu3 %vm393_vm1, %v1636_v7  ;;  %v5300_v7 = vrot.slane %v756_v24, 5  ;;  %v762_v51 = vrot.slane %v760_v14, 4  ;;  %v1276_v24 = vunpack.c.l.b16 %v1206_v6  ;;  %v1983_v14 = vsel %vm4963_vm6, %v1978_v2, %v5254_v27 }
  0xc7   : > { %v1997_v57 = vrot.slane %v1995_v35, 4  ;;  %v2010_v6 = vrot.slane %v2008_v60, 4  ;;  %v1613_v27 = vunpack.c.l.b16 %v5226_v39  ;;  %v963_v2 = vpack.c.b16 %v939_v29, %v5193_v59 }
  0xc8   : > { %4340 = vmatmul.msk.bf16.gmra.mxu0 %vm393_vm1, %v2210_v40  ;;  %v763_v13 = vor.u32 %v762_v51, %v5300_v7  ;;  %v2187_v55 = vunpack.c.l.b16 %v1993_v18  ;;  %v1209_v35 = vrot.slane %v4792_v19, 5 }
  0xc9   : > { %v505_v56 = vpop.f32.mrf.mxu2  ;;  %v525_v45 = vpop.f32.mrf.mxu3  ;;  %v2011_v21 = vor.u32 %v2010_v6, %v5328_v50 }
  0xca   : > { %v5308_v8 = vadd.f32 %v5126_v3, %v505_v56  ;;  %v5311_v40 = vadd.f32 %v5126_v3, %v525_v45  ;;  %v487_v10 = vpop.f32.mrf.mxu1  ;;  %v753_v56 = vor.u32 %v752_v41, %v749_v52  ;;  %v766_v45 = vshll.u32 %v4831_v48, 16 }
  0xcb   : > { %v5315_v54 = vadd.f32 %v5126_v3, %v487_v10  ;;  %v2000_v10 = vrot.slane %v1998_v43, 5  ;;  %v6651_v52 = vunpack.c.l.b16 %v5294_v44  ;;  %v2186_v41 = vunpack.c.l.b16 %v1983_v14 }
  0xcc   : > { %6649 = vst [vmem:[#allocation37_spill] sm:$0xff] %v5308_v8  ;;  %v754_v28 = vrot.slane %v753_v56, 4  ;;  %v764_v8 = vrot.slane %v763_v13, 4  ;;  %v4253_v14 = vrot.slane %v4788_v16, 9  ;;  %v770_v13 = vshrl.u32 %v4831_v48, 16 }
  0xcd   : > { %6650 = vst [vmem:[#allocation38_spill] sm:$0xff] %v5311_v40  ;;  %v5324_v40 = vpack.c.bf16 %v4298_v17, %v4298_v17  ;;  %v5326_v20 = vpop.f32.mrf.mxu0  ;;  %v1300_v51 = vpack.c.b16 %v1276_v24, %v6651_v52  ;;  %v5335_v17 = vrot.slane %v766_v45, 5  ;;  %v2001_v60 = vor.u32 %v2000_v10, %v1997_v57 }
  0xce   : > { %v1637_v24 = vpack.c.b16 %v1613_v27, %v1612_v26  ;;  %v2211_v57 = vpack.c.b16 %v2187_v55, %v2186_v41  ;;  %v759_v56 = vsel %vm4963_vm6, %v754_v28, %v5300_v7  ;;  %v1211_v45 = vrot.slane %v1209_v35, 4  ;;  %v4299_v41 = vld [vmem:[%s4778_s6 + $0xe0] sm:$0xff] }
  0xcf   : > { %v2014_v39 = vshll.u32 %v5324_v40, 16  ;;  %v1212_v10 = vrot.slane %v4831_v48, 5  ;;  %v769_v16 = vsel %vm4963_vm6, %v764_v8, %v5335_v17  ;;  %v2002_v26 = vrot.slane %v2001_v60, 4  ;;  %v256_v7 = vld [vmem:[%s4778_s6 + $0xc0] sm:$0x3] }
  0xd0   : > { %v2012_v27 = vrot.slane %v2011_v21, 4  ;;  %v1210_v48 = vsel %vm4970_vm7, %v4253_v14, %v1209_v35  ;;  %v776_v55 = vshll.u32 %v4833_v49, 16  ;;  %v772_v28 = vrot.slane %v770_v13, 4 }
  0xd1   : > { %v507_v43 = vpop.f32.mrf.mxu2  ;;  %v527_v46 = vpop.f32.mrf.mxu3  ;;  %v5361_v52 = vrot.slane %v2014_v39, 5  ;;  %v940_v8 = vunpack.c.l.b16 %v759_v56  ;;  %v941_v21 = vunpack.c.l.b16 %v769_v16  ;;  %v1213_v39 = vsel %vm4970_vm7, %v1211_v45, %v1212_v10 }
  0xd2   : > { %v5341_v59 = vadd.f32 %v5126_v3, %v507_v43  ;;  %v5344_v29 = vadd.f32 %v5126_v3, %v527_v46  ;;  %v490_v18 = vpop.f32.mrf.mxu1  ;;  %v5374_v43 = vpack.c.bf16 %v4299_v41, %v4299_v41  ;;  %v1277_v60 = vunpack.c.l.b16 %v1210_v48  ;;  %v4300_v48 = vld [vmem:[%s4778_s6 + $0xe8] sm:$0x3] }
  0xd3   : > { %v5348_v19 = vadd.f32 %v5126_v3, %v490_v18  ;;  %v2007_v35 = vsel %vm4963_vm6, %v2002_v26, %v5328_v50  ;;  %v2017_v18 = vsel %vm4963_vm6, %v2012_v27, %v5361_v52  ;;  %v778_v56 = vrot.slane %v776_v55, 5 }
  0xd4   : > { %6652 = vst [vmem:[#allocation39_spill] sm:$0xff] %v5341_v59  ;;  %v1278_v41 = vunpack.c.l.b16 %v1213_v39  ;;  %v1614_v50 = vunpack.c.l.b16 %v5282_v30  ;;  %v773_v26 = vor.u32 %v772_v28, %v5335_v17  ;;  %v1615_v27 = vunpack.c.l.b16 %v5284_v61 }
  0xd5   : > { %6653 = vst [vmem:[#allocation40_spill] sm:$0xff] %v5344_v29  ;;  %v5355_v6 = vpop.f32.mrf.mxu0  ;;  %4240 = vmatmul.msk.bf16.gmra.mxu1 %vm393_vm1, %v963_v2  ;;  %v780_v2 = vshrl.u32 %v4833_v49, 16  ;;  %v2188_v55 = vunpack.c.l.b16 %v2007_v35  ;;  %v1215_v39 = vrot.slane %v4833_v49, 5  ;;  %v535_v30 = vadd.f32 %v5126_v3, %v5143_v33 }
  0xd6   : > { %4265 = vmatmul.msk.bf16.gmra.mxu2 %vm393_vm1, %v1300_v51  ;;  %4324 = vmatmul.msk.bf16.gmra.mxu3 %vm393_vm1, %v1637_v24  ;;  %6654 = vst [vmem:[#allocation41_spill] sm:$0xff] %v5374_v43  ;;  %v296_v24 = vpack.c.bf16 %v256_v7, %v256_v7  ;;  %v2018_v7 = vshrl.u32 %v5324_v40, 16  ;;  %v964_v28 = vpack.c.b16 %v941_v21, %v940_v8  ;;  %v774_v61 = vrot.slane %v773_v26, 4 }
  0xd7   : > { %v782_v45 = vrot.slane %v780_v2, 4  ;;  %v2189_v2 = vunpack.c.l.b16 %v2017_v18  ;;  %v1214_v29 = vrot.slane %v1212_v10, 4  ;;  %v5403_v44 = vpack.c.bf16 %v4300_v48, %v4300_v48  ;;  %v4302_v48 = vld [vmem:[%s4778_s6 + $0xf8] sm:$0xff] }
  0xd8   : > { %4341 = vmatmul.msk.bf16.gmra.mxu0 %vm393_vm1, %v2211_v57  ;;  %v2020_v59 = vrot.slane %v2018_v7, 4  ;;  %v1638_v58 = vpack.c.b16 %v1615_v27, %v1614_v50  ;;  %v1217_v47 = vrot.slane %v1215_v39, 4  ;;  %v779_v26 = vsel %vm4963_vm6, %v774_v61, %v778_v56 }
  0xd9   : > { %v510_v51 = vpop.f32.mrf.mxu2  ;;  %v530_v46 = vpop.f32.mrf.mxu3  ;;  %v783_v17 = vor.u32 %v782_v45, %v778_v56  ;;  %6657 = vst [vmem:[#allocation44_spill] sm:$0xff] %v5403_v44  ;;  %v2212_v49 = vpack.c.b16 %v2189_v2, %v2188_v55  ;;  %v4301_v45 = vld [vmem:[%s4778_s6 + $0xf0] sm:$0xff]  ;;  %v1216_v50 = vsel %vm4970_vm7, %v1214_v29, %v1215_v39  ;;  %v2034_v27 = vshll.u32 %v5403_v44, 16 }
  0xda   : > { %v5383_v14 = vadd.f32 %v5126_v3, %v510_v51  ;;  %v5386_v13 = vadd.f32 %v5126_v3, %v530_v46  ;;  %v492_v57 = vpop.f32.mrf.mxu1  ;;  %v2024_v51 = vshll.u32 %v5374_v43, 16  ;;  %v2028_v46 = vshrl.u32 %v5374_v43, 16 }
  0xdb   : > { %v5389_v16 = vadd.f32 %v5126_v3, %v492_v57  ;;  %v786_v57 = vshll.u32 %v296_v24, 16  ;;  %v784_v21 = vrot.slane %v783_v17, 4  ;;  %v2021_v7 = vor.u32 %v2020_v59, %v5361_v52 }
  0xdc   : > { %6655 = vst [vmem:[#allocation42_spill] sm:$0xff] %v5383_v14  ;;  %v1301_v14 = vpack.c.b16 %v1278_v41, %v1277_v60  ;;  %v5405_v63 = vrot.slane %v2024_v51, 5  ;;  %v2030_v36 = vrot.slane %v2028_v46, 4  ;;  %v1218_v60 = vrot.slane %v296_v24, 5 }
  0xdd   : > { %6656 = vst [vmem:[#allocation43_spill] sm:$0xff] %v5386_v13  ;;  %v5398_v13 = vpop.f32.mrf.mxu0  ;;  %v788_v42 = vrot.slane %v786_v57, 5  ;;  %v791_v46 = vshrl.u32 %v4870_v12, 16  ;;  %v794_v55 = vshll.u32 %v4870_v12, 16  ;;  %v536_v61 = vadd.f32 %v5126_v3, %v5188_v22 }
  0xde   : > { %v2031_v51 = vor.u32 %v2030_v36, %v5405_v63  ;;  %v5435_v59 = vpack.c.bf16 %v4302_v48, %v4302_v48  ;;  %v5437_v29 = vunpack.c.l.b16 %v779_v26  ;;  %v1219_v52 = vsel %vm4970_vm7, %v1217_v47, %v1218_v60 }
  0xdf   : > { %v789_v36 = vsel %vm4963_vm6, %v784_v21, %v788_v42  ;;  %v1279_v56 = vunpack.c.l.b16 %v1216_v50  ;;  %v2036_v2 = vrot.slane %v2034_v27, 5  ;;  %v2022_v22 = vrot.slane %v2021_v7, 4  ;;  %v4303_v21 = vld [vmem:[%s4778_s6 + $0x100] sm:$0xff] }
  0xe0   : > { %6660 = vst [vmem:[#allocation47_spill] sm:$0xff] %v5435_v59  ;;  %v2032_v57 = vrot.slane %v2031_v51, 4  ;;  %v796_v39 = vrot.slane %v794_v55, 5  ;;  %v800_v42 = vshll.u32 %v4872_v15, 16  ;;  %v1280_v50 = vunpack.c.l.b16 %v1219_v52 }
  0xe1   : > { %v512_v35 = vpop.f32.mrf.mxu2  ;;  %v532_v18 = vpop.f32.mrf.mxu3  ;;  %v1616_v27 = vunpack.c.l.b16 %v5324_v40  ;;  %v1617_v48 = vunpack.c.l.b16 %v5374_v43  ;;  %v2027_v51 = vsel %vm4963_vm6, %v2022_v22, %v5405_v63  ;;  %v1222_v44 = vrot.slane %v4872_v15, 5 }
  0xe2   : > { %v5408_v33 = vadd.f32 %v5126_v3, %v512_v35  ;;  %v5411_v10 = vadd.f32 %v5126_v3, %v532_v18  ;;  %v1032_v8 = vpop.f32.mrf.mxu1  ;;  %v804_v35 = vshrl.u32 %v4872_v15, 16  ;;  %v1302_v22 = vpack.c.b16 %v1280_v50, %v1279_v56 }
  0xe3   : > { %v1112_v41 = vadd.f32 %v1032_v8, %v535_v30  ;;  %v5427_v30 = vpack.c.bf16 %v4301_v45, %v4301_v45  ;;  %v2052_v45 = vshrl.u32 %v5435_v59, 16  ;;  %v814_v50 = vshrl.u32 %v4920_v0, 16 }
  0xe4   : > { %6658 = vst [vmem:[#allocation45_spill] sm:$0xff] %v5411_v10 }
  0xe5   : > { %v5424_v24 = vpop.f32.mrf.mxu0  ;;  %4241 = vmatmul.msk.bf16.gmra.mxu1 %vm393_vm1, %v964_v28  ;;  %6659 = vst [vmem:[#allocation46_spill] sm:$0xff] %v5427_v30  ;;  %v943_v28 = vunpack.c.l.b16 %v789_v36  ;;  %v2039_v18 = vshrl.u32 %v5427_v30, 16  ;;  %v2042_v60 = vshll.u32 %v5427_v30, 16  ;;  %v802_v36 = vrot.slane %v800_v42, 5 }
  0xe6   : > { %4266 = vmatmul.msk.bf16.gmra.mxu2 %vm393_vm1, %v1301_v14  ;;  %4325 = vmatmul.msk.bf16.gmra.mxu3 %vm393_vm1, %v1638_v58  ;;  %v793_v14 = vrot.slane %v791_v46, 4  ;;  %v810_v42 = vshll.u32 %v4920_v0, 16 }
  0xe7   : > { %v2041_v52 = vrot.slane %v2039_v18, 4  ;;  %v965_v63 = vpack.c.b16 %v943_v28, %v5437_v29  ;;  %v4254_v18 = vrot.slane %v4870_v12, 9 }
  0xe8   : > { %4342 = vmatmul.msk.bf16.gmra.mxu0 %vm393_vm1, %v2212_v49  ;;  %v2048_v49 = vshll.u32 %v5435_v59, 16  ;;  %v797_v46 = vor.u32 %v796_v39, %v793_v14 }
  0xe9   : > { %v1369_v58 = vpop.f32.mrf.mxu2  ;;  %v1706_v17 = vpop.f32.mrf.mxu3 }
  0xea   : > { %v1449_v8 = vadd.f32 %v1369_v58, %v1112_v41  ;;  %v1034_v47 = vpop.f32.mrf.mxu1  ;;  %v2037_v41 = vsel %vm4963_vm6, %v2032_v57, %v2036_v2  ;;  %v806_v58 = vrot.slane %v804_v35, 4  ;;  %v5459_v10 = vrot.slane %v2048_v49, 5 }
  0xeb   : > { %v1113_v26 = vadd.f32 %v1034_v47, %v536_v61  ;;  %v5457_v61 = vpack.c.bf16 %v4303_v21, %v4303_v21  ;;  %v2044_v47 = vrot.slane %v2042_v60, 5  ;;  %v1639_v2 = vpack.c.b16 %v1617_v48, %v1616_v27 }
  0xec   : > { %v1786_v7 = vadd.f32 %v1706_v17, %v1449_v8  ;;  %v2054_v17 = vrot.slane %v2052_v45, 4  ;;  %v537_v8 = vadd.f32 %v5126_v3, %v5215_v23  ;;  %v2190_v57 = vunpack.c.l.b16 %v2027_v51 }
  0xed   : > { %v2282_v55 = vpop.f32.mrf.mxu0  ;;  %v2191_v14 = vunpack.c.l.b16 %v2037_v41  ;;  %v798_v39 = vrot.slane %v797_v46, 4  ;;  %v807_v21 = vor.u32 %v806_v58, %v802_v36  ;;  %v1224_v60 = vrot.slane %v1222_v44, 4 }
  0xee   : > { %v1225_v49 = vrot.slane %v4920_v0, 5  ;;  %v2045_v43 = vor.u32 %v2044_v47, %v2041_v52  ;;  %v2055_v29 = vor.u32 %v2054_v17, %v5459_v10  ;;  %v2058_v56 = vshll.u32 %v5457_v61, 16  ;;  %v4304_v52 = vld [vmem:[%s4778_s6 + $0x108] sm:$0xff] }
  0xef   : > { %v2213_v48 = vpack.c.b16 %v2191_v14, %v2190_v57  ;;  %v812_v51 = vrot.slane %v810_v42, 5  ;;  %v803_v12 = vsel %vm4963_vm6, %v798_v39, %v802_v36  ;;  %v1223_v46 = vsel %vm4970_vm7, %v4254_v18, %v1222_v44  ;;  %v261_v36 = vld [vmem:[%s4778_s6 + $0xe8] sm:$0x3] }
  0xf0   : > { %v1226_v58 = vsel %vm4970_vm7, %v1224_v60, %v1225_v49  ;;  %v2046_v0 = vrot.slane %v2045_v43, 4  ;;  %v2056_v47 = vrot.slane %v2055_v29, 4  ;;  %v5482_v17 = vrot.slane %v2058_v56, 5 }
  0xf1   : > { %v1371_v15 = vpop.f32.mrf.mxu2  ;;  %v1708_v35 = vpop.f32.mrf.mxu3  ;;  %v820_v57 = vshll.u32 %v4922_v1, 16  ;;  %v824_v44 = vshrl.u32 %v4922_v1, 16  ;;  %v944_v43 = vunpack.c.l.b16 %v803_v12  ;;  %v1281_v42 = vunpack.c.l.b16 %v1223_v46 }
  0xf2   : > { %v1450_v45 = vadd.f32 %v1371_v15, %v1113_v26  ;;  %v1037_v23 = vpop.f32.mrf.mxu1  ;;  %v808_v26 = vrot.slane %v807_v21, 4  ;;  %v1282_v15 = vunpack.c.l.b16 %v1226_v58  ;;  %v2061_v18 = vsel %vm4963_vm6, %v2056_v47, %v5482_v17 }
  0xf3   : > { %v1114_v28 = vadd.f32 %v1037_v23, %v537_v8  ;;  %v5485_v8 = vadd.f32 %v5424_v24, %v1786_v7  ;;  %v301_v60 = vpack.c.bf16 %v261_v36, %v261_v36  ;;  %v822_v29 = vrot.slane %v820_v57, 5 }
  0xf4   : > { %v1787_v27 = vadd.f32 %v1708_v35, %v1450_v45  ;;  %v813_v7 = vsel %vm4963_vm6, %v808_v26, %v812_v51  ;;  %v1618_v35 = vunpack.c.l.b16 %v5427_v30  ;;  %v826_v56 = vrot.slane %v824_v44, 4 }
  0xf5   : > { %v5470_v41 = vpop.f32.mrf.mxu0  ;;  %4242 = vmatmul.msk.bf16.gmra.mxu1 %vm393_vm1, %v965_v63  ;;  %6661 = vst [vmem:[#allocation48_spill] sm:$0xff] %v5485_v8  ;;  %v816_v63 = vrot.slane %v814_v50, 4  ;;  %v945_v46 = vunpack.c.l.b16 %v813_v7  ;;  %v1228_v47 = vrot.slane %v4922_v1, 5 }
  0xf6   : > { %4267 = vmatmul.msk.bf16.gmra.mxu2 %vm393_vm1, %v1302_v22  ;;  %4326 = vmatmul.msk.bf16.gmra.mxu3 %vm393_vm1, %v1639_v2  ;;  %v5490_v14 = vadd.f32 %v2282_v55, %v1787_v27  ;;  %v538_v22 = vadd.f32 %v5126_v3, %v5249_v53  ;;  %v5495_v2 = vpack.c.bf16 %v4304_v52, %v4304_v52  ;;  %v4305_v27 = vld [vmem:[%s4778_s6 + $0x110] sm:$0x3]  ;;  %v2193_v52 = vunpack.c.l.b16 %v2061_v18 }
  0xf7   : > { %v2051_v53 = vsel %vm4963_vm6, %v2046_v0, %v5459_v10  ;;  %v817_v23 = vor.u32 %v816_v63, %v812_v51  ;;  %v1619_v10 = vunpack.c.l.b16 %v5435_v59  ;;  %v830_v0 = vshll.u32 %v301_v60, 16 }
  0xf8   : > { %6662 = vst [vmem:[#allocation49_spill] sm:$0xff] %v5490_v14  ;;  %4343 = vmatmul.msk.bf16.gmra.mxu0 %vm393_vm1, %v2213_v48  ;;  %v2062_v48 = vshrl.u32 %v5457_v61, 16  ;;  %v2072_v12 = vshrl.u32 %v5495_v2, 16  ;;  %v2192_v58 = vunpack.c.l.b16 %v2051_v53  ;;  %v539_v51 = vadd.f32 %v5126_v3, %v5278_v4 }
  0xf9   : > { %v1374_v39 = vpop.f32.mrf.mxu2  ;;  %v1711_v24 = vpop.f32.mrf.mxu3  ;;  %v827_v36 = vor.u32 %v826_v56, %v822_v29  ;;  %v1227_v63 = vrot.slane %v1225_v49, 4  ;;  %v5514_v57 = vpack.c.bf16 %v4305_v27, %v4305_v27  ;;  %v818_v44 = vrot.slane %v817_v23, 4  ;;  %v4306_v27 = vld [vmem:[%s4778_s6 + $0x118] sm:$0xff] }
  0xfa   : > { %v1451_v55 = vadd.f32 %v1374_v39, %v1114_v28  ;;  %v1039_v21 = vpop.f32.mrf.mxu1  ;;  %v2068_v28 = vshll.u32 %v5495_v2, 16  ;;  %v1303_v53 = vpack.c.b16 %v1282_v15, %v1281_v42  ;;  %v1640_v18 = vpack.c.b16 %v1619_v10, %v1618_v35 }
  0xfb   : > { %v1115_v45 = vadd.f32 %v1039_v21, %v538_v22  ;;  %v2064_v22 = vrot.slane %v2062_v48, 4  ;;  %v966_v21 = vpack.c.b16 %v945_v46, %v944_v43  ;;  %v2214_v1 = vpack.c.b16 %v2193_v52, %v2192_v58 }
  0xfc   : > { %v1788_v50 = vadd.f32 %v1711_v24, %v1451_v55  ;;  %v5516_v39 = vrot.slane %v2068_v28, 5  ;;  %v2074_v24 = vrot.slane %v2072_v12, 4  ;;  %v832_v4 = vrot.slane %v830_v0, 5  ;;  %v4307_v28 = vld [vmem:[%s4778_s6 + $0x120] sm:$0xff] }
  0xfd   : > { %v2287_v26 = vpop.f32.mrf.mxu0  ;;  %v1230_v56 = vrot.slane %v1228_v47, 4  ;;  %v1231_v49 = vrot.slane %v301_v60, 5  ;;  %v828_v8 = vrot.slane %v827_v36, 4  ;;  %v1229_v23 = vsel %vm4970_vm7, %v1227_v63, %v1228_v47  ;;  %v6666_v63 = vld [vmem:[#allocation6_spill] sm:$0xff] }
  0xfe   : > { %v2078_v48 = vshll.u32 %v5514_v57, 16  ;;  %v823_v43 = vsel %vm4963_vm6, %v818_v44, %v822_v29  ;;  %v2065_v42 = vor.u32 %v2064_v22, %v5482_v17  ;;  %v2075_v15 = vor.u32 %v2074_v24, %v5516_v39 }
  0xff   : > { %v540_v35 = vadd.f32 %v5126_v3, %v5326_v20  ;;  %v5534_v10 = vpack.c.bf16 %v4306_v27, %v4306_v27  ;;  %v5540_v17 = vpack.c.bf16 %v4307_v28, %v4307_v28  ;;  %v5543_v20 = vadd.f32 %v5470_v41, %v1788_v50 }
 0x100   : > { %v833_v29 = vsel %vm4963_vm6, %v828_v8, %v832_v4  ;;  %v946_v58 = vunpack.c.l.b16 %v823_v43  ;;  %v1283_v52 = vunpack.c.l.b16 %v1229_v23  ;;  %v2066_v47 = vrot.slane %v2065_v42, 4 }
 0x101   : > { %v1376_v7 = vpop.f32.mrf.mxu2  ;;  %v1713_v55 = vpop.f32.mrf.mxu3  ;;  %6665 = vst [vmem:[#allocation50_spill] sm:$0xff] %v5540_v17  ;;  %v2080_v36 = vrot.slane %v2078_v48, 5  ;;  %v844_v44 = vshll.u32 %v6666_v63, 16  ;;  %v848_v50 = vshrl.u32 %v6666_v63, 16  ;;  %v2083_v8 = vshrl.u32 %v5534_v10, 16 }
 0x102   : > { %v1452_v30 = vadd.f32 %v1376_v7, %v1115_v45  ;;  %v1042_v14 = vpop.f32.mrf.mxu1  ;;  %v1620_v27 = vunpack.c.l.b16 %v5457_v61  ;;  %v1621_v48 = vunpack.c.l.b16 %v5495_v2 }
 0x103   : > { %v1116_v59 = vadd.f32 %v1042_v14, %v539_v51  ;;  %v6663_v14 = vld [vmem:[#allocation5_spill] sm:$0xff]  ;;  %v2076_v51 = vrot.slane %v2075_v15, 4  ;;  %v846_v42 = vrot.slane %v844_v44, 5  ;;  %v850_v15 = vrot.slane %v848_v50, 4 }
 0x104   : > { %v1789_v12 = vadd.f32 %v1713_v55, %v1452_v30  ;;  %v835_v45 = vshrl.u32 %v6663_v14, 16  ;;  %v838_v46 = vshll.u32 %v6663_v14, 16  ;;  %6664 = vst [vmem:[#allocation5_spill] sm:$0xff] %v5534_v10  ;;  %v1232_v30 = vsel %vm4970_vm7, %v1230_v56, %v1231_v49 }
 0x105   : > { %v5529_v60 = vpop.f32.mrf.mxu0  ;;  %4243 = vmatmul.msk.bf16.gmra.mxu1 %vm393_vm1, %v966_v21  ;;  %v947_v56 = vunpack.c.l.b16 %v833_v29  ;;  %v1284_v49 = vunpack.c.l.b16 %v1232_v30  ;;  %v2081_v28 = vsel %vm4963_vm6, %v2076_v51, %v2080_v36  ;;  %v1641_v44 = vpack.c.b16 %v1621_v48, %v1620_v27 }
 0x106   : > { %4268 = vmatmul.msk.bf16.gmra.mxu2 %vm393_vm1, %v1303_v53  ;;  %4327 = vmatmul.msk.bf16.gmra.mxu3 %vm393_vm1, %v1640_v18  ;;  %v5547_v0 = vadd.f32 %v2287_v26, %v1789_v12  ;;  %v837_v7 = vrot.slane %v835_v45, 4  ;;  %v840_v41 = vrot.slane %v838_v46, 5  ;;  %v4308_v53 = vld [vmem:[%s4778_s6 + $0x128] sm:$0xff]  ;;  %v2086_v26 = vshll.u32 %v5534_v10, 16 }
 0x107   : > { %v2092_v18 = vshll.u32 %v5540_v17, 16  ;;  %v5564_v45 = vpack.c.bf16 %v4308_v53, %v4308_v53  ;;  %v851_v50 = vor.u32 %v850_v15, %v846_v42  ;;  %v4255_v27 = vrot.slane %v6663_v14, 9  ;;  %v4309_v14 = vld [vmem:[%s4778_s6 + $0x130] sm:$0xff] }
 0x108   : > { %4344 = vmatmul.msk.bf16.gmra.mxu0 %vm393_vm1, %v2214_v1  ;;  %v2096_v1 = vshrl.u32 %v5540_v17, 16  ;;  %v841_v43 = vor.u32 %v840_v41, %v837_v7  ;;  %v2088_v46 = vrot.slane %v2086_v26, 5 }
 0x109   : > { %v1379_v22 = vpop.f32.mrf.mxu2  ;;  %v1716_v24 = vpop.f32.mrf.mxu3  ;;  %v5566_v30 = vrot.slane %v2092_v18, 5 }
 0x10a   : > { %v1453_v55 = vadd.f32 %v1379_v22, %v1116_v59  ;;  %v1044_v21 = vpop.f32.mrf.mxu1  ;;  %v2071_v59 = vsel %vm4963_vm6, %v2066_v47, %v5516_v39  ;;  %v2098_v29 = vrot.slane %v2096_v1, 4  ;;  %v541_v22 = vadd.f32 %v5126_v3, %v5355_v6 }
 0x10b   : > { %v1117_v4 = vadd.f32 %v1044_v21, %v540_v35  ;;  %v2085_v35 = vrot.slane %v2083_v8, 4  ;;  %v2194_v39 = vunpack.c.l.b16 %v2071_v59  ;;  %v2195_v47 = vunpack.c.l.b16 %v2081_v28  ;;  %v6667_v21 = vld [vmem:[#allocation7_spill] sm:$0xff] }
 0x10c   : > { %v1790_v23 = vadd.f32 %v1716_v24, %v1453_v55  ;;  %v1304_v24 = vpack.c.b16 %v1284_v49, %v1283_v52  ;;  %v967_v55 = vpack.c.b16 %v947_v56, %v946_v58  ;;  %v854_v51 = vshll.u32 %v6667_v21, 16 }
 0x10d   : > { %v2292_v12 = vpop.f32.mrf.mxu0  ;;  %v842_v41 = vrot.slane %v841_v43, 4  ;;  %v1235_v8 = vrot.slane %v6666_v63, 5  ;;  %v2089_v18 = vor.u32 %v2088_v46, %v2085_v35  ;;  %v2099_v1 = vor.u32 %v2098_v29, %v5566_v30  ;;  %v266_v29 = vld [vmem:[%s4778_s6 + $0x110] sm:$0x3] }
 0x10e   : > { %v2102_v3 = vshll.u32 %v5564_v45, 16  ;;  %v858_v58 = vshrl.u32 %v6667_v21, 16  ;;  %v2215_v56 = vpack.c.b16 %v2195_v47, %v2194_v39  ;;  %v856_v49 = vrot.slane %v854_v51, 5 }
 0x10f   : > { %v847_v63 = vsel %vm4963_vm6, %v842_v41, %v846_v42  ;;  %v1237_v59 = vrot.slane %v1235_v8, 4  ;;  %v1238_v28 = vrot.slane %v6667_v21, 5  ;;  %v2090_v43 = vrot.slane %v2089_v18, 4 }
 0x110   : > { %v2100_v15 = vrot.slane %v2099_v1, 4  ;;  %v5584_v35 = vrot.slane %v2102_v3, 5  ;;  %v5588_v46 = vadd.f32 %v5529_v60, %v1790_v23  ;;  %v1236_v60 = vsel %vm4970_vm7, %v4255_v27, %v1235_v8 }
 0x111   : > { %v1381_v36 = vpop.f32.mrf.mxu2  ;;  %v1718_v7 = vpop.f32.mrf.mxu3 }
 0x112   : > { %v1454_v53 = vadd.f32 %v1381_v36, %v1117_v4  ;;  %v1047_v26 = vpop.f32.mrf.mxu1  ;;  %v852_v4 = vrot.slane %v851_v50, 4  ;;  %v2105_v8 = vsel %vm4963_vm6, %v2100_v15, %v5584_v35 }
 0x113   : > { %v1118_v6 = vadd.f32 %v1047_v26, %v541_v22  ;;  %v860_v22 = vrot.slane %v858_v58, 4 }
 0x114   : > { %v1791_v52 = vadd.f32 %v1718_v7, %v1454_v53  ;;  %v857_v36 = vsel %vm4963_vm6, %v852_v4, %v856_v49  ;;  %v948_v7 = vunpack.c.l.b16 %v847_v63  ;;  %v306_v53 = vpack.c.bf16 %v266_v29, %v266_v29  ;;  %v4310_v29 = vld [vmem:[%s4778_s6 + $0x138] sm:$0x3] }
 0x115   : > { %v5576_v48 = vpop.f32.mrf.mxu0  ;;  %4244 = vmatmul.msk.bf16.gmra.mxu1 %vm393_vm1, %v967_v55  ;;  %v6668_v55 = vld [vmem:[#allocation8_spill] sm:$0xff]  ;;  %v861_v18 = vor.u32 %v860_v22, %v856_v49  ;;  %v1285_v63 = vunpack.c.l.b16 %v1236_v60  ;;  %v1623_v49 = vunpack.c.l.b16 %v5540_v17 }
 0x116   : > { %4269 = vmatmul.msk.bf16.gmra.mxu2 %vm393_vm1, %v1304_v24  ;;  %4328 = vmatmul.msk.bf16.gmra.mxu3 %vm393_vm1, %v1641_v44  ;;  %v864_v42 = vshll.u32 %v6668_v55, 16  ;;  %v868_v39 = vshrl.u32 %v6668_v55, 16  ;;  %v5593_v47 = vadd.f32 %v2292_v12, %v1791_v52  ;;  %v4562_v24 = vld [vmem:[%s6561_s2] ss:$0 sm:$0xff]  ;;  %v1239_v12 = vsel %vm4970_vm7, %v1237_v59, %v1238_v28 }
 0x117   : > { %v542_v21 = vadd.f32 %v4562_v24, %v5398_v13  ;;  %v5606_v44 = vpack.c.bf16 %v4309_v14, %v4309_v14  ;;  %v2095_v13 = vsel %vm4963_vm6, %v2090_v43, %v5566_v30  ;;  %v949_v52 = vunpack.c.l.b16 %v857_v36 }
 0x118   : > { %6669 = vst [vmem:[#allocation6_spill] sm:$0xff] %v5593_v47  ;;  %4345 = vmatmul.msk.bf16.gmra.mxu0 %vm393_vm1, %v2215_v56  ;;  %v866_v1 = vrot.slane %v864_v42, 5  ;;  %v870_v3 = vrot.slane %v868_v39, 4  ;;  %v1241_v56 = vrot.slane %v6668_v55, 5  ;;  %v1286_v4 = vunpack.c.l.b16 %v1239_v12  ;;  %v4311_v47 = vld [vmem:[%s4778_s6 + $0x140] sm:$0xff] }
 0x119   : > { %v1384_v23 = vpop.f32.mrf.mxu2  ;;  %v1721_v51 = vpop.f32.mrf.mxu3  ;;  %6670 = vst [vmem:[#allocation7_spill] sm:$0xff] %v5606_v44  ;;  %v2112_v30 = vshll.u32 %v5606_v44, 16  ;;  %v2116_v59 = vshrl.u32 %v5606_v44, 16  ;;  %v1622_v43 = vunpack.c.l.b16 %v5534_v10  ;;  %v2196_v15 = vunpack.c.l.b16 %v2095_v13 }
 0x11a   : > { %v1455_v41 = vadd.f32 %v1384_v23, %v1118_v6  ;;  %v1049_v50 = vpop.f32.mrf.mxu1  ;;  %v2106_v6 = vshrl.u32 %v5564_v45, 16  ;;  %v2197_v14 = vunpack.c.l.b16 %v2105_v8  ;;  %v862_v22 = vrot.slane %v861_v18, 4 }
 0x11b   : > { %v1119_v26 = vadd.f32 %v1049_v50, %v542_v21  ;;  %v871_v42 = vor.u32 %v870_v3, %v866_v1  ;;  %v874_v39 = vshll.u32 %v306_v53, 16  ;;  %v1240_v55 = vrot.slane %v1238_v28, 4 }
 0x11c   : > { %v1792_v58 = vadd.f32 %v1721_v51, %v1455_v41  ;;  %v1243_v24 = vrot.slane %v1241_v56, 4  ;;  %v1244_v21 = vrot.slane %v306_v53, 5  ;;  %v2108_v23 = vrot.slane %v2106_v6, 4 }
 0x11d   : > { %v2297_v27 = vpop.f32.mrf.mxu0  ;;  %v968_v36 = vpack.c.b16 %v949_v52, %v948_v7  ;;  %v5621_v12 = vpack.c.bf16 %v4310_v29, %v4310_v29  ;;  %v5623_v41 = vrot.slane %v2112_v30, 5  ;;  %v2118_v50 = vrot.slane %v2116_v59, 4  ;;  %v6672_v59 = vld [vmem:[#allocation9_spill] sm:$0xff] }
 0x11e   : > { %v1305_v10 = vpack.c.b16 %v1286_v4, %v1285_v63  ;;  %v1642_v18 = vpack.c.b16 %v1623_v49, %v1622_v43  ;;  %v2216_v3 = vpack.c.b16 %v2197_v14, %v2196_v15  ;;  %v867_v53 = vsel %vm4963_vm6, %v862_v22, %v866_v1  ;;  %v4312_v63 = vld [vmem:[%s4778_s6 + $0x148] sm:$0xff] }
 0x11f   : > { %6671 = vst [vmem:[#allocation8_spill] sm:$0xff] %v5621_v12  ;;  %v872_v6 = vrot.slane %v871_v42, 4  ;;  %v876_v17 = vrot.slane %v874_v39, 5  ;;  %v1242_v52 = vsel %vm4970_vm7, %v1240_v55, %v1241_v56  ;;  %v1245_v30 = vsel %vm4970_vm7, %v1243_v24, %v1244_v21  ;;  %v6673_v56 = vld [vmem:[#allocation10_spill] sm:$0xff] }
 0x120   : > { %v2122_v1 = vshll.u32 %v5621_v12, 16  ;;  %v879_v43 = vshrl.u32 %v6672_v59, 16  ;;  %v882_v49 = vshll.u32 %v6672_v59, 16  ;;  %v888_v15 = vshll.u32 %v6673_v56, 16 }
 0x121   : > { %v1386_v60 = vpop.f32.mrf.mxu2  ;;  %v1723_v51 = vpop.f32.mrf.mxu3  ;;  %v5646_v14 = vpack.c.bf16 %v4311_v47, %v4311_v47  ;;  %v5649_v29 = vadd.f32 %v5576_v48, %v1792_v58  ;;  %v5651_v22 = vunpack.c.l.b16 %v867_v53  ;;  %v5653_v42 = vpack.c.bf16 %v4312_v63, %v4312_v63 }
 0x122   : > { %v1456_v13 = vadd.f32 %v1386_v60, %v1119_v26  ;;  %v1052_v8 = vpop.f32.mrf.mxu1  ;;  %v2109_v26 = vor.u32 %v2108_v23, %v5584_v35  ;;  %v892_v35 = vshrl.u32 %v6673_v56, 16  ;;  %v1287_v55 = vunpack.c.l.b16 %v1242_v52 }
 0x123   : > { %v1120_v28 = vadd.f32 %v1052_v8, %v5136_v11  ;;  %v2119_v11 = vor.u32 %v2118_v50, %v5623_v41  ;;  %6674 = vst [vmem:[#allocation9_spill] sm:$0xff] %v5646_v14  ;;  %v1288_v24 = vunpack.c.l.b16 %v1245_v30  ;;  %v2124_v48 = vrot.slane %v2122_v1, 5  ;;  %v6676_v1 = vld [vmem:[#allocation11_spill] sm:$0xff] }
 0x124   : > { %v1793_v7 = vadd.f32 %v1723_v51, %v1456_v13  ;;  %6675 = vst [vmem:[#allocation10_spill] sm:$0xff] %v5653_v42  ;;  %v2110_v21 = vrot.slane %v2109_v26, 4  ;;  %v881_v58 = vrot.slane %v879_v43, 4  ;;  %v884_v51 = vrot.slane %v882_v49, 5 }
 0x125   : > { %v5635_v4 = vpop.f32.mrf.mxu0  ;;  %4245 = vmatmul.msk.bf16.gmra.mxu1 %vm393_vm1, %v968_v36  ;;  %v2120_v60 = vrot.slane %v2119_v11, 4  ;;  %v5660_v13 = vrot.slane %v888_v15, 5  ;;  %v2127_v8 = vshrl.u32 %v5646_v14, 16  ;;  %v2136_v53 = vshll.u32 %v5653_v42, 16 }
 0x126   : > { %4270 = vmatmul.msk.bf16.gmra.mxu2 %vm393_vm1, %v1305_v10  ;;  %4329 = vmatmul.msk.bf16.gmra.mxu3 %vm393_vm1, %v1642_v18  ;;  %v5655_v39 = vadd.f32 %v2297_v27, %v1793_v7  ;;  %v877_v10 = vsel %vm4963_vm6, %v872_v6, %v876_v17  ;;  %v894_v27 = vrot.slane %v892_v35, 4  ;;  %v4313_v17 = vld [vmem:[%s4778_s6 + $0x150] sm:$0xff]  ;;  %v2140_v6 = vshrl.u32 %v5653_v42, 16 }
 0x127   : > { %v951_v52 = vunpack.c.l.b16 %v877_v10  ;;  %v1624_v30 = vunpack.c.l.b16 %v5564_v45  ;;  %v2115_v63 = vsel %vm4963_vm6, %v2110_v21, %v5623_v41  ;;  %v885_v11 = vor.u32 %v884_v51, %v881_v58 }
 0x128   : > { %4346 = vmatmul.msk.bf16.gmra.mxu0 %vm393_vm1, %v2216_v3  ;;  %v2130_v3 = vshll.u32 %v5646_v14, 16  ;;  %v898_v43 = vshll.u32 %v6676_v1, 16  ;;  %v895_v49 = vor.u32 %v894_v27, %v5660_v13  ;;  %v1248_v15 = vrot.slane %v6673_v56, 5 }
 0x129   : > { %v1389_v47 = vpop.f32.mrf.mxu2  ;;  %v1726_v23 = vpop.f32.mrf.mxu3  ;;  %v5678_v35 = vpack.c.bf16 %v4313_v17, %v4313_v17  ;;  %v2129_v10 = vrot.slane %v2127_v8, 4  ;;  %v1306_v41 = vpack.c.b16 %v1288_v24, %v1287_v55  ;;  %v2198_v21 = vunpack.c.l.b16 %v2115_v63 }
 0x12a   : > { %v1457_v36 = vadd.f32 %v1389_v47, %v1120_v28  ;;  %v1054_v50 = vpop.f32.mrf.mxu1  ;;  %v1625_v28 = vunpack.c.l.b16 %v5606_v44  ;;  %v2132_v47 = vrot.slane %v2130_v3, 5  ;;  %v886_v51 = vrot.slane %v885_v11, 4 }
 0x12b   : > { %v1121_v18 = vadd.f32 %v1054_v50, %v5181_v32  ;;  %v2125_v32 = vsel %vm4963_vm6, %v2120_v60, %v2124_v48  ;;  %v969_v50 = vpack.c.b16 %v951_v52, %v5651_v22  ;;  %v5683_v44 = vrot.slane %v898_v43, 5 }
 0x12c   : > { %v1794_v7 = vadd.f32 %v1726_v23, %v1457_v36  ;;  %v5680_v23 = vrot.slane %v2136_v53, 5  ;;  %v2142_v36 = vrot.slane %v2140_v6, 4  ;;  %v2199_v12 = vunpack.c.l.b16 %v2125_v32 }
 0x12d   : > { %v2302_v26 = vpop.f32.mrf.mxu0  ;;  %v1643_v58 = vpack.c.b16 %v1625_v28, %v1624_v30  ;;  %v4256_v56 = vrot.slane %v6672_v59, 9  ;;  %v896_v17 = vrot.slane %v895_v49, 4  ;;  %v1250_v3 = vrot.slane %v1248_v15, 4 }
 0x12e   : > { %v6606_v53 = vrot.slane %v6676_v1, 5  ;;  %v2133_v55 = vor.u32 %v2132_v47, %v2129_v10  ;;  %v2143_v24 = vor.u32 %v2142_v36, %v5680_v23  ;;  %v2146_v6 = vshll.u32 %v5678_v35, 16 }
 0x12f   : > { %v2217_v30 = vpack.c.b16 %v2199_v12, %v2198_v21  ;;  %v891_v59 = vsel %vm4963_vm6, %v886_v51, %v5660_v13  ;;  %v1249_v63 = vsel %vm4970_vm7, %v4256_v56, %v1248_v15  ;;  %v902_v12 = vshrl.u32 %v6676_v1, 16  ;;  %v271_v56 = vld [vmem:[%s4778_s6 + $0x138] sm:$0x3] }
 0x130   : > { %v5704_v32 = vadd.f32 %v5635_v4, %v1794_v7  ;;  %v1252_v13 = vsel %vm4970_vm7, %v1250_v3, %v6606_v53  ;;  %v2134_v11 = vrot.slane %v2133_v55, 4  ;;  %v2144_v43 = vrot.slane %v2143_v24, 4 }
 0x131   : > { %v1391_v60 = vpop.f32.mrf.mxu2  ;;  %v1728_v48 = vpop.f32.mrf.mxu3  ;;  %v5710_v49 = vrot.slane %v2146_v6, 5  ;;  %v952_v4 = vunpack.c.l.b16 %v891_v59  ;;  %v1290_v51 = vunpack.c.l.b16 %v1252_v13 }
 0x132   : > { %v1458_v27 = vadd.f32 %v1391_v60, %v1121_v18  ;;  %v1057_v8 = vpop.f32.mrf.mxu1  ;;  %v4314_v18 = vld [vmem:[%s4778_s6 + $0x158] sm:$0xff] }
 0x133   : > { %v1122_v22 = vadd.f32 %v1057_v8, %v5209_v62  ;;  %v901_v62 = vsel %vm4963_vm6, %v896_v17, %v5683_v44  ;;  %v5713_v10 = vpack.c.bf16 %v4314_v18, %v4314_v18  ;;  %v2139_v17 = vsel %vm4963_vm6, %v2134_v11, %v5680_v23 }
 0x134   : > { %v1795_v52 = vadd.f32 %v1728_v48, %v1458_v27  ;;  %v953_v7 = vunpack.c.l.b16 %v901_v62  ;;  %v904_v27 = vrot.slane %v902_v12, 4  ;;  %v2149_v3 = vsel %vm4963_vm6, %v2144_v43, %v5710_v49  ;;  %v4315_v62 = vld [vmem:[%s4778_s6 + $0x160] sm:$0x3] }
 0x135   : > { %v2305_v28 = vpop.f32.mrf.mxu0  ;;  %4246 = vmatmul.msk.bf16.gmra.mxu1 %vm393_vm1, %v969_v50  ;;  %v6677_v50 = vld [vmem:[#allocation12_spill] sm:$0xff]  ;;  %v2156_v24 = vshll.u32 %v5713_v10, 16  ;;  %v2160_v6 = vshrl.u32 %v5713_v10, 16  ;;  %v2201_v23 = vunpack.c.l.b16 %v2149_v3  ;;  %v5737_v43 = vpack.c.bf16 %v4315_v62, %v4315_v62 }
 0x136   : > { %4271 = vmatmul.msk.bf16.gmra.mxu2 %vm393_vm1, %v1306_v41  ;;  %4330 = vmatmul.msk.bf16.gmra.mxu3 %vm393_vm1, %v1643_v58  ;;  %v5715_v15 = vadd.f32 %v2302_v26, %v1795_v52  ;;  %v908_v41 = vshll.u32 %v6677_v50, 16  ;;  %v912_v21 = vshrl.u32 %v6677_v50, 16  ;;  %v1289_v58 = vunpack.c.l.b16 %v1249_v63 }
 0x137   : > { %v1626_v26 = vunpack.c.l.b16 %v5646_v14  ;;  %v2200_v63 = vunpack.c.l.b16 %v2139_v17  ;;  %v905_v12 = vor.u32 %v904_v27, %v5683_v44  ;;  %v1254_v11 = vrot.slane %v6677_v50, 5  ;;  %v4377_v50 = vld [vmem:[%s4778_s6 + $0x50] sm:$0xff]  ;;  %v4378_v14 = vld [vmem:[%s4778_s6 + $0x58] sm:$0xff] }
 0x138   : > { %4347 = vmatmul.msk.bf16.gmra.mxu0 %vm393_vm1, %v2217_v30  ;;  %v311_v30 = vpack.c.bf16 %v271_v56, %v271_v56  ;;  %v910_v59 = vrot.slane %v908_v41, 5  ;;  %v914_v18 = vrot.slane %v912_v21, 4  ;;  %v970_v21 = vpack.c.b16 %v953_v7, %v952_v4 }
 0x139   : > { %v1394_v47 = vpop.f32.mrf.mxu2  ;;  %v1731_v36 = vpop.f32.mrf.mxu3  ;;  %v1307_v56 = vpack.c.b16 %v1290_v51, %v1289_v58  ;;  %v2218_v27 = vpack.c.b16 %v2201_v23, %v2200_v63  ;;  %v2166_v58 = vshll.u32 %v5737_v43, 16 }
 0x13a   : > { %v1459_v60 = vadd.f32 %v1394_v47, %v1122_v22  ;;  %v1059_v48 = vpop.f32.mrf.mxu1  ;;  %v2150_v22 = vshrl.u32 %v5678_v35, 16  ;;  %v915_v17 = vor.u32 %v914_v18, %v910_v59  ;;  %v918_v3 = vshll.u32 %v311_v30, 16 }
 0x13b   : > { %v1123_v8 = vadd.f32 %v1059_v48, %v5242_v34  ;;  %v1627_v34 = vunpack.c.l.b16 %v5653_v42  ;;  %v2168_v23 = vrot.slane %v2166_v58, 5 }
 0x13c   : > { %v1796_v55 = vadd.f32 %v1731_v36, %v1459_v60  ;;  %v2152_v47 = vrot.slane %v2150_v22, 4  ;;  %v5739_v36 = vrot.slane %v2156_v24, 5  ;;  %v2162_v60 = vrot.slane %v2160_v6, 4 }
 0x13d   : > { %v2307_v52 = vpop.f32.mrf.mxu0  ;;  %v6679_v22 = vrot.slane %v6676_v1, 5  ;;  %v1257_v6 = vrot.slane %v311_v30, 5 }
 0x13e   : > { %v5734_v13 = vadd.f32 %v2305_v28, %v1796_v55  ;;  %v1644_v28 = vpack.c.b16 %v1627_v34, %v1626_v26  ;;  %v906_v55 = vrot.slane %v905_v12, 4  ;;  %v2153_v4 = vor.u32 %v2152_v47, %v5710_v49 }
 0x13f   : > { %v1253_v24 = vrot.slane %v6679_v22, 4  ;;  %v2163_v7 = vor.u32 %v2162_v60, %v5739_v36  ;;  %v920_v26 = vrot.slane %v918_v3, 5  ;;  %v5750_v34 = vpack.c.bf16 %v4377_v50, %v4377_v50 }
 0x140   : > { %6678 = vst [vmem:[#allocation11_spill] sm:$0xff] %v5734_v13  ;;  %v1256_v13 = vrot.slane %v1254_v11, 4  ;;  %v2154_v18 = vrot.slane %v2153_v4, 4  ;;  %v1628_v50 = vunpack.c.l.b16 %v5678_v35 }
 0x141   : > { %v1396_v48 = vpop.f32.mrf.mxu2  ;;  %v1733_v41 = vpop.f32.mrf.mxu3  ;;  %v1255_v49 = vsel %vm4970_vm7, %v1253_v24, %v1254_v11  ;;  %v2164_v63 = vrot.slane %v2163_v7, 4 }
 0x142   : > { %v1460_v53 = vadd.f32 %v1396_v48, %v1123_v8  ;;  %v1062_v44 = vpop.f32.mrf.mxu1  ;;  %v916_v8 = vrot.slane %v915_v17, 4  ;;  %v1258_v30 = vsel %vm4970_vm7, %v1256_v13, %v1257_v6  ;;  %v4379_v17 = vld [vmem:[%s4778_s6 + $0x60] sm:$0xff] }
 0x143   : > { %v1124_v62 = vadd.f32 %v1062_v44, %v5270_v9  ;;  %v5754_v9 = vpack.c.bf16 %v4378_v14, %v4378_v14  ;;  %v5780_v24 = vpack.c.bf16 %v4379_v17, %v4379_v17 }
 0x144   : > { %v1797_v42 = vadd.f32 %v1733_v41, %v1460_v53  ;;  %v911_v53 = vsel %vm4963_vm6, %v906_v55, %v910_v59  ;;  %v3067_v59 = vshll.u32 %v5750_v34, 16 }
 0x145   : > { %v2310_v51 = vpop.f32.mrf.mxu0  ;;  %4247 = vmatmul.msk.bf16.gmra.mxu1 %vm393_vm1, %v970_v21  ;;  %v3073_v60 = vshll.u32 %v5754_v9, 16  ;;  %v3077_v48 = vshrl.u32 %v5754_v9, 16  ;;  %v954_v41 = vunpack.c.l.b16 %v911_v53  ;;  %v1291_v21 = vunpack.c.l.b16 %v1255_v49 }
 0x146   : > { %4272 = vmatmul.msk.bf16.gmra.mxu2 %vm393_vm1, %v1307_v56  ;;  %4331 = vmatmul.msk.bf16.gmra.mxu3 %vm393_vm1, %v1644_v28  ;;  %v5756_v1 = vadd.f32 %v2307_v52, %v1797_v42  ;;  %v921_v42 = vsel %vm4963_vm6, %v916_v8, %v920_v26  ;;  %v3064_v52 = vshrl.u32 %v5750_v34, 16  ;;  %v1292_v56 = vunpack.c.l.b16 %v1258_v30 }
 0x147   : > { %v955_v44 = vunpack.c.l.b16 %v921_v42  ;;  %v2159_v28 = vsel %vm4963_vm6, %v2154_v18, %v5739_v36  ;;  %v3075_v6 = vrot.slane %v3073_v60, 5  ;;  %v3079_v4 = vrot.slane %v3077_v48, 4 }
 0x148   : > { %4348 = vmatmul.msk.bf16.gmra.mxu0 %vm393_vm1, %v2218_v27  ;;  %v2169_v27 = vsel %vm4963_vm6, %v2164_v63, %v2168_v23  ;;  %v3066_v22 = vrot.slane %v3064_v52, 4  ;;  %v2202_v58 = vunpack.c.l.b16 %v2159_v28  ;;  %v1308_v49 = vpack.c.b16 %v1292_v56, %v1291_v21 }
 0x149   : > { %v1399_v12 = vpop.f32.mrf.mxu2  ;;  %v1736_v14 = vpop.f32.mrf.mxu3  ;;  %v2203_v8 = vunpack.c.l.b16 %v2169_v27  ;;  %v971_v53 = vpack.c.b16 %v955_v44, %v954_v41  ;;  %v3647_v60 = vrot.slane %v5754_v9, 5  ;;  %v3650_v28 = vrot.slane %v5780_v24, 5 }
 0x14a   : > { %v1461_v47 = vadd.f32 %v1399_v12, %v1124_v62  ;;  %v1064_v11 = vpop.f32.mrf.mxu1  ;;  %v1629_v62 = vunpack.c.l.b16 %v5713_v10  ;;  %v3080_v12 = vor.u32 %v3079_v4, %v3075_v6  ;;  %v3087_v27 = vshrl.u32 %v5780_v24, 16 }
 0x14b   : > { %v1125_v13 = vadd.f32 %v1064_v11, %v5315_v54  ;;  %v3069_v54 = vrot.slane %v3067_v59, 5  ;;  %v2219_v52 = vpack.c.b16 %v2203_v8, %v2202_v58  ;;  %v4380_v59 = vld [vmem:[%s4778_s6 + $0x68] sm:$0xff]  ;;  %v3649_v44 = vrot.slane %v3647_v60, 4  ;;  %v4381_v58 = vld [vmem:[%s4778_s6 + $0x70] sm:$0x3] }
 0x14c   : > { %v1798_v3 = vadd.f32 %v1736_v14, %v1461_v47  ;;  %v1645_v23 = vpack.c.b16 %v1629_v62, %v1628_v50  ;;  %v3083_v14 = vshll.u32 %v5780_v24, 16  ;;  %v3081_v48 = vrot.slane %v3080_v12, 4 }
 0x14d   : > { %v2312_v55 = vpop.f32.mrf.mxu0  ;;  %v3070_v30 = vor.u32 %v3069_v54, %v3066_v22  ;;  %v5791_v41 = vpack.c.bf16 %v4380_v59, %v4380_v59 }
 0x14e   : > { %v5782_v7 = vadd.f32 %v2310_v51, %v1798_v3 }
 0x14f   : > { %v3071_v11 = vrot.slane %v3070_v30, 4  ;;  %v3093_v22 = vshll.u32 %v5791_v41, 16  ;;  %v3097_v54 = vshrl.u32 %v5791_v41, 16 }
 0x151   : > { %v1401_v36 = vpop.f32.mrf.mxu2  ;;  %v1738_v26 = vpop.f32.mrf.mxu3  ;;  %v3076_v3 = vsel %vm4963_vm6, %v3071_v11, %v3075_v6  ;;  %v2843_v6 = vunpack.c.l.b16 %v5750_v34  ;;  %v3095_v12 = vrot.slane %v3093_v22, 5  ;;  %v4382_v11 = vld [vmem:[%s4778_s6 + $0x78] sm:$0xff] }
 0x152   : > { %v1462_v18 = vadd.f32 %v1401_v36, %v1125_v13  ;;  %v1067_v63 = vpop.f32.mrf.mxu1  ;;  %v3085_v13 = vrot.slane %v3083_v14, 5  ;;  %v2844_v36 = vunpack.c.l.b16 %v5754_v9 }
 0x153   : > { %v1126_v42 = vadd.f32 %v1067_v63, %v5348_v19  ;;  %v4451_v19 = vrot.slane %v5750_v34, 9  ;;  %v3089_v63 = vrot.slane %v3087_v27, 4  ;;  %v4383_v27 = vld [vmem:[%s4778_s6 + $0x80] sm:$0xff] }
 0x154   : > { %v1799_v47 = vadd.f32 %v1738_v26, %v1462_v18  ;;  %v3417_v26 = vunpack.c.l.b16 %v3076_v3  ;;  %v3651_v18 = vsel %vm4970_vm7, %v3649_v44, %v3650_v28  ;;  %v2875_v59 = vpack.c.b16 %v2844_v36, %v2843_v6 }
 0x155   : > { %v2315_v51 = vpop.f32.mrf.mxu0  ;;  %4248 = vmatmul.msk.bf16.gmra.mxu1 %vm393_vm1, %v971_v53  ;;  %v3648_v30 = vsel %vm4970_vm7, %v4451_v19, %v3647_v60  ;;  %v2411_v44 = vrot.slane %v4999_v5, 5  ;;  %v3652_v6 = vrot.slane %v3650_v28, 4 }
 0x156   : > { %4273 = vmatmul.msk.bf16.gmra.mxu2 %vm393_vm1, %v1308_v49  ;;  %4332 = vmatmul.msk.bf16.gmra.mxu3 %vm393_vm1, %v1645_v23  ;;  %v5793_v21 = vadd.f32 %v2312_v55, %v1799_v47  ;;  %v3086_v55 = vsel %vm4963_vm6, %v3081_v48, %v3085_v13  ;;  %v2773_v23 = vpack.c.bf16 %v4381_v58, %v4381_v58  ;;  %v3751_v34 = vunpack.c.l.b16 %v3648_v30  ;;  %v6680_v58 = vld [vmem:[#allocation14_spill] sm:$0xff] }
 0x157   : > { %v3418_v49 = vunpack.c.l.b16 %v3086_v55  ;;  %v3090_v47 = vor.u32 %v3089_v63, %v3085_v13  ;;  %v5820_v55 = vpack.c.bf16 %v4382_v11, %v4382_v11 }
 0x158   : > { %4349 = vmatmul.msk.bf16.gmra.mxu0 %vm393_vm1, %v2219_v52  ;;  %v3656_v36 = vrot.slane %v2773_v23, 5 }
 0x159   : > { %v1404_v56 = vpop.f32.mrf.mxu2  ;;  %v1741_v17 = vpop.f32.mrf.mxu3  ;;  %v3449_v60 = vpack.c.b16 %v3418_v49, %v3417_v26  ;;  %v3091_v13 = vrot.slane %v3090_v47, 4  ;;  %v3108_v26 = vshrl.u32 %v5820_v55, 16  ;;  %v3111_v49 = vshll.u32 %v5820_v55, 16  ;;  %v4384_v47 = vld [vmem:[%s4778_s6 + $0x88] sm:$0xff] }
 0x15a   : > { %v1463_v50 = vadd.f32 %v1404_v56, %v1126_v42  ;;  %v1069_v62 = vpop.f32.mrf.mxu1  ;;  %v3752_v42 = vunpack.c.l.b16 %v3651_v18 }
 0x15b   : > { %v1127_v4 = vadd.f32 %v1069_v62, %v5389_v16  ;;  %v3099_v16 = vrot.slane %v3097_v54, 4  ;;  %v3653_v62 = vrot.slane %v5791_v41, 5 }
 0x15c   : > { %v1800_v8 = vadd.f32 %v1741_v17, %v1463_v50  ;;  %v3103_v17 = vshll.u32 %v2773_v23, 16 }
 0x15d   : > { %v2317_v53 = vpop.f32.mrf.mxu0  ;;  %v3100_v19 = vor.u32 %v3099_v16, %v3095_v12 }
 0x15e   : > { %v5813_v14 = vadd.f32 %v2315_v51, %v1800_v8  ;;  %v3783_v51 = vpack.c.b16 %v3752_v42, %v3751_v34  ;;  %v2412_v8 = vsel %vm4970_vm7, %v6680_v58, %v2411_v44 }
 0x15f   : > { %v3101_v54 = vrot.slane %v3100_v19, 4  ;;  %v2845_v19 = vunpack.c.l.b16 %v5780_v24 }
 0x161   : > { %v1406_v9 = vpop.f32.mrf.mxu2  ;;  %v1743_v52 = vpop.f32.mrf.mxu3 }
 0x162   : > { %v1464_v48 = vadd.f32 %v1406_v9, %v1127_v4  ;;  %v1072_v56 = vpop.f32.mrf.mxu1  ;;  %v5826_v4 = vpack.c.bf16 %v4383_v27, %v4383_v27  ;;  %v6681_v9 = vld [vmem:[#allocation24_spill] sm:$0xff]  ;;  %v5850_v27 = vpack.c.bf16 %v4384_v47, %v4384_v47 }
 0x163   : > { %v1128_v3 = vadd.f32 %v1072_v56, %v5171_v25  ;;  %v3105_v25 = vrot.slane %v3103_v17, 5  ;;  %v3113_v56 = vrot.slane %v3111_v49, 5  ;;  %v2846_v17 = vunpack.c.l.b16 %v5791_v41 }
 0x164   : > { %v1801_v50 = vadd.f32 %v1743_v52, %v1464_v48  ;;  %v3117_v28 = vshll.u32 %v5826_v4, 16  ;;  %v3121_v42 = vshrl.u32 %v5826_v4, 16  ;;  %v2509_v52 = vunpack.c.l.b16 %v2412_v8 }
 0x165   : > { %v2320_v22 = vpop.f32.mrf.mxu0  ;;  %4359 = vmatmul.msk.bf16.vlgmr.msra.gmra.mxu1 %vm393_vm1, %v5057_v37  ;;  %v3655_v37 = vrot.slane %v3653_v62, 4  ;;  %v3106_v34 = vsel %vm4963_vm6, %v3101_v54, %v3105_v25  ;;  %v3110_v48 = vrot.slane %v3108_v26, 4  ;;  %v2876_v24 = vpack.c.b16 %v2846_v17, %v2845_v19 }
 0x166   : > { %4418 = vmatmul.msk.bf16.vlgmr.msra.gmra.mxu2 %vm393_vm1, %v2875_v59  ;;  %4435 = vmatmul.msk.bf16.vlgmr.msra.gmra.mxu3 %vm393_vm1, %v3449_v60  ;;  %v5828_v5 = vadd.f32 %v2317_v53, %v1801_v50  ;;  %v3096_v53 = vsel %vm4963_vm6, %v3091_v13, %v3095_v12  ;;  %v3654_v59 = vsel %vm4970_vm7, %v3652_v6, %v3653_v62  ;;  %v3420_v44 = vunpack.c.l.b16 %v3106_v34  ;;  %v6682_v6 = vld [vmem:[#allocation15_spill] sm:$0xff] }
 0x167   : > { %v3657_v12 = vsel %vm4970_vm7, %v3655_v37, %v3656_v36  ;;  %v3119_v50 = vrot.slane %v3117_v28, 5  ;;  %v3753_v13 = vunpack.c.l.b16 %v3654_v59  ;;  %v3114_v25 = vor.u32 %v3113_v56, %v3110_v48 }
 0x168   : > { %4460 = vmatmul.msk.bf16.vlgmr.msra.gmra.mxu0 %vm393_vm1, %v3783_v51  ;;  %v3123_v51 = vrot.slane %v3121_v42, 4  ;;  %v3754_v54 = vunpack.c.l.b16 %v3657_v12  ;;  %v6683_v37 = vunpack.c.l.b16 %v6682_v6  ;;  %v4452_v56 = vrot.slane %v5820_v55, 9 }
 0x169   : > { %v1409_v30 = vpop.f32.mrf.mxu2  ;;  %v1746_v18 = vpop.f32.mrf.mxu3  ;;  %v3115_v28 = vrot.slane %v3114_v25, 4  ;;  %v3663_v17 = vrot.slane %v5850_v27, 5  ;;  %v6685_v25 = vld [vmem:[#allocation32_spill] sm:$0xff]  ;;  %v2847_v6 = vunpack.c.l.b16 %v5820_v55 }
 0x16a   : > { %v1465_v63 = vadd.f32 %v1409_v30, %v1128_v3  ;;  %v1074_v16 = vpop.f32.mrf.mxu1  ;;  %v3419_v3 = vunpack.c.l.b16 %v3096_v53  ;;  %v2539_v36 = vpack.c.b16 %v2509_v52, %v6683_v37  ;;  %v3124_v30 = vor.u32 %v3123_v51, %v3119_v50  ;;  %v6684_v53 = vld [vmem:[#allocation27_spill] sm:$0xff] }
 0x16b   : > { %v1129_v23 = vadd.f32 %v1074_v16, %v6681_v9  ;;  %v3784_v16 = vpack.c.b16 %v3754_v54, %v3753_v13  ;;  %v3660_v9 = vrot.slane %v5826_v4, 5  ;;  %v2848_v37 = vunpack.c.l.b16 %v5826_v4 }
 0x16c   : > { %v1802_v11 = vadd.f32 %v1746_v18, %v1465_v63  ;;  %v3450_v49 = vpack.c.b16 %v3420_v44, %v3419_v3  ;;  %v3127_v18 = vshll.u32 %v5850_v27, 16  ;;  %v3131_v3 = vshrl.u32 %v5850_v27, 16 }
 0x16d   : > { %v2322_v60 = vpop.f32.mrf.mxu0  ;;  %v3662_v19 = vrot.slane %v3660_v9, 4 }
 0x16e   : > { %v5852_v62 = vadd.f32 %v2320_v22, %v1802_v11  ;;  %v4385_v22 = vld [vmem:[%s4778_s6 + $0x90] sm:$0xff]  ;;  %v3129_v52 = vrot.slane %v3127_v18, 5  ;;  %v3120_v11 = vsel %vm4963_vm6, %v3115_v28, %v3119_v50  ;;  %v2877_v28 = vpack.c.b16 %v2848_v37, %v2847_v6  ;;  %v6689_v6 = vld [vmem:[#allocation17_spill] sm:$0xff] }
 0x16f   : > { %v5863_v59 = vpack.c.bf16 %v4385_v22, %v4385_v22 }
 0x171   : > { %v1411_v58 = vpop.f32.mrf.mxu2  ;;  %v1748_v8 = vpop.f32.mrf.mxu3  ;;  %v3137_v13 = vshll.u32 %v5863_v59, 16  ;;  %v3141_v54 = vshrl.u32 %v5863_v59, 16 }
 0x172   : > { %v1466_v26 = vadd.f32 %v1411_v58, %v1129_v23  ;;  %v1077_v41 = vpop.f32.mrf.mxu1  ;;  %v3125_v23 = vrot.slane %v3124_v30, 4  ;;  %v4386_v58 = vld [vmem:[%s4778_s6 + $0x98] sm:$0x3]  ;;  %v3133_v30 = vrot.slane %v3131_v3, 4 }
 0x173   : > { %v1130_v63 = vadd.f32 %v1077_v41, %v6684_v53  ;;  %v3661_v41 = vsel %vm4970_vm7, %v4452_v56, %v3660_v9  ;;  %v2778_v18 = vpack.c.bf16 %v4386_v58, %v4386_v58  ;;  %v3139_v53 = vrot.slane %v3137_v13, 5  ;;  %v4388_v13 = vld [vmem:[%s4778_s6 + $0xa8] sm:$0xff] }
 0x174   : > { %v1803_v34 = vadd.f32 %v1748_v8, %v1466_v26  ;;  %v3755_v55 = vunpack.c.l.b16 %v3661_v41  ;;  %v6691_v41 = vld [vmem:[#allocation20_spill] sm:$0xff] }
 0x175   : > { %v2325_v42 = vpop.f32.mrf.mxu0  ;;  %4360 = vmatmul.msk.bf16.gmra.mxu1 %vm393_vm1, %v2539_v36  ;;  %v3421_v36 = vunpack.c.l.b16 %v3120_v11  ;;  %v4387_v11 = vld [vmem:[%s4778_s6 + $0xa0] sm:$0xff] }
 0x176   : > { %4419 = vmatmul.msk.bf16.gmra.mxu2 %vm393_vm1, %v2876_v24  ;;  %4436 = vmatmul.msk.bf16.gmra.mxu3 %vm393_vm1, %v3450_v49  ;;  %v5865_v47 = vadd.f32 %v2322_v60, %v1803_v34  ;;  %v3130_v60 = vsel %vm4963_vm6, %v3125_v23, %v3129_v52  ;;  %v3664_v49 = vsel %vm4970_vm7, %v3662_v19, %v3663_v17  ;;  %v6687_v19 = vld [vmem:[#allocation37_spill] sm:$0xff] }
 0x177   : > { %v3422_v26 = vunpack.c.l.b16 %v3130_v60  ;;  %v3756_v22 = vunpack.c.l.b16 %v3664_v49  ;;  %v3134_v23 = vor.u32 %v3133_v30, %v3129_v52  ;;  %v5892_v58 = vpack.c.bf16 %v4387_v11, %v4387_v11 }
 0x178   : > { %4461 = vmatmul.msk.bf16.gmra.mxu0 %vm393_vm1, %v3784_v16  ;;  %v3665_v30 = vrot.slane %v3663_v17, 4 }
 0x179   : > { %v1414_v12 = vpop.f32.mrf.mxu2  ;;  %v1751_v48 = vpop.f32.mrf.mxu3  ;;  %v3451_v9 = vpack.c.b16 %v3422_v26, %v3421_v36  ;;  %v3135_v52 = vrot.slane %v3134_v23, 4  ;;  %v5898_v36 = vpack.c.bf16 %v4388_v13, %v4388_v13 }
 0x17a   : > { %v1467_v44 = vadd.f32 %v1414_v12, %v1130_v63  ;;  %v1079_v51 = vpop.f32.mrf.mxu1  ;;  %v3143_v63 = vrot.slane %v3141_v54, 4 }
 0x17b   : > { %v1131_v50 = vadd.f32 %v1079_v51, %v6685_v25  ;;  %v6688_v51 = vld [vmem:[#allocation13_spill] sm:$0xff]  ;;  %v3666_v25 = vrot.slane %v5863_v59, 5  ;;  %v3161_v17 = vshll.u32 %v5898_v36, 16 }
 0x17c   : > { %v1804_v8 = vadd.f32 %v1751_v48, %v1467_v44  ;;  %v3144_v56 = vor.u32 %v3143_v63, %v3139_v53  ;;  %v3147_v44 = vshll.u32 %v2778_v18, 16  ;;  %v2424_v60 = vrot.slane %v6688_v51, 5 }
 0x17d   : > { %v2327_v24 = vpop.f32.mrf.mxu0  ;;  %v3668_v63 = vrot.slane %v3666_v25, 4 }
 0x17e   : > { %v5885_v16 = vadd.f32 %v2325_v42, %v1804_v8  ;;  %v3785_v42 = vpack.c.b16 %v3756_v22, %v3755_v55  ;;  %v3149_v37 = vrot.slane %v3147_v44, 5  ;;  %v2425_v49 = vsel %vm4970_vm7, %v6691_v41, %v2424_v60 }
 0x17f   : > { %v3669_v55 = vrot.slane %v2778_v18, 5  ;;  %v3152_v22 = vshrl.u32 %v5892_v58, 16  ;;  %v3667_v44 = vsel %vm4970_vm7, %v3665_v30, %v3666_v25 }
 0x180   : > { %6686 = vst [vmem:[#allocation12_spill] sm:$0xff] %v5885_v16 }
 0x181   : > { %v1416_v4 = vpop.f32.mrf.mxu2  ;;  %v1753_v34 = vpop.f32.mrf.mxu3 }
 0x182   : > { %v1468_v12 = vadd.f32 %v1416_v4, %v1131_v50  ;;  %v1082_v48 = vpop.f32.mrf.mxu1  ;;  %v3145_v50 = vrot.slane %v3144_v56, 4  ;;  %v3155_v4 = vshll.u32 %v5892_v58, 16  ;;  %v2513_v56 = vunpack.c.l.b16 %v2425_v49 }
 0x183   : > { %v1132_v3 = vadd.f32 %v1082_v48, %v6687_v19  ;;  %v3165_v48 = vshrl.u32 %v5898_v36, 16  ;;  %v4389_v19 = vld [vmem:[%s4778_s6 + $0xb0] sm:$0xff]  ;;  %v3757_v49 = vunpack.c.l.b16 %v3667_v44 }
 0x184   : > { %v1805_v54 = vadd.f32 %v1753_v34, %v1468_v12  ;;  %v3150_v12 = vsel %vm4963_vm6, %v3145_v50, %v3149_v37  ;;  %v3157_v60 = vrot.slane %v3155_v4, 5  ;;  %v5922_v50 = vpack.c.bf16 %v4389_v19, %v4389_v19 }
 0x185   : > { %v2330_v8 = vpop.f32.mrf.mxu0  ;;  %4361 = vmatmul.msk.bf16.gmra.mxu1 %vm393_vm1, %v6689_v6  ;;  %v3163_v37 = vrot.slane %v3161_v17, 5  ;;  %v3167_v41 = vrot.slane %v3165_v48, 4  ;;  %v6696_v17 = vld [vmem:[#allocation42_spill] sm:$0xff] }
 0x186   : > { %4420 = vmatmul.msk.bf16.gmra.mxu2 %vm393_vm1, %v2877_v28  ;;  %4437 = vmatmul.msk.bf16.gmra.mxu3 %vm393_vm1, %v3451_v9  ;;  %v5900_v26 = vadd.f32 %v2327_v24, %v1805_v54  ;;  %v3140_v24 = vsel %vm4963_vm6, %v3135_v52, %v3139_v53  ;;  %v6692_v9 = vld [vmem:[#allocation39_spill] sm:$0xff]  ;;  %v3670_v53 = vsel %vm4970_vm7, %v3668_v63, %v3669_v55  ;;  %v2849_v54 = vunpack.c.l.b16 %v5850_v27 }
 0x187   : > { %v3423_v6 = vunpack.c.l.b16 %v3140_v24  ;;  %v3424_v52 = vunpack.c.l.b16 %v3150_v12  ;;  %v3758_v30 = vunpack.c.l.b16 %v3670_v53  ;;  %v3171_v12 = vshll.u32 %v5922_v50, 16 }
 0x188   : > { %6690 = vst [vmem:[#allocation14_spill] sm:$0xff] %v5900_v26  ;;  %4462 = vmatmul.msk.bf16.gmra.mxu0 %vm393_vm1, %v3785_v42  ;;  %v2850_v42 = vunpack.c.l.b16 %v5863_v59  ;;  %v3673_v53 = vrot.slane %v5898_v36, 5  ;;  %v4395_v26 = vld [vmem:[%s4778_s6 + $0xe0] sm:$0xff] }
 0x189   : > { %v1419_v34 = vpop.f32.mrf.mxu2  ;;  %v1756_v28 = vpop.f32.mrf.mxu3  ;;  %v3452_v24 = vpack.c.b16 %v3424_v52, %v3423_v6  ;;  %v4453_v52 = vrot.slane %v5892_v58, 9 }
 0x18a   : > { %v1469_v23 = vadd.f32 %v1419_v34, %v1132_v3  ;;  %v1084_v11 = vpop.f32.mrf.mxu1  ;;  %v3154_v3 = vrot.slane %v3152_v22, 4  ;;  %v6694_v22 = vld [vmem:[#allocation21_spill] sm:$0xff]  ;;  %v2878_v27 = vpack.c.b16 %v2850_v42, %v2849_v54 }
 0x18b   : > { %v1133_v18 = vadd.f32 %v1084_v11, %v6692_v9  ;;  %v6695_v4 = vunpack.c.l.b16 %v6694_v22  ;;  %v3168_v11 = vor.u32 %v3167_v41, %v3163_v37  ;;  %v3786_v9 = vpack.c.b16 %v3758_v30, %v3757_v49 }
 0x18c   : > { %v1806_v51 = vadd.f32 %v1756_v28, %v1469_v23  ;;  %v3158_v34 = vor.u32 %v3157_v60, %v3154_v3  ;;  %v3675_v41 = vrot.slane %v3673_v53, 4  ;;  %v3676_v49 = vrot.slane %v5922_v50, 5 }
 0x18d   : > { %v2332_v13 = vpop.f32.mrf.mxu0  ;;  %v2541_v28 = vpack.c.b16 %v2513_v56, %v6695_v4  ;;  %v3173_v56 = vrot.slane %v3171_v12, 5  ;;  %v3175_v30 = vshrl.u32 %v5922_v50, 16  ;;  %v4391_v4 = vld [vmem:[%s4778_s6 + $0xc0] sm:$0x3]  ;;  %v3674_v12 = vsel %vm4970_vm7, %v4453_v52, %v3673_v53 }
 0x18e   : > { %v5924_v25 = vadd.f32 %v2330_v8, %v1806_v51  ;;  %v4390_v8 = vld [vmem:[%s4778_s6 + $0xb8] sm:$0xff]  ;;  %v3159_v44 = vrot.slane %v3158_v34, 4 }
 0x18f   : > { %v5935_v3 = vpack.c.bf16 %v4390_v8, %v4390_v8 }
 0x190   : > { %6693 = vst [vmem:[#allocation24_spill] sm:$0xff] %v5924_v25  ;;  %v3164_v54 = vsel %vm4963_vm6, %v3159_v44, %v3163_v37  ;;  %v3759_v44 = vunpack.c.l.b16 %v3674_v12  ;;  %v6700_v12 = vld [vmem:[#allocation30_spill] sm:$0xff] }
 0x191   : > { %v1421_v63 = vpop.f32.mrf.mxu2  ;;  %v1758_v55 = vpop.f32.mrf.mxu3  ;;  %v3185_v22 = vshrl.u32 %v5935_v3, 16 }
 0x192   : > { %v1470_v23 = vadd.f32 %v1421_v63, %v1133_v18  ;;  %v1087_v59 = vpop.f32.mrf.mxu1  ;;  %v3169_v18 = vrot.slane %v3168_v11, 4 }
 0x193   : > { %v1134_v48 = vadd.f32 %v1087_v59, %v6696_v17  ;;  %v3425_v59 = vunpack.c.l.b16 %v3164_v54  ;;  %v3677_v17 = vsel %vm4970_vm7, %v3675_v41, %v3676_v49  ;;  %v6699_v41 = vld [vmem:[#allocation22_spill] sm:$0xff] }
 0x194   : > { %v1807_v19 = vadd.f32 %v1758_v55, %v1470_v23  ;;  %v3181_v55 = vshll.u32 %v5935_v3, 16  ;;  %v2852_v23 = vunpack.c.l.b16 %v5898_v36 }
 0x195   : > { %v2335_v51 = vpop.f32.mrf.mxu0  ;;  %4362 = vmatmul.msk.bf16.gmra.mxu1 %vm393_vm1, %v2541_v28 }
 0x196   : > { %4421 = vmatmul.msk.bf16.gmra.mxu2 %vm393_vm1, %v2878_v27  ;;  %4438 = vmatmul.msk.bf16.gmra.mxu3 %vm393_vm1, %v3452_v24  ;;  %v5937_v60 = vadd.f32 %v2332_v13, %v1807_v19  ;;  %v3174_v13 = vsel %vm4963_vm6, %v3169_v18, %v3173_v56  ;;  %v2851_v27 = vunpack.c.l.b16 %v5892_v58  ;;  %v3183_v8 = vrot.slane %v3181_v55, 5 }
 0x197   : > { %v3426_v11 = vunpack.c.l.b16 %v3174_v13  ;;  %v3760_v58 = vunpack.c.l.b16 %v3677_v17  ;;  %v4392_v13 = vld [vmem:[%s4778_s6 + $0xc8] sm:$0xff]  ;;  %v6701_v17 = vld [vmem:[#allocation16_spill] sm:$0xff] }
 0x198   : > { %6697 = vst [vmem:[#allocation15_spill] sm:$0xff] %v5937_v60  ;;  %4463 = vmatmul.msk.bf16.gmra.mxu0 %vm393_vm1, %v3786_v9  ;;  %v2783_v9 = vpack.c.bf16 %v4391_v4, %v4391_v4  ;;  %v2879_v54 = vpack.c.b16 %v2852_v23, %v2851_v27  ;;  %v2437_v27 = vrot.slane %v6701_v17, 5  ;;  %v2853_v17 = vunpack.c.l.b16 %v5922_v50  ;;  %v6707_v50 = vld [vmem:[#allocation36_spill] sm:$0xff]  ;;  %v6711_v60 = vld [vmem:[#allocation23_spill] sm:$0xff] }
 0x199   : > { %v1424_v42 = vpop.f32.mrf.mxu2  ;;  %v1761_v6 = vpop.f32.mrf.mxu3  ;;  %v3453_v53 = vpack.c.b16 %v3426_v11, %v3425_v59  ;;  %v3787_v55 = vpack.c.b16 %v3760_v58, %v3759_v44  ;;  %v5968_v59 = vpack.c.bf16 %v4392_v13, %v4392_v13  ;;  %v2444_v25 = vrot.slane %v6711_v60, 5 }
 0x19a   : > { %v1471_v34 = vadd.f32 %v1424_v42, %v1134_v48  ;;  %v1089_v63 = vpop.f32.mrf.mxu1  ;;  %v3177_v48 = vrot.slane %v3175_v30, 4  ;;  %v3682_v58 = vrot.slane %v2783_v9, 5 }
 0x19b   : > { %v1135_v37 = vadd.f32 %v1089_v63, %v5408_v33  ;;  %v3187_v33 = vrot.slane %v3185_v22, 4  ;;  %v3191_v63 = vshll.u32 %v2783_v9, 16  ;;  %v4393_v22 = vld [vmem:[%s4778_s6 + $0xd0] sm:$0xff]  ;;  %v6704_v9 = vld [vmem:[#allocation25_spill] sm:$0xff] }
 0x19c   : > { %v1808_v28 = vadd.f32 %v1761_v6, %v1471_v34  ;;  %v3178_v42 = vor.u32 %v3177_v48, %v3173_v56  ;;  %v3678_v48 = vrot.slane %v3676_v49, 4 }
 0x19d   : > { %v2337_v24 = vpop.f32.mrf.mxu0  ;;  %v3188_v52 = vor.u32 %v3187_v33, %v3183_v8  ;;  %v3193_v23 = vrot.slane %v3191_v63, 5  ;;  %v5972_v33 = vpack.c.bf16 %v4393_v22, %v4393_v22  ;;  %v4394_v22 = vld [vmem:[%s4778_s6 + $0xd8] sm:$0xff] }
 0x19e   : > { %v5957_v19 = vadd.f32 %v2335_v51, %v1808_v28  ;;  %v3679_v51 = vrot.slane %v5935_v3, 5  ;;  %v3179_v56 = vrot.slane %v3178_v42, 4  ;;  %v6703_v42 = vld [vmem:[#allocation31_spill] sm:$0xff] }
 0x19f   : > { %v3205_v13 = vshll.u32 %v5972_v33, 16 }
 0x1a0   : > { %6698 = vst [vmem:[#allocation27_spill] sm:$0xff] %v5957_v19  ;;  %v3681_v44 = vrot.slane %v3679_v51, 4 }
 0x1a1   : > { %v1426_v36 = vpop.f32.mrf.mxu2  ;;  %v1763_v18 = vpop.f32.mrf.mxu3 }
 0x1a2   : > { %v1472_v6 = vadd.f32 %v1426_v36, %v1135_v37  ;;  %v1092_v34 = vpop.f32.mrf.mxu1  ;;  %v3189_v37 = vrot.slane %v3188_v52, 4  ;;  %v3199_v52 = vshll.u32 %v5968_v59, 16 }
 0x1a3   : > { %v1136_v30 = vadd.f32 %v1092_v34, %v6699_v41  ;;  %v3680_v41 = vsel %vm4970_vm7, %v3678_v48, %v3679_v51 }
 0x1a4   : > { %v1809_v4 = vadd.f32 %v1763_v18, %v1472_v6  ;;  %v3184_v6 = vsel %vm4963_vm6, %v3179_v56, %v3183_v8  ;;  %v3194_v49 = vsel %vm4963_vm6, %v3189_v37, %v3193_v23  ;;  %v3761_v23 = vunpack.c.l.b16 %v3680_v41 }
 0x1a5   : > { %v2340_v28 = vpop.f32.mrf.mxu0  ;;  %4363 = vmatmul.msk.bf16.gmra.mxu1 %vm393_vm1, %v6700_v12  ;;  %v3427_v56 = vunpack.c.l.b16 %v3184_v6  ;;  %v3428_v37 = vunpack.c.l.b16 %v3194_v49  ;;  %v3201_v51 = vrot.slane %v3199_v52, 5 }
 0x1a6   : > { %4422 = vmatmul.msk.bf16.gmra.mxu2 %vm393_vm1, %v2879_v54  ;;  %4439 = vmatmul.msk.bf16.gmra.mxu3 %vm393_vm1, %v3453_v53  ;;  %v5970_v11 = vadd.f32 %v2337_v24, %v1809_v4  ;;  %v2438_v54 = vsel %vm4970_vm7, %v6703_v42, %v2437_v27  ;;  %v3196_v53 = vshrl.u32 %v5968_v59, 16  ;;  %v3209_v4 = vshrl.u32 %v5972_v33, 16 }
 0x1a7   : > { %v2517_v8 = vunpack.c.l.b16 %v2438_v54  ;;  %v2854_v27 = vunpack.c.l.b16 %v5935_v3 }
 0x1a8   : > { %6702 = vst [vmem:[#allocation32_spill] sm:$0xff] %v5970_v11  ;;  %4464 = vmatmul.msk.bf16.gmra.mxu0 %vm393_vm1, %v3787_v55  ;;  %v3211_v54 = vrot.slane %v3209_v4, 4  ;;  %v6708_v11 = vunpack.c.l.b16 %v6707_v50 }
 0x1a9   : > { %v1429_v36 = vpop.f32.mrf.mxu2  ;;  %v1766_v18 = vpop.f32.mrf.mxu3  ;;  %v2880_v41 = vpack.c.b16 %v2854_v27, %v2853_v17 }
 0x1aa   : > { %v1473_v34 = vadd.f32 %v1429_v36, %v1136_v30  ;;  %v1094_v24 = vpop.f32.mrf.mxu1  ;;  %v3683_v30 = vsel %vm4970_vm7, %v3681_v44, %v3682_v58  ;;  %v3198_v36 = vrot.slane %v3196_v53, 4  ;;  %v2543_v3 = vpack.c.b16 %v2517_v8, %v6708_v11 }
 0x1ab   : > { %v1137_v63 = vadd.f32 %v1094_v24, %v6704_v9  ;;  %v3762_v42 = vunpack.c.l.b16 %v3683_v30  ;;  %v5996_v24 = vpack.c.bf16 %v4394_v22, %v4394_v22  ;;  %v3454_v53 = vpack.c.b16 %v3428_v37, %v3427_v56 }
 0x1ac   : > { %v1810_v55 = vadd.f32 %v1766_v18, %v1473_v34  ;;  %v3207_v18 = vrot.slane %v3205_v13, 5  ;;  %v6706_v34 = vld [vmem:[#allocation19_spill] sm:$0xff]  ;;  %v3202_v52 = vor.u32 %v3201_v51, %v3198_v36  ;;  %v3686_v11 = vrot.slane %v5972_v33, 5 }
 0x1ad   : > { %v2342_v12 = vpop.f32.mrf.mxu0  ;;  %v2441_v44 = vrot.slane %v6706_v34, 5  ;;  %v3788_v30 = vpack.c.b16 %v3762_v42, %v3761_v23  ;;  %v3215_v13 = vshll.u32 %v5996_v24, 16  ;;  %v6012_v56 = vpack.c.bf16 %v4395_v26, %v4395_v26 }
 0x1ae   : > { %v5994_v48 = vadd.f32 %v2340_v28, %v1810_v55  ;;  %v6709_v28 = vld [vmem:[#allocation28_spill] sm:$0xff]  ;;  %v3212_v22 = vor.u32 %v3211_v54, %v3207_v18  ;;  %v4454_v51 = vrot.slane %v5968_v59, 9  ;;  %v3219_v42 = vshrl.u32 %v5996_v24, 16 }
 0x1af   : > { %v2443_v19 = vrot.slane %v2441_v44, 4  ;;  %v3217_v27 = vrot.slane %v3215_v13, 5  ;;  %v2856_v13 = vunpack.c.l.b16 %v5972_v33 }
 0x1b0   : > { %6705 = vst [vmem:[#allocation37_spill] sm:$0xff] %v5994_v48  ;;  %v6710_v48 = vld [vmem:[#allocation18_spill] sm:$0xff]  ;;  %v3213_v17 = vrot.slane %v3212_v22, 4  ;;  %v3221_v22 = vrot.slane %v3219_v42, 4 }
 0x1b1   : > { %v1431_v58 = vpop.f32.mrf.mxu2  ;;  %v1768_v9 = vpop.f32.mrf.mxu3  ;;  %v4353_v34 = vrot.slane %v6710_v48, 9  ;;  %v2445_v37 = vsel %vm4970_vm7, %v2443_v19, %v2444_v25  ;;  %v3688_v48 = vrot.slane %v3686_v11, 4 }
 0x1b2   : > { %v1474_v6 = vadd.f32 %v1431_v58, %v1137_v63  ;;  %v1097_v49 = vpop.f32.mrf.mxu1  ;;  %v3203_v63 = vrot.slane %v3202_v52, 4  ;;  %v3218_v19 = vsel %vm4963_vm6, %v3213_v17, %v3217_v27  ;;  %v4396_v52 = vld [vmem:[%s4778_s6 + $0xe8] sm:$0x3] }
 0x1b3   : > { %v1138_v55 = vadd.f32 %v1097_v49, %v6709_v28  ;;  %v2442_v60 = vsel %vm4970_vm7, %v4353_v34, %v2441_v44  ;;  %v3430_v34 = vunpack.c.l.b16 %v3218_v19  ;;  %v2788_v17 = vpack.c.bf16 %v4396_v52, %v4396_v52  ;;  %v6716_v19 = vld [vmem:[#allocation38_spill] sm:$0xff] }
 0x1b4   : > { %v1811_v4 = vadd.f32 %v1768_v9, %v1474_v6  ;;  %v3208_v58 = vsel %vm4963_vm6, %v3203_v63, %v3207_v18  ;;  %v6713_v9 = vld [vmem:[#allocation33_spill] sm:$0xff]  ;;  %v3229_v6 = vshrl.u32 %v6012_v56, 16  ;;  %v3687_v18 = vsel %vm4970_vm7, %v4454_v51, %v3686_v11 }
 0x1b5   : > { %v2345_v50 = vpop.f32.mrf.mxu0  ;;  %4364 = vmatmul.msk.bf16.gmra.mxu1 %vm393_vm1, %v2543_v3  ;;  %v3225_v3 = vshll.u32 %v6012_v56, 16 }
 0x1b6   : > { %4423 = vmatmul.msk.bf16.gmra.mxu2 %vm393_vm1, %v2880_v41  ;;  %4440 = vmatmul.msk.bf16.gmra.mxu3 %vm393_vm1, %v3454_v53  ;;  %v6010_v8 = vadd.f32 %v2342_v12, %v1811_v4  ;;  %v6609_v12 = vrot.slane %v5996_v24, 5  ;;  %v2518_v41 = vunpack.c.l.b16 %v2442_v60  ;;  %v2519_v53 = vunpack.c.l.b16 %v2445_v37 }
 0x1b7   : > { %v3429_v4 = vunpack.c.l.b16 %v3208_v58  ;;  %v3227_v60 = vrot.slane %v3225_v3, 5  ;;  %v3231_v37 = vrot.slane %v3229_v6, 4  ;;  %v3235_v3 = vshll.u32 %v2788_v17, 16  ;;  %v4397_v6 = vld [vmem:[%s4778_s6 + $0xf0] sm:$0xff] }
 0x1b8   : > { %6712 = vst [vmem:[#allocation13_spill] sm:$0xff] %v6010_v8  ;;  %4465 = vmatmul.msk.bf16.gmra.mxu0 %vm393_vm1, %v3788_v30  ;;  %v3690_v30 = vsel %vm4970_vm7, %v3688_v48, %v6609_v12  ;;  %v3222_v48 = vor.u32 %v3221_v22, %v3217_v27  ;;  %v4398_v8 = vld [vmem:[%s4778_s6 + $0xf8] sm:$0xff] }
 0x1b9   : > { %v1434_v23 = vpop.f32.mrf.mxu2  ;;  %v1771_v36 = vpop.f32.mrf.mxu3  ;;  %v3455_v58 = vpack.c.b16 %v3430_v34, %v3429_v4  ;;  %v3232_v52 = vor.u32 %v3231_v37, %v3227_v60  ;;  %v6055_v22 = vpack.c.bf16 %v4398_v8, %v4398_v8  ;;  %v6718_v37 = vrot.slane %v5996_v24, 5 }
 0x1ba   : > { %v1475_v26 = vadd.f32 %v1434_v23, %v1138_v55  ;;  %v1099_v54 = vpop.f32.mrf.mxu1  ;;  %v2855_v55 = vunpack.c.l.b16 %v5968_v59  ;;  %v3763_v59 = vunpack.c.l.b16 %v3687_v18  ;;  %v3764_v23 = vunpack.c.l.b16 %v3690_v30 }
 0x1bb   : > { %v1139_v44 = vadd.f32 %v1099_v54, %v6713_v9  ;;  %v2544_v54 = vpack.c.b16 %v2519_v53, %v2518_v41  ;;  %v3223_v27 = vrot.slane %v3222_v48, 4  ;;  %v3233_v53 = vrot.slane %v3232_v52, 4  ;;  %v4399_v52 = vld [vmem:[%s4778_s6 + $0x100] sm:$0xff] }
 0x1bc   : > { %v1812_v49 = vadd.f32 %v1771_v36, %v1475_v26  ;;  %v6715_v36 = vld [vmem:[#allocation26_spill] sm:$0xff]  ;;  %v2881_v33 = vpack.c.b16 %v2856_v13, %v2855_v55  ;;  %v3789_v18 = vpack.c.b16 %v3764_v23, %v3763_v59  ;;  %v3237_v55 = vrot.slane %v3235_v3, 5 }
 0x1bd   : > { %v6030_v28 = vpop.f32.mrf.mxu0  ;;  %v2447_v11 = vrot.slane %v6715_v36, 5  ;;  %v3691_v59 = vrot.slane %v6718_v37, 4 }
 0x1be   : > { %v6040_v63 = vadd.f32 %v2345_v50, %v1812_v49  ;;  %v2446_v49 = vrot.slane %v2444_v25, 4  ;;  %v6051_v25 = vpack.c.bf16 %v4397_v6, %v4397_v6 }
 0x1bf   : > { %v2449_v30 = vrot.slane %v2447_v11, 4 }
 0x1c0   : > { %6714 = vst [vmem:[#allocation17_spill] sm:$0xff] %v6040_v63  ;;  %v6717_v63 = vld [vmem:[#allocation29_spill] sm:$0xff]  ;;  %v2448_v41 = vsel %vm4970_vm7, %v2446_v49, %v2447_v11  ;;  %v3695_v11 = vrot.slane %v2788_v17, 5  ;;  %v3243_v48 = vshll.u32 %v6051_v25, 16  ;;  %v2857_v17 = vunpack.c.l.b16 %v5996_v24 }
 0x1c1   : > { %v1436_v51 = vpop.f32.mrf.mxu2  ;;  %v1773_v26 = vpop.f32.mrf.mxu3  ;;  %v2450_v36 = vrot.slane %v6717_v63, 5  ;;  %v3228_v63 = vsel %vm4963_vm6, %v3223_v27, %v3227_v60  ;;  %v2520_v8 = vunpack.c.l.b16 %v2448_v41  ;;  %v3249_v60 = vshll.u32 %v6055_v22, 16 }
 0x1c2   : > { %v1476_v42 = vadd.f32 %v1436_v51, %v1139_v44  ;;  %v1102_v9 = vpop.f32.mrf.mxu1  ;;  %v3692_v44 = vrot.slane %v6012_v56, 5  ;;  %v3431_v6 = vunpack.c.l.b16 %v3228_v63  ;;  %v6083_v24 = vpack.c.bf16 %v4399_v52, %v4399_v52 }
 0x1c3   : > { %v1140_v50 = vadd.f32 %v1102_v9, %v6716_v19  ;;  %v2451_v13 = vsel %vm4970_vm7, %v2449_v30, %v2450_v36 }
 0x1c4   : > { %v1813_v12 = vadd.f32 %v1773_v26, %v1476_v42  ;;  %v3694_v23 = vrot.slane %v3692_v44, 4  ;;  %v6719_v42 = vld [vmem:[#allocation40_spill] sm:$0xff]  ;;  %v2521_v49 = vunpack.c.l.b16 %v2451_v13 }
 0x1c5   : > { %v2350_v16 = vpop.f32.mrf.mxu0  ;;  %4365 = vmatmul.msk.bf16.gmra.mxu1 %vm393_vm1, %v2544_v54  ;;  %v3240_v54 = vshrl.u32 %v6051_v25, 16 }
 0x1c6   : > { %4424 = vmatmul.msk.bf16.gmra.mxu2 %vm393_vm1, %v2881_v33  ;;  %4441 = vmatmul.msk.bf16.gmra.mxu3 %vm393_vm1, %v3455_v58  ;;  %v3238_v33 = vsel %vm4963_vm6, %v3233_v53, %v3237_v55  ;;  %v3253_v58 = vshrl.u32 %v6055_v22, 16  ;;  %v3696_v30 = vsel %vm4970_vm7, %v3694_v23, %v3695_v11  ;;  %v6079_v36 = vadd.f32 %v6030_v28, %v1813_v12  ;;  %v6720_v28 = vld [vmem:[#allocation35_spill] sm:$0xff] }
 0x1c7   : > { %v3432_v27 = vunpack.c.l.b16 %v3238_v33  ;;  %v3242_v41 = vrot.slane %v3240_v54, 4  ;;  %v3245_v53 = vrot.slane %v3243_v48, 5  ;;  %v2545_v37 = vpack.c.b16 %v2521_v49, %v2520_v8  ;;  %v6721_v48 = vld [vmem:[#allocation43_spill] sm:$0xff] }
 0x1c8   : > { %4466 = vmatmul.msk.bf16.gmra.mxu0 %vm393_vm1, %v3789_v18  ;;  %v3693_v18 = vsel %vm4970_vm7, %v3691_v59, %v3692_v44  ;;  %v3255_v13 = vrot.slane %v3253_v58, 4  ;;  %v3259_v33 = vshll.u32 %v6083_v24, 16 }
 0x1c9   : > { %v1439_v4 = vpop.f32.mrf.mxu2  ;;  %v1776_v34 = vpop.f32.mrf.mxu3  ;;  %v3456_v12 = vpack.c.b16 %v3432_v27, %v3431_v6  ;;  %v3246_v54 = vor.u32 %v3245_v53, %v3242_v41 }
 0x1ca   : > { %v1477_v51 = vadd.f32 %v1439_v4, %v1140_v50  ;;  %v1104_v26 = vpop.f32.mrf.mxu1  ;;  %v2858_v50 = vunpack.c.l.b16 %v6012_v56  ;;  %v3251_v56 = vrot.slane %v3249_v60, 5  ;;  %v3765_v4 = vunpack.c.l.b16 %v3693_v18 }
 0x1cb   : > { %v1141_v9 = vadd.f32 %v1104_v26, %v6719_v42  ;;  %v2454_v26 = vrot.slane %v6720_v28, 5  ;;  %v3699_v60 = vrot.slane %v6055_v22, 5  ;;  %v3247_v6 = vrot.slane %v3246_v54, 4  ;;  %v6723_v28 = vld [vmem:[#allocation45_spill] sm:$0xff] }
 0x1cc   : > { %v1814_v19 = vadd.f32 %v1776_v34, %v1477_v51  ;;  %v3766_v34 = vunpack.c.l.b16 %v3696_v30  ;;  %v2882_v59 = vpack.c.b16 %v2858_v50, %v2857_v17  ;;  %v4400_v51 = vld [vmem:[%s4778_s6 + $0x108] sm:$0xff]  ;;  %v3256_v42 = vor.u32 %v3255_v13, %v3251_v56 }
 0x1cd   : > { %v2352_v3 = vpop.f32.mrf.mxu0  ;;  %v6090_v52 = vpack.c.bf16 %v4400_v51, %v4400_v51  ;;  %v2457_v17 = vrot.slane %v5324_v40, 5  ;;  %v2456_v50 = vrot.slane %v2454_v26, 4  ;;  %v4455_v18 = vrot.slane %v6051_v25, 9 }
 0x1ce   : > { %v6081_v55 = vadd.f32 %v2350_v16, %v1814_v19  ;;  %v3790_v19 = vpack.c.b16 %v3766_v34, %v3765_v4  ;;  %v3257_v27 = vrot.slane %v3256_v42, 4  ;;  %v3261_v41 = vrot.slane %v3259_v33, 5  ;;  %v4401_v4 = vld [vmem:[%s4778_s6 + $0x110] sm:$0x3] }
 0x1cf   : > { %v3701_v53 = vrot.slane %v3699_v60, 4  ;;  %v6610_v13 = vrot.slane %v6083_v24, 5  ;;  %v3263_v40 = vshrl.u32 %v6083_v24, 16  ;;  %v3269_v34 = vshll.u32 %v6090_v52, 16 }
 0x1d1   : > { %v1441_v63 = vpop.f32.mrf.mxu2  ;;  %v1778_v44 = vpop.f32.mrf.mxu3  ;;  %v3265_v33 = vrot.slane %v3263_v40, 4 }
 0x1d2   : > { %v1478_v23 = vadd.f32 %v1441_v63, %v1141_v9  ;;  %v1107_v11 = vpop.f32.mrf.mxu1  ;;  %v6722_v9 = vld [vmem:[#allocation34_spill] sm:$0xff]  ;;  %v3273_v63 = vshrl.u32 %v6090_v52, 16 }
 0x1d3   : > { %v1142_v16 = vadd.f32 %v1107_v11, %v6721_v48  ;;  %v4354_v49 = vrot.slane %v6722_v9, 9  ;;  %v3252_v11 = vsel %vm4963_vm6, %v3247_v6, %v3251_v56  ;;  %v3262_v48 = vsel %vm4963_vm6, %v3257_v27, %v3261_v41 }
 0x1d4   : > { %v1815_v58 = vadd.f32 %v1778_v44, %v1478_v23  ;;  %v2458_v23 = vsel %vm4970_vm7, %v2456_v50, %v2457_v17  ;;  %v3275_v56 = vrot.slane %v3273_v63, 4  ;;  %v2860_v50 = vunpack.c.l.b16 %v6055_v22 }
 0x1d5   : > { %v2355_v8 = vpop.f32.mrf.mxu0  ;;  %4366 = vmatmul.msk.bf16.gmra.mxu1 %vm393_vm1, %v2545_v37  ;;  %v3433_v6 = vunpack.c.l.b16 %v3252_v11  ;;  %v3266_v40 = vor.u32 %v3265_v33, %v3261_v41 }
 0x1d6   : > { %4425 = vmatmul.msk.bf16.gmra.mxu2 %vm393_vm1, %v2882_v59  ;;  %4442 = vmatmul.msk.bf16.gmra.mxu3 %vm393_vm1, %v3456_v12  ;;  %v6098_v30 = vadd.f32 %v2352_v3, %v1815_v58  ;;  %v2455_v3 = vsel %vm4970_vm7, %v4354_v49, %v2454_v26  ;;  %v3700_v12 = vsel %vm4970_vm7, %v4455_v18, %v3699_v60  ;;  %v6123_v58 = vrot.slane %v3269_v34, 5 }
 0x1d7   : > { %v3703_v26 = vsel %vm4970_vm7, %v3701_v53, %v6610_v13  ;;  %v2522_v9 = vunpack.c.l.b16 %v2455_v3  ;;  %v2523_v60 = vunpack.c.l.b16 %v2458_v23  ;;  %v2859_v49 = vunpack.c.l.b16 %v6051_v25 }
 0x1d8   : > { %4467 = vmatmul.msk.bf16.gmra.mxu0 %vm393_vm1, %v3790_v19  ;;  %v3434_v18 = vunpack.c.l.b16 %v3262_v48  ;;  %v3767_v53 = vunpack.c.l.b16 %v3700_v12  ;;  %v3276_v34 = vor.u32 %v3275_v56, %v6123_v58  ;;  %v2459_v48 = vrot.slane %v2457_v17, 4 }
 0x1d9   : > { %v1444_v44 = vpop.f32.mrf.mxu2  ;;  %v1781_v37 = vpop.f32.mrf.mxu3  ;;  %v2546_v25 = vpack.c.b16 %v2523_v60, %v2522_v9  ;;  %v2883_v23 = vpack.c.b16 %v2860_v50, %v2859_v49  ;;  %v3267_v41 = vrot.slane %v3266_v40, 4  ;;  %v3705_v9 = vrot.slane %v6090_v52, 5 }
 0x1da   : > { %v1479_v59 = vadd.f32 %v1444_v44, %v1142_v16  ;;  %v1109_v51 = vpop.f32.mrf.mxu1  ;;  %v6121_v16 = vpack.c.bf16 %v4401_v4, %v4401_v4  ;;  %v3768_v4 = vunpack.c.l.b16 %v3703_v26  ;;  %v6725_v44 = vld [vmem:[#allocation41_spill] sm:$0xff]  ;;  %v3457_v11 = vpack.c.b16 %v3434_v18, %v3433_v6  ;;  %v6726_v26 = vld [vmem:[#allocation44_spill] sm:$0xff] }
 0x1db   : > { %v1143_v54 = vadd.f32 %v1109_v51, %v6723_v28  ;;  %v4402_v28 = vld [vmem:[%s4778_s6 + $0x118] sm:$0xff]  ;;  %v3277_v33 = vrot.slane %v3276_v34, 4  ;;  %v3707_v34 = vrot.slane %v3705_v9, 4 }
 0x1dc   : > { %v1816_v42 = vadd.f32 %v1781_v37, %v1479_v59  ;;  %v2460_v37 = vrot.slane %v6725_v44, 5  ;;  %v3279_v63 = vshll.u32 %v6121_v16, 16  ;;  %v4403_v44 = vld [vmem:[%s4778_s6 + $0x120] sm:$0xff]  ;;  %v6728_v6 = vld [vmem:[#allocation48_spill] sm:$0xff] }
 0x1dd   : > { %v2357_v19 = vpop.f32.mrf.mxu0  ;;  %v6141_v17 = vpack.c.bf16 %v4403_v44, %v4403_v44 }
 0x1de   : > { %v6127_v27 = vadd.f32 %v2355_v8, %v1816_v42  ;;  %v3791_v8 = vpack.c.b16 %v3768_v4, %v3767_v53  ;;  %v2462_v12 = vrot.slane %v2460_v37, 4  ;;  %v2463_v42 = vrot.slane %v6726_v26, 5 }
 0x1df   : > { %v3281_v56 = vrot.slane %v3279_v63, 5  ;;  %v2461_v49 = vsel %vm4970_vm7, %v2459_v48, %v2460_v37  ;;  %v3272_v53 = vsel %vm4963_vm6, %v3267_v41, %v6123_v58  ;;  %v3708_v63 = vrot.slane %v6121_v16, 5 }
 0x1e0   : > { %6724 = vst [vmem:[#allocation20_spill] sm:$0xff] %v6127_v27  ;;  %v2464_v50 = vsel %vm4970_vm7, %v2462_v12, %v2463_v42  ;;  %v3293_v58 = vshll.u32 %v6141_v17, 16  ;;  %v2862_v16 = vunpack.c.l.b16 %v6090_v52  ;;  %v3435_v12 = vunpack.c.l.b16 %v3272_v53  ;;  %v6730_v52 = vld [vmem:[#allocation47_spill] sm:$0xff] }
 0x1e1   : > { %v1446_v3 = vpop.f32.mrf.mxu2  ;;  %v1783_v59 = vpop.f32.mrf.mxu3  ;;  %v3282_v4 = vsel %vm4963_vm6, %v3277_v33, %v3281_v56  ;;  %v3709_v41 = vsel %vm4970_vm7, %v3707_v34, %v3708_v63 }
 0x1e2   : > { %v1480_v51 = vadd.f32 %v1446_v3, %v1143_v54  ;;  %v2614_v22 = vpop.f32.mrf.mxu1  ;;  %v6137_v54 = vpack.c.bf16 %v4402_v28, %v4402_v28  ;;  %v2861_v28 = vunpack.c.l.b16 %v6083_v24  ;;  %v3436_v26 = vunpack.c.l.b16 %v3282_v4  ;;  %v6731_v4 = vld [vmem:[#allocation49_spill] sm:$0xff] }
 0x1e3   : > { %v2694_v18 = vadd.f32 %v2614_v22, %v6728_v6  ;;  %v3297_v22 = vshrl.u32 %v6141_v17, 16 }
 0x1e4   : > { %v1817_v13 = vadd.f32 %v1783_v59, %v1480_v51  ;;  %v3284_v3 = vshrl.u32 %v6137_v54, 16  ;;  %v3287_v59 = vshll.u32 %v6137_v54, 16  ;;  %v2884_v63 = vpack.c.b16 %v2862_v16, %v2861_v28 }
 0x1e5   : > { %v3859_v27 = vpop.f32.mrf.mxu0  ;;  %4367 = vmatmul.msk.bf16.gmra.mxu1 %vm393_vm1, %v2546_v25  ;;  %v3299_v6 = vrot.slane %v3297_v22, 4 }
 0x1e6   : > { %4426 = vmatmul.msk.bf16.gmra.mxu2 %vm393_vm1, %v2883_v23  ;;  %4443 = vmatmul.msk.bf16.gmra.mxu3 %vm393_vm1, %v3457_v11  ;;  %v6143_v60 = vadd.f32 %v2357_v19, %v1817_v13  ;;  %v6729_v13 = vrot.slane %v6083_v24, 5  ;;  %v2524_v23 = vunpack.c.l.b16 %v2461_v49  ;;  %v2525_v11 = vunpack.c.l.b16 %v2464_v50 }
 0x1e7   : > { %v3286_v33 = vrot.slane %v3284_v3, 4  ;;  %v3289_v56 = vrot.slane %v3287_v59, 5  ;;  %v6175_v24 = vrot.slane %v3293_v58, 5  ;;  %v3458_v3 = vpack.c.b16 %v3436_v26, %v3435_v12 }
 0x1e8   : > { %6727 = vst [vmem:[#allocation39_spill] sm:$0xff] %v6143_v60  ;;  %4468 = vmatmul.msk.bf16.gmra.mxu0 %vm393_vm1, %v3791_v8  ;;  %v3704_v19 = vrot.slane %v6729_v13, 4  ;;  %v4404_v8 = vld [vmem:[%s4778_s6 + $0x128] sm:$0xff]  ;;  %v2547_v34 = vpack.c.b16 %v2525_v11, %v2524_v23 }
 0x1e9   : > { %v2951_v37 = vpop.f32.mrf.mxu2  ;;  %v3525_v40 = vpop.f32.mrf.mxu3  ;;  %v6173_v50 = vpack.c.bf16 %v4404_v8, %v4404_v8  ;;  %v3300_v22 = vor.u32 %v3299_v6, %v6175_v24 }
 0x1ea   : > { %v3031_v25 = vadd.f32 %v2951_v37, %v2694_v18  ;;  %v2616_v51 = vpop.f32.mrf.mxu1  ;;  %v3706_v44 = vsel %vm4970_vm7, %v3704_v19, %v3705_v9  ;;  %v2467_v18 = vrot.slane %v6730_v52, 5  ;;  %v3770_v19 = vunpack.c.l.b16 %v3709_v41  ;;  %v6732_v52 = vld [vmem:[#allocation46_spill] sm:$0xff] }
 0x1eb   : > { %v2695_v9 = vadd.f32 %v2616_v51, %v6731_v4  ;;  %v3769_v13 = vunpack.c.l.b16 %v3706_v44  ;;  %v3303_v8 = vshll.u32 %v6173_v50, 16  ;;  %v2470_v51 = vrot.slane %v5457_v61, 5 }
 0x1ec   : > { %v3605_v48 = vadd.f32 %v3525_v40, %v3031_v25  ;;  %v2469_v60 = vrot.slane %v2467_v18, 4  ;;  %v3712_v44 = vrot.slane %v6141_v17, 5  ;;  %v3301_v41 = vrot.slane %v3300_v22, 4 }
 0x1ed   : > { %v3861_v42 = vpop.f32.mrf.mxu0  ;;  %v3792_v11 = vpack.c.b16 %v3770_v19, %v3769_v13  ;;  %v3715_v13 = vrot.slane %v6173_v50, 5  ;;  %v3307_v19 = vshrl.u32 %v6173_v50, 16 }
 0x1ee   : > { %v3939_v49 = vadd.f32 %v3859_v27, %v3605_v48  ;;  %v3290_v27 = vor.u32 %v3289_v56, %v3286_v33  ;;  %v4405_v48 = vld [vmem:[%s4778_s6 + $0x130] sm:$0xff]  ;;  %v3305_v33 = vrot.slane %v3303_v8, 5  ;;  %v2471_v6 = vsel %vm4970_vm7, %v2469_v60, %v2470_v51 }
 0x1ef   : > { %v6190_v16 = vpack.c.bf16 %v4405_v48, %v4405_v48  ;;  %v3714_v4 = vrot.slane %v3712_v44, 4 }
 0x1f0   : > { %v3971_v53 = vmax.f32 %v3939_v49, 0.0  ;;  %v4355_v49 = vrot.slane %v6732_v52, 9  ;;  %v3291_v26 = vrot.slane %v3290_v27, 4  ;;  %v4406_v27 = vld [vmem:[%s4778_s6 + $0x138] sm:$0x3]  ;;  %v3309_v52 = vrot.slane %v3307_v19, 4 }
 0x1f1   : > { %v2953_v37 = vpop.f32.mrf.mxu2  ;;  %v3527_v40 = vpop.f32.mrf.mxu3  ;;  %v3716_v48 = vsel %vm4970_vm7, %v3714_v4, %v3715_v13 }
 0x1f2   : > { %v4003_v59 = vpack.c.bf16 %v3971_v53, %v3971_v53  ;;  %v3032_v25 = vadd.f32 %v2953_v37, %v2695_v9  ;;  %v2619_v58 = vpop.f32.mrf.mxu1  ;;  %v2468_v56 = vsel %vm4970_vm7, %v4355_v49, %v2467_v18  ;;  %v4456_v53 = vrot.slane %v6137_v54, 9 }
 0x1f3   : > { %v2696_v9 = vadd.f32 %v2619_v58, %v5543_v20  ;;  %v3296_v20 = vsel %vm4963_vm6, %v3291_v26, %v6175_v24  ;;  %v3306_v58 = vsel %vm4963_vm6, %v3301_v41, %v3305_v33  ;;  %v2864_v41 = vunpack.c.l.b16 %v6141_v17 }
 0x1f4   : > { %4036 = vst.msk [vmem:[%s6185_s8] sm:$0xf] %vm4035_vm8, %v4003_v59  ;;  %v3606_v23 = vadd.f32 %v3527_v40, %v3032_v25  ;;  %v3313_v40 = vshll.u32 %v6190_v16, 16  ;;  %v2526_v59 = vunpack.c.l.b16 %v2468_v56  ;;  %v2527_v25 = vunpack.c.l.b16 %v2471_v6 }
 0x1f5   : > { %v3864_v28 = vpop.f32.mrf.mxu0  ;;  %4368 = vmatmul.msk.bf16.gmra.mxu1 %vm393_vm1, %v2547_v34  ;;  %v3317_v34 = vshrl.u32 %v6190_v16, 16  ;;  %v3713_v8 = vsel %vm4970_vm7, %v4456_v53, %v3712_v44  ;;  %v3437_v56 = vunpack.c.l.b16 %v3296_v20  ;;  %v3438_v6 = vunpack.c.l.b16 %v3306_v58  ;;  %v4408_v58 = vld [vmem:[%s4778_s6 + $0x148] sm:$0xff] }
 0x1f6   : > { %v3940_v12 = vadd.f32 %v3861_v42, %v3606_v23  ;;  %4427 = vmatmul.msk.bf16.gmra.mxu2 %vm393_vm1, %v2884_v63  ;;  %4444 = vmatmul.msk.bf16.gmra.mxu3 %vm393_vm1, %v3458_v3  ;;  %v2863_v23 = vunpack.c.l.b16 %v6137_v54  ;;  %v6224_v24 = vrot.slane %v3313_v40, 5  ;;  %v3771_v44 = vunpack.c.l.b16 %v3713_v8 }
 0x1f7   : > { %v3772_v53 = vunpack.c.l.b16 %v3716_v48  ;;  %v3310_v54 = vor.u32 %v3309_v52, %v3305_v33  ;;  %v3718_v52 = vrot.slane %v6190_v16, 5 }
 0x1f8   : > { %v3972_v42 = vmax.f32 %v3940_v12, 0.0  ;;  %4469 = vmatmul.msk.bf16.gmra.mxu0 %vm393_vm1, %v3792_v11  ;;  %v6222_v11 = vpack.c.bf16 %v4406_v27, %v4406_v27  ;;  %v3319_v12 = vrot.slane %v3317_v34, 4  ;;  %v3459_v27 = vpack.c.b16 %v3438_v6, %v3437_v56 }
 0x1f9   : > { %v2956_v18 = vpop.f32.mrf.mxu2  ;;  %v3530_v37 = vpop.f32.mrf.mxu3  ;;  %v3793_v20 = vpack.c.b16 %v3772_v53, %v3771_v44  ;;  %v3717_v53 = vrot.slane %v3715_v13, 4 }
 0x1fa   : > { %v4004_v60 = vpack.c.bf16 %v3972_v42, %v3972_v42  ;;  %v3033_v63 = vadd.f32 %v2956_v18, %v2696_v9  ;;  %v2621_v3 = vpop.f32.mrf.mxu1  ;;  %v2473_v9 = vrot.slane %v5495_v2, 5  ;;  %v3323_v17 = vshll.u32 %v6222_v11, 16 }
 0x1fb   : > { %v2697_v4 = vadd.f32 %v2621_v3, %v5547_v0  ;;  %v2472_v0 = vrot.slane %v2470_v51, 4  ;;  %v4407_v3 = vld [vmem:[%s4778_s6 + $0x140] sm:$0xff] }
 0x1fc   : > { %4037 = vst.msk [vmem:[%s6185_s8 + $0x4] sm:$0xf] %vm4035_vm8, %v4004_v60  ;;  %v3607_v22 = vadd.f32 %v3530_v37, %v3033_v63  ;;  %v2548_v37 = vpack.c.b16 %v2527_v25, %v2526_v59  ;;  %v2885_v63 = vpack.c.b16 %v2864_v41, %v2863_v23  ;;  %v2475_v33 = vrot.slane %v2473_v9, 4 }
 0x1fd   : > { %v3866_v49 = vpop.f32.mrf.mxu0  ;;  %v2476_v59 = vrot.slane %v5514_v57, 5  ;;  %v3311_v25 = vrot.slane %v3310_v54, 4  ;;  %v3325_v48 = vrot.slane %v3323_v17, 5  ;;  %v6242_v61 = vpack.c.bf16 %v4407_v3, %v4407_v3 }
 0x1fe   : > { %v3941_v26 = vadd.f32 %v3864_v28, %v3607_v22  ;;  %v3320_v28 = vor.u32 %v3319_v12, %v6224_v24  ;;  %v2474_v51 = vsel %vm4970_vm7, %v2472_v0, %v2473_v9  ;;  %v6246_v57 = vpack.c.bf16 %v4408_v58, %v4408_v58 }
 0x1ff   : > { %v2477_v41 = vsel %vm4970_vm7, %v2475_v33, %v2476_v59 }
 0x200   : > { %v3973_v42 = vmax.f32 %v3941_v26, 0.0  ;;  %v3321_v8 = vrot.slane %v3320_v28, 4  ;;  %v3341_v28 = vshrl.u32 %v6246_v57, 16  ;;  %v2529_v13 = vunpack.c.l.b16 %v2477_v41 }
 0x201   : > { %v2958_v19 = vpop.f32.mrf.mxu2  ;;  %v3532_v18 = vpop.f32.mrf.mxu3 }
 0x202   : > { %v4005_v40 = vpack.c.bf16 %v3973_v42, %v3973_v42  ;;  %v3034_v34 = vadd.f32 %v2958_v19, %v2697_v4  ;;  %v2624_v60 = vpop.f32.mrf.mxu1  ;;  %v3326_v44 = vsel %vm4963_vm6, %v3321_v8, %v3325_v48  ;;  %v3721_v42 = vrot.slane %v6222_v11, 5 }
 0x203   : > { %v2698_v26 = vadd.f32 %v2624_v60, %v5588_v46  ;;  %v3720_v46 = vrot.slane %v3718_v52, 4  ;;  %v3328_v19 = vshrl.u32 %v6242_v61, 16  ;;  %v2866_v11 = vunpack.c.l.b16 %v6190_v16  ;;  %v6733_v16 = vld [vmem:[#allocation6_spill] sm:$0xff] }
 0x204   : > { %4038 = vst.msk [vmem:[%s6185_s8 + $0x8] sm:$0xf] %vm4035_vm8, %v4005_v40  ;;  %v3608_v2 = vadd.f32 %v3532_v18, %v3034_v34  ;;  %v3331_v18 = vshll.u32 %v6242_v61, 16  ;;  %v2865_v40 = vunpack.c.l.b16 %v6173_v50  ;;  %v4409_v34 = vld [vmem:[%s4778_s6 + $0x150] sm:$0xff]  ;;  %v3343_v50 = vrot.slane %v3341_v28, 4 }
 0x205   : > { %v3869_v22 = vpop.f32.mrf.mxu0  ;;  %4369 = vmatmul.msk.bf16.gmra.mxu1 %vm393_vm1, %v2548_v37  ;;  %v3337_v37 = vshll.u32 %v6246_v57, 16  ;;  %v3722_v0 = vsel %vm4970_vm7, %v3720_v46, %v3721_v42  ;;  %v6273_v59 = vpack.c.bf16 %v4409_v34, %v4409_v34 }
 0x206   : > { %v3942_v23 = vadd.f32 %v3866_v49, %v3608_v2  ;;  %4428 = vmatmul.msk.bf16.gmra.mxu2 %vm393_vm1, %v2885_v63  ;;  %4445 = vmatmul.msk.bf16.gmra.mxu3 %vm393_vm1, %v3459_v27  ;;  %v3316_v49 = vsel %vm4963_vm6, %v3311_v25, %v6224_v24  ;;  %v2528_v24 = vunpack.c.l.b16 %v2474_v51  ;;  %v3440_v27 = vunpack.c.l.b16 %v3326_v44 }
 0x207   : > { %v3439_v63 = vunpack.c.l.b16 %v3316_v49  ;;  %v3330_v2 = vrot.slane %v3328_v19, 4  ;;  %v3333_v33 = vrot.slane %v3331_v18, 5  ;;  %v6275_v25 = vrot.slane %v3337_v37, 5  ;;  %v4410_v19 = vld [vmem:[%s4778_s6 + $0x158] sm:$0xff] }
 0x208   : > { %v3974_v12 = vmax.f32 %v3942_v23, 0.0  ;;  %4470 = vmatmul.msk.bf16.gmra.mxu0 %vm393_vm1, %v3793_v20  ;;  %v3719_v20 = vsel %vm4970_vm7, %v3717_v53, %v3718_v52  ;;  %v3774_v23 = vunpack.c.l.b16 %v3722_v0  ;;  %v3347_v42 = vshll.u32 %v6273_v59, 16 }
 0x209   : > { %v2961_v56 = vpop.f32.mrf.mxu2  ;;  %v3535_v6 = vpop.f32.mrf.mxu3  ;;  %v3773_v48 = vunpack.c.l.b16 %v3719_v20  ;;  %v3460_v41 = vpack.c.b16 %v3440_v27, %v3439_v63  ;;  %v3334_v53 = vor.u32 %v3333_v33, %v3330_v2  ;;  %v3344_v46 = vor.u32 %v3343_v50, %v6275_v25 }
 0x20a   : > { %v4006_v4 = vpack.c.bf16 %v3974_v12, %v3974_v12  ;;  %v3035_v9 = vadd.f32 %v2961_v56, %v2698_v26  ;;  %v2626_v54 = vpop.f32.mrf.mxu1  ;;  %v2549_v12 = vpack.c.b16 %v2529_v13, %v2528_v24  ;;  %v2886_v26 = vpack.c.b16 %v2866_v11, %v2865_v40  ;;  %v6735_v24 = vld [vmem:[#allocation5_spill] sm:$0xff] }
 0x20b   : > { %v2699_v8 = vadd.f32 %v2626_v54, %v6733_v16  ;;  %v3725_v54 = vrot.slane %v6246_v57, 5  ;;  %v4356_v37 = vrot.slane %v6735_v24, 9  ;;  %v2483_v13 = vrot.slane %v5564_v45, 5 }
 0x20c   : > { %4039 = vst.msk [vmem:[%s6185_s8 + $0xc] sm:$0xf] %vm4035_vm8, %v4006_v4  ;;  %v3609_v17 = vadd.f32 %v3535_v6, %v3035_v9  ;;  %v6734_v6 = vld [vmem:[#allocation50_spill] sm:$0xff]  ;;  %v3794_v9 = vpack.c.b16 %v3774_v23, %v3773_v48  ;;  %v3335_v40 = vrot.slane %v3334_v53, 4  ;;  %v3345_v11 = vrot.slane %v3344_v46, 4 }
 0x20d   : > { %v3871_v60 = vpop.f32.mrf.mxu0  ;;  %v2480_v44 = vrot.slane %v6734_v6, 5  ;;  %v6290_v34 = vrot.slane %v3347_v42, 5  ;;  %v4457_v63 = vrot.slane %v6242_v61, 9  ;;  %v6293_v27 = vpack.c.bf16 %v4410_v19, %v4410_v19 }
 0x20e   : > { %v3943_v3 = vadd.f32 %v3869_v22, %v3609_v17  ;;  %v3351_v50 = vshrl.u32 %v6273_v59, 16  ;;  %v3340_v48 = vsel %vm4963_vm6, %v3335_v40, %v6275_v25  ;;  %v2867_v6 = vunpack.c.l.b16 %v6242_v61  ;;  %v6736_v40 = vld [vmem:[#allocation7_spill] sm:$0xff] }
 0x20f   : > { %v2482_v17 = vrot.slane %v2480_v44, 4  ;;  %v2481_v45 = vsel %vm4970_vm7, %v4356_v37, %v2480_v44  ;;  %v3350_v23 = vsel %vm4963_vm6, %v3345_v11, %v6290_v34  ;;  %v2868_v44 = vunpack.c.l.b16 %v6246_v57 }
 0x210   : > { %v3975_v58 = vmax.f32 %v3943_v3, 0.0  ;;  %v3728_v3 = vrot.slane %v6273_v59, 5  ;;  %v3353_v53 = vrot.slane %v3351_v50, 4  ;;  %v3441_v42 = vunpack.c.l.b16 %v3340_v48  ;;  %v6737_v48 = vld [vmem:[#allocation8_spill] sm:$0xff] }
 0x211   : > { %v2963_v51 = vpop.f32.mrf.mxu2  ;;  %v3537_v52 = vpop.f32.mrf.mxu3  ;;  %v2486_v11 = vrot.slane %v6736_v40, 5 }
 0x212   : > { %v4007_v22 = vpack.c.bf16 %v3975_v58, %v3975_v58  ;;  %v3036_v49 = vadd.f32 %v2963_v51, %v2699_v8  ;;  %v2629_v56 = vpop.f32.mrf.mxu1  ;;  %v3726_v51 = vsel %vm4970_vm7, %v4457_v63, %v3725_v54 }
 0x213   : > { %v2700_v0 = vadd.f32 %v2629_v56, %v5649_v29  ;;  %v2484_v29 = vsel %vm4970_vm7, %v2482_v17, %v2483_v13 }
 0x214   : > { %4040 = vst.msk [vmem:[%s6185_s8 + $0x10] sm:$0xf] %vm4035_vm8, %v4007_v22  ;;  %v3610_v4 = vadd.f32 %v3537_v52, %v3036_v49  ;;  %v3357_v52 = vshll.u32 %v6293_v27, 16  ;;  %v4411_v22 = vld [vmem:[%s4778_s6 + $0x160] sm:$0x3]  ;;  %v2531_v56 = vunpack.c.l.b16 %v2484_v29  ;;  %v2488_v29 = vrot.slane %v2486_v11, 4 }
 0x215   : > { %v3874_v18 = vpop.f32.mrf.mxu0  ;;  %4370 = vmatmul.msk.bf16.gmra.mxu1 %vm393_vm1, %v2549_v12  ;;  %v3361_v12 = vshrl.u32 %v6293_v27, 16  ;;  %v6322_v19 = vpack.c.bf16 %v4411_v22, %v4411_v22 }
 0x216   : > { %v3944_v28 = vadd.f32 %v3871_v60, %v3610_v4  ;;  %4429 = vmatmul.msk.bf16.gmra.mxu2 %vm393_vm1, %v2886_v26  ;;  %4446 = vmatmul.msk.bf16.gmra.mxu3 %vm393_vm1, %v3460_v41  ;;  %v3727_v60 = vrot.slane %v3725_v54, 4  ;;  %v2530_v41 = vunpack.c.l.b16 %v2481_v45  ;;  %v3442_v4 = vunpack.c.l.b16 %v3350_v23 }
 0x217   : > { %v3359_v24 = vrot.slane %v3357_v52, 5  ;;  %v3363_v37 = vrot.slane %v3361_v12, 4  ;;  %v2489_v23 = vrot.slane %v6737_v48, 5  ;;  %v3731_v12 = vrot.slane %v6293_v27, 5 }
 0x218   : > { %v3976_v20 = vmax.f32 %v3944_v28, 0.0  ;;  %4471 = vmatmul.msk.bf16.gmra.mxu0 %vm393_vm1, %v3794_v9  ;;  %v3729_v25 = vsel %vm4970_vm7, %v3727_v60, %v3728_v3  ;;  %v3775_v9 = vunpack.c.l.b16 %v3726_v51  ;;  %v2550_v57 = vpack.c.b16 %v2531_v56, %v2530_v41  ;;  %v4413_v51 = vld [vmem:[%s4778_s6 + $0x170] sm:$0xff] }
 0x219   : > { %v2966_v2 = vpop.f32.mrf.mxu2  ;;  %v3540_v33 = vpop.f32.mrf.mxu3  ;;  %v3776_v54 = vunpack.c.l.b16 %v3729_v25  ;;  %v3364_v50 = vor.u32 %v3363_v37, %v3359_v24 }
 0x21a   : > { %v4008_v58 = vpack.c.bf16 %v3976_v20, %v3976_v20  ;;  %v3037_v16 = vadd.f32 %v2966_v2, %v2700_v0  ;;  %v2631_v8 = vpop.f32.mrf.mxu1  ;;  %v2887_v2 = vpack.c.b16 %v2868_v44, %v2867_v6 }
 0x21b   : > { %v2701_v17 = vadd.f32 %v2631_v8, %v5655_v39  ;;  %v3795_v45 = vpack.c.b16 %v3776_v54, %v3775_v9  ;;  %v2485_v8 = vrot.slane %v2483_v13, 4  ;;  %v3365_v25 = vrot.slane %v3364_v50, 4 }
 0x21c   : > { %4041 = vst.msk [vmem:[%s6185_s8 + $0x14] sm:$0xf] %vm4035_vm8, %v4008_v58  ;;  %v3611_v26 = vadd.f32 %v3540_v33, %v3037_v16  ;;  %v3461_v33 = vpack.c.b16 %v3442_v4, %v3441_v42  ;;  %v3367_v58 = vshll.u32 %v6322_v19, 16  ;;  %v4412_v16 = vld [vmem:[%s4778_s6 + $0x168] sm:$0xff]  ;;  %v6339_v13 = vpack.c.bf16 %v4413_v51, %v4413_v51 }
 0x21d   : > { %v3876_v49 = vpop.f32.mrf.mxu0  ;;  %v6337_v41 = vpack.c.bf16 %v4412_v16, %v4412_v16  ;;  %v2487_v44 = vsel %vm4970_vm7, %v2485_v8, %v2486_v11  ;;  %v3730_v4 = vrot.slane %v3728_v3, 4  ;;  %v3733_v9 = vrot.slane %v3731_v12, 4 }
 0x21e   : > { %v3945_v46 = vadd.f32 %v3874_v18, %v3611_v26  ;;  %v3354_v18 = vor.u32 %v3353_v53, %v6290_v34  ;;  %v3369_v22 = vrot.slane %v3367_v58, 5 }
 0x21f   : > { %v3375_v40 = vshll.u32 %v6337_v41, 16 }
 0x220   : > { %v3977_v28 = vmax.f32 %v3945_v46, 0.0  ;;  %v3355_v34 = vrot.slane %v3354_v18, 4  ;;  %v3370_v11 = vsel %vm4963_vm6, %v3365_v25, %v3369_v22  ;;  %v4414_v18 = vld [vmem:[%s4778_s6 + $0x178] sm:$0xff] }
 0x221   : > { %v2968_v61 = vpop.f32.mrf.mxu2  ;;  %v3542_v63 = vpop.f32.mrf.mxu3  ;;  %v3444_v50 = vunpack.c.l.b16 %v3370_v11  ;;  %v3377_v16 = vrot.slane %v3375_v40, 5 }
 0x222   : > { %v4009_v20 = vpack.c.bf16 %v3977_v28, %v3977_v28  ;;  %v3038_v0 = vadd.f32 %v2968_v61, %v2701_v17  ;;  %v2634_v60 = vpop.f32.mrf.mxu1  ;;  %v3360_v42 = vsel %vm4963_vm6, %v3355_v34, %v3359_v24  ;;  %v3372_v17 = vshrl.u32 %v6337_v41, 16 }
 0x223   : > { %v2702_v6 = vadd.f32 %v2634_v60, %v5704_v32  ;;  %v3734_v32 = vrot.slane %v6322_v19, 5  ;;  %v3381_v61 = vshll.u32 %v6339_v13, 16  ;;  %v3385_v24 = vshrl.u32 %v6339_v13, 16 }
 0x224   : > { %4042 = vst.msk [vmem:[%s6185_s8 + $0x18] sm:$0xf] %vm4035_vm8, %v4009_v20  ;;  %v3612_v39 = vadd.f32 %v3542_v63, %v3038_v0  ;;  %v2532_v63 = vunpack.c.l.b16 %v2487_v44  ;;  %v2869_v19 = vunpack.c.l.b16 %v6273_v59  ;;  %v2870_v0 = vunpack.c.l.b16 %v6293_v27 }
 0x225   : > { %v3879_v52 = vpop.f32.mrf.mxu0  ;;  %4371 = vmatmul.msk.bf16.gmra.mxu1 %vm393_vm1, %v2550_v57  ;;  %v3443_v60 = vunpack.c.l.b16 %v3360_v42  ;;  %v3374_v58 = vrot.slane %v3372_v17, 4  ;;  %v6369_v8 = vrot.slane %v3381_v61, 5  ;;  %v3387_v59 = vrot.slane %v3385_v24, 4 }
 0x226   : > { %v3946_v26 = vadd.f32 %v3876_v49, %v3612_v39  ;;  %4430 = vmatmul.msk.bf16.gmra.mxu2 %vm393_vm1, %v2887_v2  ;;  %4447 = vmatmul.msk.bf16.gmra.mxu3 %vm393_vm1, %v3461_v33  ;;  %v2490_v49 = vsel %vm4970_vm7, %v2488_v29, %v2489_v23  ;;  %v3732_v2 = vsel %vm4970_vm7, %v3730_v4, %v3731_v12  ;;  %v6739_v4 = vld [vmem:[#allocation9_spill] sm:$0xff]  ;;  %v3738_v17 = vrot.slane %v6339_v13, 5 }
 0x227   : > { %v2533_v57 = vunpack.c.l.b16 %v2490_v49  ;;  %v3735_v33 = vsel %vm4970_vm7, %v3733_v9, %v3734_v32  ;;  %v6367_v39 = vpack.c.bf16 %v4414_v18, %v4414_v18  ;;  %v3777_v48 = vunpack.c.l.b16 %v3732_v2  ;;  %v4415_v32 = vld [vmem:[%s4778_s6 + $0x180] sm:$0xff] }
 0x228   : > { %v3978_v56 = vmax.f32 %v3946_v26, 0.0  ;;  %4472 = vmatmul.msk.bf16.gmra.mxu0 %vm393_vm1, %v3795_v45  ;;  %v3778_v23 = vunpack.c.l.b16 %v3735_v33  ;;  %v2888_v26 = vpack.c.b16 %v2870_v0, %v2869_v19  ;;  %v3462_v44 = vpack.c.b16 %v3444_v50, %v3443_v60 }
 0x229   : > { %v2971_v53 = vpop.f32.mrf.mxu2  ;;  %v3545_v46 = vpop.f32.mrf.mxu3  ;;  %v2551_v12 = vpack.c.b16 %v2533_v57, %v2532_v63  ;;  %v3378_v49 = vor.u32 %v3377_v16, %v3374_v58  ;;  %v4357_v9 = vrot.slane %v6739_v4, 9  ;;  %v6740_v57 = vld [vmem:[#allocation11_spill] sm:$0xff]  ;;  %v4458_v2 = vrot.slane %v6337_v41, 9 }
 0x22a   : > { %v4010_v54 = vpack.c.bf16 %v3978_v56, %v3978_v56  ;;  %v3039_v37 = vadd.f32 %v2971_v53, %v2702_v6  ;;  %v2636_v28 = vpop.f32.mrf.mxu1  ;;  %v3388_v53 = vor.u32 %v3387_v59, %v6369_v8  ;;  %v3796_v42 = vpack.c.b16 %v3778_v23, %v3777_v48 }
 0x22b   : > { %v2703_v27 = vadd.f32 %v2636_v28, %v5715_v15  ;;  %v2496_v28 = vrot.slane %v5678_v35, 5  ;;  %v3379_v11 = vrot.slane %v3378_v49, 4  ;;  %v3740_v33 = vrot.slane %v3738_v17, 4 }
 0x22c   : > { %4043 = vst.msk [vmem:[%s6185_s8 + $0x1c] sm:$0xf] %vm4035_vm8, %v4010_v54  ;;  %v3613_v3 = vadd.f32 %v3545_v46, %v3039_v37  ;;  %v3391_v46 = vshll.u32 %v6367_v39, 16  ;;  %v3389_v61 = vrot.slane %v3388_v53, 4 }
 0x22d   : > { %v3881_v20 = vpop.f32.mrf.mxu0  ;;  %v3384_v59 = vsel %vm4963_vm6, %v3379_v11, %v6369_v8  ;;  %v2872_v8 = vunpack.c.l.b16 %v6339_v13 }
 0x22e   : > { %v3947_v45 = vadd.f32 %v3879_v52, %v3613_v3  ;;  %v6738_v52 = vld [vmem:[#allocation10_spill] sm:$0xff]  ;;  %v6384_v24 = vrot.slane %v3391_v46, 5  ;;  %v6386_v3 = vpack.c.bf16 %v4415_v32, %v4415_v32 }
 0x22f   : > { %v2493_v25 = vrot.slane %v6738_v52, 5 }
 0x230   : > { %v3979_v29 = vmax.f32 %v3947_v45, 0.0  ;;  %v3741_v45 = vrot.slane %v6367_v39, 5  ;;  %v3401_v48 = vshll.u32 %v6386_v3, 16  ;;  %v3405_v23 = vshrl.u32 %v6386_v3, 16 }
 0x231   : > { %v2973_v51 = vpop.f32.mrf.mxu2  ;;  %v3547_v34 = vpop.f32.mrf.mxu3  ;;  %v2495_v37 = vrot.slane %v2493_v25, 4  ;;  %v2494_v18 = vsel %vm4970_vm7, %v4357_v9, %v2493_v25  ;;  %v2871_v25 = vunpack.c.l.b16 %v6337_v41 }
 0x232   : > { %v4011_v22 = vpack.c.bf16 %v3979_v29, %v3979_v29  ;;  %v3040_v56 = vadd.f32 %v2973_v51, %v2703_v27  ;;  %v2639_v6 = vpop.f32.mrf.mxu1  ;;  %v3394_v29 = vsel %vm4963_vm6, %v3389_v61, %v6384_v24  ;;  %v3395_v27 = vshrl.u32 %v6367_v39, 16 }
 0x233   : > { %v2704_v19 = vadd.f32 %v2639_v6, %v6740_v57  ;;  %v2497_v60 = vsel %vm4970_vm7, %v2495_v37, %v2496_v28  ;;  %v3446_v49 = vunpack.c.l.b16 %v3394_v29  ;;  %v2499_v57 = vrot.slane %v5713_v10, 5 }
 0x234   : > { %4044 = vst.msk [vmem:[%s6185_s8 + $0x20] sm:$0xf] %vm4035_vm8, %v4011_v22  ;;  %v3614_v15 = vadd.f32 %v3547_v34, %v3040_v56  ;;  %v2534_v34 = vunpack.c.l.b16 %v2494_v18  ;;  %v3739_v22 = vsel %vm4970_vm7, %v4458_v2, %v3738_v17  ;;  %v3742_v56 = vsel %vm4970_vm7, %v3740_v33, %v3741_v45 }
 0x235   : > { %v3884_v54 = vpop.f32.mrf.mxu0  ;;  %4372 = vmatmul.msk.bf16.gmra.mxu1 %vm393_vm1, %v2551_v12  ;;  %v2535_v12 = vunpack.c.l.b16 %v2497_v60  ;;  %v3397_v46 = vrot.slane %v3395_v27, 4  ;;  %v3779_v13 = vunpack.c.l.b16 %v3739_v22  ;;  %v3780_v9 = vunpack.c.l.b16 %v3742_v56 }
 0x236   : > { %v3948_v40 = vadd.f32 %v3881_v20, %v3614_v15  ;;  %4431 = vmatmul.msk.bf16.gmra.mxu2 %vm393_vm1, %v2888_v26  ;;  %4448 = vmatmul.msk.bf16.gmra.mxu3 %vm393_vm1, %v3462_v44  ;;  %v4416_v26 = vld [vmem:[%s4778_s6 + $0x188] sm:$0x3]  ;;  %v3445_v44 = vunpack.c.l.b16 %v3384_v59  ;;  %v3403_v15 = vrot.slane %v3401_v48, 5  ;;  %v2498_v2 = vrot.slane %v2496_v28, 4  ;;  %s4483_s6 = sshll.u32 %s4641_s15, 5 }
 0x237   : > { %v2808_v53 = vpack.c.bf16 %v4416_v26, %v4416_v26  ;;  %v2552_v17 = vpack.c.b16 %v2535_v12, %v2534_v34  ;;  %v3744_v33 = vrot.slane %v6386_v3, 5  ;;  %v2501_v10 = vrot.slane %v2499_v57, 4  ;;  %s4082_s10 = sadd.s32 %s4483_s6, %s4479_s9  ;;  %s4583_s6 = scalar_lea.hbm %s6562_s3, 1024 }
 0x238   : > { %v3980_v63 = vmax.f32 %v3948_v40, 0.0  ;;  %4473 = vmatmul.msk.bf16.gmra.mxu0 %vm393_vm1, %v3796_v42  ;;  %v3407_v42 = vrot.slane %v3405_v23, 4  ;;  %v2889_v40 = vpack.c.b16 %v2872_v8, %v2871_v25  ;;  %v2500_v48 = vsel %vm4970_vm7, %v2498_v2, %v2499_v57  ;;  %s4480_s11 = sshll.u32 %s4082_s10, 2 }
 0x239   : > { %v2976_v20 = vpop.f32.mrf.mxu2  ;;  %v3550_v0 = vpop.f32.mrf.mxu3  ;;  %v3743_v23 = vrot.slane %v3741_v45, 4  ;;  %v3747_v34 = vrot.slane %v2808_v53, 5  ;;  %v2536_v22 = vunpack.c.l.b16 %v2500_v48  ;;  %s4084_s20 = scalar_lea.hbm %s6562_s3, %s4480_s11 }
 0x23a   : > { %v4012_v50 = vpack.c.bf16 %v3980_v63, %v3980_v63  ;;  %v3041_v58 = vadd.f32 %v2976_v20, %v2704_v19  ;;  %v2641_v16 = vpop.f32.mrf.mxu1  ;;  %v3398_v19 = vor.u32 %v3397_v46, %v6384_v24  ;;  %v3408_v18 = vor.u32 %v3407_v42, %v3403_v15  ;;  %s4087_s24 = sshll.u32 %s4084_s20, 4  ;;  %s4088_s24 = int_to_ptr.hbm [resolvable:$true] %s4087_s24 }
 0x23b   : > { %v2705_v41 = vadd.f32 %v2641_v16, %v5756_v1  ;;  %v3411_v20 = vshll.u32 %v2808_v53, 16  ;;  %v3797_v1 = vpack.c.b16 %v3780_v9, %v3779_v13  ;;  %v2502_v24 = vrot.slane %v5737_v43, 5  ;;  %s4577_s28 = sshra.s32 %s4088_s24, 4  ;;  %s4578_s28 = int_to_ptr.hbm [resolvable:$true] %s4577_s28 }
 0x23c   : > { %4045 = vst.msk [vmem:[%s6185_s8 + $0x24] sm:$0xf] %vm4035_vm8, %v4012_v50  ;;  %v3615_v51 = vadd.f32 %v3550_v0, %v3041_v58  ;;  %v3399_v58 = vrot.slane %v3398_v19, 4  ;;  %v3409_v16 = vrot.slane %v3408_v18, 4  ;;  %v2874_v46 = vunpack.c.l.b16 %v6386_v3  ;;  %s4579_s29 = scalar_lea.hbm %s4578_s28, 128  ;;  %p4584_p2 = scmp.lt.s32.totalorder %s4578_s28, %s6562_s3 }
 0x23d   : > { %v3886_v52 = vpop.f32.mrf.mxu0  ;;  %v3413_v59 = vrot.slane %v3411_v20, 5  ;;  %p4580_p13 = scmp.ne.s32.totalorder %s4578_s28, %s4579_s29  ;;  %p4585_p4 = scmp.lt.s32.totalorder %s4583_s6, %s4579_s29 }
 0x23e   : > { %v3949_v6 = vadd.f32 %v3884_v54, %v3615_v51  ;;  %v3463_v54 = vpack.c.b16 %v3446_v49, %v3445_v44  ;;  %v3746_v51 = vrot.slane %v3744_v33, 4  ;;  %v3745_v44 = vsel %vm4970_vm7, %v3743_v23, %v3744_v33 }
 0x23f   : > { %v3414_v25 = vsel %vm4963_vm6, %v3409_v16, %v3413_v59  ;;  %p4581_p0 = pnand %p4580_p13, %p4732_p3  ;;  %p4586_p5 = por %p4585_p4, %p4584_p2 }
 0x240   : > { %v3981_v4 = vmax.f32 %v3949_v6, 0.0  ;;  %v2873_v6 = vunpack.c.l.b16 %v6367_v39  ;;  %v3748_v49 = vsel %vm4970_vm7, %v3746_v51, %v3747_v34 }
 0x241   : > { %v2978_v32 = vpop.f32.mrf.mxu2  ;;  %v3552_v37 = vpop.f32.mrf.mxu3  ;;  %v3782_v13 = vunpack.c.l.b16 %v3748_v49  ;;  %p4582_p1 = pneg %p4581_p0 }
 0x242   : > { %v4013_v11 = vpack.c.bf16 %v3981_v4, %v3981_v4  ;;  %v3042_v61 = vadd.f32 %v2978_v32, %v2705_v41  ;;  %v2644_v63 = vpop.f32.mrf.mxu1  ;;  %v3781_v41 = vunpack.c.l.b16 %v3745_v44 }
 0x243   : > { %v2706_v27 = vadd.f32 %v2644_v63, %v5782_v7  ;;  %v3404_v7 = vsel %vm4963_vm6, %v3399_v58, %v3403_v15  ;;  %v3448_v15 = vunpack.c.l.b16 %v3414_v25  ;;  %p4587_p6 = pnand %p4586_p5, %p4582_p1 }
 0x244   : > { %4046 = vst.msk [vmem:[%s6185_s8 + $0x28] sm:$0xf] %vm4035_vm8, %v4013_v11  ;;  %v3616_v0 = vadd.f32 %v3552_v37, %v3042_v61  ;;  %v3447_v31 = vunpack.c.l.b16 %v3404_v7  ;;  %v2890_v11 = vpack.c.b16 %v2874_v46, %v2873_v6  ;;  %v3798_v3 = vpack.c.b16 %v3782_v13, %v3781_v41  ;;  %v6741_v46 = vld [vmem:[#allocation12_spill] sm:$0xff] }
 0x245   : > { %v3889_v60 = vpop.f32.mrf.mxu0  ;;  %4373 = vmatmul.msk.bf16.gmra.mxu1 %vm393_vm1, %v2552_v17 }
 0x246   : > { %v3950_v50 = vadd.f32 %v3886_v52, %v3616_v0  ;;  %4432 = vmatmul.msk.bf16.gmra.mxu2 %vm393_vm1, %v2889_v40  ;;  %4449 = vmatmul.msk.bf16.gmra.mxu3 %vm393_vm1, %v3463_v54  ;;  %v2503_v52 = vsel %vm4970_vm7, %v2501_v10, %v2502_v24  ;;  %v3464_v38 = vpack.c.b16 %v3448_v15, %v3447_v31 }
 0x247   : > { %v2537_v45 = vunpack.c.l.b16 %v2503_v52 }
 0x248   : > { %v3982_v29 = vmax.f32 %v3950_v50, 0.0  ;;  %4474 = vmatmul.msk.bf16.gmra.mxu0 %vm393_vm1, %v3797_v1 }
 0x249   : > { %v2981_v35 = vpop.f32.mrf.mxu2  ;;  %v3555_v28 = vpop.f32.mrf.mxu3  ;;  %v2553_v39 = vpack.c.b16 %v2537_v45, %v2536_v22 }
 0x24a   : > { %v4014_v43 = vpack.c.bf16 %v3982_v29, %v3982_v29  ;;  %v3043_v12 = vadd.f32 %v2981_v35, %v2706_v27  ;;  %v2646_v26 = vpop.f32.mrf.mxu1 }
 0x24b   : > { %v2707_v4 = vadd.f32 %v2646_v26, %v5793_v21 }
 0x24c   : > { %4047 = vst.msk [vmem:[%s6185_s8 + $0x2c] sm:$0xf] %vm4035_vm8, %v4014_v43  ;;  %v3617_v8 = vadd.f32 %v3555_v28, %v3043_v12 }
 0x24d   : > { %v3891_v56 = vpop.f32.mrf.mxu0 }
 0x24e   : > { %v3951_v53 = vadd.f32 %v3889_v60, %v3617_v8 }
 0x250   : > { %v3983_v42 = vmax.f32 %v3951_v53, 0.0 }
 0x251   : > { %v2983_v9 = vpop.f32.mrf.mxu2  ;;  %v3557_v32 = vpop.f32.mrf.mxu3 }
 0x252   : > { %v4015_v37 = vpack.c.bf16 %v3983_v42, %v3983_v42  ;;  %v3044_v17 = vadd.f32 %v2983_v9, %v2707_v4  ;;  %v2649_v40 = vpop.f32.mrf.mxu1 }
 0x253   : > { %v2708_v57 = vadd.f32 %v2649_v40, %v5813_v14 }
 0x254   : > { %4048 = vst.msk [vmem:[%s6185_s8 + $0x30] sm:$0xf] %vm4035_vm8, %v4015_v37  ;;  %v3618_v61 = vadd.f32 %v3557_v32, %v3044_v17  ;;  %v6742_v37 = vld [vmem:[#allocation14_spill] sm:$0xff] }
 0x255   : > { %v3894_v63 = vpop.f32.mrf.mxu0  ;;  %4374 = vmatmul.msk.bf16.gmra.mxu1 %vm393_vm1, %v2553_v39 }
 0x256   : > { %v3952_v54 = vadd.f32 %v3891_v56, %v3618_v61  ;;  %4433 = vmatmul.msk.bf16.gmra.mxu2 %vm393_vm1, %v2890_v11  ;;  %4450 = vmatmul.msk.bf16.gmra.mxu3 %vm393_vm1, %v3464_v38 }
 0x258   : > { %v3984_v21 = vmax.f32 %v3952_v54, 0.0  ;;  %4475 = vmatmul.msk.bf16.gmra.mxu0 %vm393_vm1, %v3798_v3 }
 0x259   : > { %v2986_v19 = vpop.f32.mrf.mxu2  ;;  %v3560_v18 = vpop.f32.mrf.mxu3 }
 0x25a   : > { %v4016_v20 = vpack.c.bf16 %v3984_v21, %v3984_v21  ;;  %v3045_v0 = vadd.f32 %v2986_v19, %v2708_v57  ;;  %v2651_v1 = vpop.f32.mrf.mxu1  ;;  %v6743_v19 = vld [vmem:[#allocation24_spill] sm:$0xff] }
 0x25b   : > { %v2709_v10 = vadd.f32 %v2651_v1, %v5828_v5 }
 0x25c   : > { %4049 = vst.msk [vmem:[%s6185_s8 + $0x34] sm:$0xf] %vm4035_vm8, %v4016_v20  ;;  %v3619_v60 = vadd.f32 %v3560_v18, %v3045_v0 }
 0x25d   : > { %v3896_v2 = vpop.f32.mrf.mxu0 }
 0x25e   : > { %v3953_v33 = vadd.f32 %v3894_v63, %v3619_v60 }
 0x260   : > { %v3985_v50 = vmax.f32 %v3953_v33, 0.0 }
 0x261   : > { %v2988_v24 = vpop.f32.mrf.mxu2  ;;  %v3562_v58 = vpop.f32.mrf.mxu3 }
 0x262   : > { %v4017_v14 = vpack.c.bf16 %v3985_v50, %v3985_v50  ;;  %v3046_v16 = vadd.f32 %v2988_v24, %v2709_v10  ;;  %v2654_v59 = vpop.f32.mrf.mxu1 }
 0x263   : > { %v2710_v48 = vadd.f32 %v2654_v59, %v5852_v62 }
 0x264   : > { %4050 = vst.msk [vmem:[%s6185_s8 + $0x38] sm:$0xf] %vm4035_vm8, %v4017_v14  ;;  %v3620_v29 = vadd.f32 %v3562_v58, %v3046_v16  ;;  %v6744_v58 = vld [vmem:[#allocation15_spill] sm:$0xff] }
 0x265   : > { %v3899_v27 = vpop.f32.mrf.mxu0 }
 0x266   : > { %v3954_v35 = vadd.f32 %v3896_v2, %v3620_v29 }
 0x268   : > { %v3986_v28 = vmax.f32 %v3954_v35, 0.0 }
 0x269   : > { %v2991_v23 = vpop.f32.mrf.mxu2  ;;  %v3565_v51 = vpop.f32.mrf.mxu3 }
 0x26a   : > { %v4018_v34 = vpack.c.bf16 %v3986_v28, %v3986_v28  ;;  %v3047_v43 = vadd.f32 %v2991_v23, %v2710_v48  ;;  %v2656_v5 = vpop.f32.mrf.mxu1 }
 0x26b   : > { %v2711_v25 = vadd.f32 %v2656_v5, %v5865_v47 }
 0x26c   : > { %4051 = vst.msk [vmem:[%s6185_s8 + $0x3c] sm:$0xf] %vm4035_vm8, %v4018_v34  ;;  %v3621_v12 = vadd.f32 %v3565_v51, %v3047_v43  ;;  %v6745_v34 = vld [vmem:[#allocation27_spill] sm:$0xff] }
 0x26d   : > { %v3901_v26 = vpop.f32.mrf.mxu0 }
 0x26e   : > { %v3955_v52 = vadd.f32 %v3899_v27, %v3621_v12 }
 0x270   : > { %v3987_v7 = vmax.f32 %v3955_v52, 0.0 }
 0x271   : > { %v2993_v8 = vpop.f32.mrf.mxu2  ;;  %v3567_v22 = vpop.f32.mrf.mxu3 }
 0x272   : > { %v4019_v56 = vpack.c.bf16 %v3987_v7, %v3987_v7  ;;  %v3048_v45 = vadd.f32 %v2993_v8, %v2711_v25  ;;  %v2659_v62 = vpop.f32.mrf.mxu1 }
 0x273   : > { %v2712_v31 = vadd.f32 %v2659_v62, %v6741_v46 }
 0x274   : > { %4052 = vst.msk [vmem:[%s6185_s8 + $0x40] sm:$0xf] %vm4035_vm8, %v4019_v56  ;;  %v3622_v6 = vadd.f32 %v3567_v22, %v3048_v45  ;;  %v6746_v45 = vld [vmem:[#allocation32_spill] sm:$0xff] }
 0x275   : > { %v3904_v44 = vpop.f32.mrf.mxu0 }
 0x276   : > { %v3956_v49 = vadd.f32 %v3901_v26, %v3622_v6 }
 0x278   : > { %v3988_v53 = vmax.f32 %v3956_v49, 0.0 }
 0x279   : > { %v2996_v15 = vpop.f32.mrf.mxu2  ;;  %v3570_v42 = vpop.f32.mrf.mxu3 }
 0x27a   : > { %v4020_v4 = vpack.c.bf16 %v3988_v53, %v3988_v53  ;;  %v3049_v41 = vadd.f32 %v2996_v15, %v2712_v31  ;;  %v2661_v47 = vpop.f32.mrf.mxu1 }
 0x27b   : > { %v2713_v17 = vadd.f32 %v2661_v47, %v6742_v37 }
 0x27c   : > { %4053 = vst.msk [vmem:[%s6185_s8 + $0x44] sm:$0xf] %vm4035_vm8, %v4020_v4  ;;  %v3623_v13 = vadd.f32 %v3570_v42, %v3049_v41  ;;  %v6747_v41 = vld [vmem:[#allocation37_spill] sm:$0xff] }
 0x27d   : > { %v3906_v9 = vpop.f32.mrf.mxu0 }
 0x27e   : > { %v3957_v32 = vadd.f32 %v3904_v44, %v3623_v13 }
 0x280   : > { %v3989_v39 = vmax.f32 %v3957_v32, 0.0 }
 0x281   : > { %v2998_v40 = vpop.f32.mrf.mxu2  ;;  %v3572_v11 = vpop.f32.mrf.mxu3 }
 0x282   : > { %v4021_v38 = vpack.c.bf16 %v3989_v39, %v3989_v39  ;;  %v3050_v61 = vadd.f32 %v2998_v40, %v2713_v17  ;;  %v2664_v3 = vpop.f32.mrf.mxu1 }
 0x283   : > { %v2714_v18 = vadd.f32 %v2664_v3, %v6743_v19 }
 0x284   : > { %4054 = vst.msk [vmem:[%s6185_s8 + $0x48] sm:$0xf] %vm4035_vm8, %v4021_v38  ;;  %v3624_v63 = vadd.f32 %v3572_v11, %v3050_v61  ;;  %v6748_v61 = vld [vmem:[#allocation13_spill] sm:$0xff] }
 0x285   : > { %v3909_v54 = vpop.f32.mrf.mxu0 }
 0x286   : > { %v3958_v21 = vadd.f32 %v3906_v9, %v3624_v63 }
 0x288   : > { %v3990_v57 = vmax.f32 %v3958_v21, 0.0 }
 0x289   : > { %v3001_v20 = vpop.f32.mrf.mxu2  ;;  %v3575_v0 = vpop.f32.mrf.mxu3 }
 0x28a   : > { %v4022_v1 = vpack.c.bf16 %v3990_v57, %v3990_v57  ;;  %v3051_v60 = vadd.f32 %v3001_v20, %v2714_v18  ;;  %v2666_v2 = vpop.f32.mrf.mxu1 }
 0x28b   : > { %v2715_v14 = vadd.f32 %v2666_v2, %v6744_v58 }
 0x28c   : > { %4055 = vst.msk [vmem:[%s6185_s8 + $0x4c] sm:$0xf] %vm4035_vm8, %v4022_v1  ;;  %v3625_v33 = vadd.f32 %v3575_v0, %v3051_v60  ;;  %v6749_v60 = vld [vmem:[#allocation17_spill] sm:$0xff] }
 0x28d   : > { %v3911_v50 = vpop.f32.mrf.mxu0 }
 0x28e   : > { %v3959_v10 = vadd.f32 %v3909_v54, %v3625_v33 }
 0x290   : > { %v3991_v24 = vmax.f32 %v3959_v10, 0.0 }
 0x291   : > { %v3003_v16 = vpop.f32.mrf.mxu2  ;;  %v3577_v59 = vpop.f32.mrf.mxu3 }
 0x292   : > { %v4023_v29 = vpack.c.bf16 %v3991_v24, %v3991_v24  ;;  %v3052_v27 = vadd.f32 %v3003_v16, %v2715_v14  ;;  %v2669_v35 = vpop.f32.mrf.mxu1 }
 0x293   : > { %v2716_v43 = vadd.f32 %v2669_v35, %v6745_v34 }
 0x294   : > { %4056 = vst.msk [vmem:[%s6185_s8 + $0x50] sm:$0xf] %vm4035_vm8, %v4023_v29  ;;  %v3626_v28 = vadd.f32 %v3577_v59, %v3052_v27 }
 0x295   : > { %v3914_v48 = vpop.f32.mrf.mxu0 }
 0x296   : > { %v3960_v23 = vadd.f32 %v3911_v50, %v3626_v28 }
 0x298   : > { %v3992_v51 = vmax.f32 %v3960_v23, 0.0 }
 0x299   : > { %v3006_v5 = vpop.f32.mrf.mxu2  ;;  %v3580_v12 = vpop.f32.mrf.mxu3 }
 0x29a   : > { %v4024_v26 = vpack.c.bf16 %v3992_v51, %v3992_v51  ;;  %v3053_v52 = vadd.f32 %v3006_v5, %v2716_v43  ;;  %v2671_v7 = vpop.f32.mrf.mxu1 }
 0x29b   : > { %v2717_v62 = vadd.f32 %v2671_v7, %v6746_v45 }
 0x29c   : > { %4057 = vst.msk [vmem:[%s6185_s8 + $0x54] sm:$0xf] %vm4035_vm8, %v4024_v26  ;;  %v3627_v25 = vadd.f32 %v3580_v12, %v3053_v52 }
 0x29d   : > { %v3916_v8 = vpop.f32.mrf.mxu0 }
 0x29e   : > { %v3961_v22 = vadd.f32 %v3914_v48, %v3627_v25 }
 0x2a0   : > { %v3993_v56 = vmax.f32 %v3961_v22, 0.0 }
 0x2a1   : > { %v3008_v6 = vpop.f32.mrf.mxu2  ;;  %v3582_v44 = vpop.f32.mrf.mxu3 }
 0x2a2   : > { %v4025_v49 = vpack.c.bf16 %v3993_v56, %v3993_v56  ;;  %v3054_v53 = vadd.f32 %v3008_v6, %v2717_v62  ;;  %v2674_v46 = vpop.f32.mrf.mxu1 }
 0x2a3   : > { %v2718_v47 = vadd.f32 %v2674_v46, %v6747_v41 }
 0x2a4   : > { %4058 = vst.msk [vmem:[%s6185_s8 + $0x58] sm:$0xf] %vm4035_vm8, %v4025_v49  ;;  %v3628_v31 = vadd.f32 %v3582_v44, %v3054_v53 }
 0x2a5   : > { %v3919_v15 = vpop.f32.mrf.mxu0 }
 0x2a6   : > { %v3962_v42 = vadd.f32 %v3916_v8, %v3628_v31 }
 0x2a8   : > { %v3994_v4 = vmax.f32 %v3962_v42, 0.0 }
 0x2a9   : > { %v3011_v13 = vpop.f32.mrf.mxu2  ;;  %v3585_v9 = vpop.f32.mrf.mxu3 }
 0x2aa   : > { %v4026_v32 = vpack.c.bf16 %v3994_v4, %v3994_v4  ;;  %v3055_v39 = vadd.f32 %v3011_v13, %v2718_v47  ;;  %v2676_v37 = vpop.f32.mrf.mxu1  ;;  %v6750_v4 = vld [vmem:[#allocation20_spill] sm:$0xff] }
 0x2ab   : > { %v2719_v3 = vadd.f32 %v2676_v37, %v6748_v61 }
 0x2ac   : > { %4059 = vst.msk [vmem:[%s6185_s8 + $0x5c] sm:$0xf] %vm4035_vm8, %v4026_v32  ;;  %v3629_v17 = vadd.f32 %v3585_v9, %v3055_v39 }
 0x2ad   : > { %v3921_v40 = vpop.f32.mrf.mxu0 }
 0x2ae   : > { %v3963_v11 = vadd.f32 %v3919_v15, %v3629_v17 }
 0x2b0   : > { %v3995_v38 = vmax.f32 %v3963_v11, 0.0  ;;  %v6751_v11 = vld [vmem:[#allocation39_spill] sm:$0xff] }
 0x2b1   : > { %v3013_v63 = vpop.f32.mrf.mxu2  ;;  %v3587_v54 = vpop.f32.mrf.mxu3 }
 0x2b2   : > { %v4027_v21 = vpack.c.bf16 %v3995_v38, %v3995_v38  ;;  %v3056_v57 = vadd.f32 %v3013_v63, %v2719_v3  ;;  %v2679_v19 = vpop.f32.mrf.mxu1 }
 0x2b3   : > { %v2720_v2 = vadd.f32 %v2679_v19, %v6749_v60 }
 0x2b4   : > { %4060 = vst.msk [vmem:[%s6185_s8 + $0x60] sm:$0xf] %vm4035_vm8, %v4027_v21  ;;  %v3630_v18 = vadd.f32 %v3587_v54, %v3056_v57 }
 0x2b5   : > { %v3924_v20 = vpop.f32.mrf.mxu0 }
 0x2b6   : > { %v3964_v0 = vadd.f32 %v3921_v40, %v3630_v18 }
 0x2b8   : > { %v3996_v1 = vmax.f32 %v3964_v0, 0.0 }
 0x2b9   : > { %v3016_v33 = vpop.f32.mrf.mxu2  ;;  %v3590_v50 = vpop.f32.mrf.mxu3 }
 0x2ba   : > { %v4028_v10 = vpack.c.bf16 %v3996_v1, %v3996_v1  ;;  %v3057_v24 = vadd.f32 %v3016_v33, %v2720_v2  ;;  %v2681_v58 = vpop.f32.mrf.mxu1 }
 0x2bb   : > { %v2721_v27 = vadd.f32 %v2681_v58, %v6079_v36 }
 0x2bc   : > { %4061 = vst.msk [vmem:[%s6185_s8 + $0x64] sm:$0xf] %vm4035_vm8, %v4028_v10  ;;  %v3631_v14 = vadd.f32 %v3590_v50, %v3057_v24 }
 0x2bd   : > { %v3926_v16 = vpop.f32.mrf.mxu0 }
 0x2be   : > { %v3965_v59 = vadd.f32 %v3924_v20, %v3631_v14 }
 0x2c0   : > { %v3997_v29 = vmax.f32 %v3965_v59, 0.0 }
 0x2c1   : > { %v3018_v35 = vpop.f32.mrf.mxu2  ;;  %v3592_v28 = vpop.f32.mrf.mxu3 }
 0x2c2   : > { %v4029_v48 = vpack.c.bf16 %v3997_v29, %v3997_v29  ;;  %v3058_v23 = vadd.f32 %v3018_v35, %v2721_v27  ;;  %v2684_v51 = vpop.f32.mrf.mxu1 }
 0x2c3   : > { %v2722_v26 = vadd.f32 %v2684_v51, %v6081_v55 }
 0x2c4   : > { %4062 = vst.msk [vmem:[%s6185_s8 + $0x68] sm:$0xf] %vm4035_vm8, %v4029_v48  ;;  %v3632_v34 = vadd.f32 %v3592_v28, %v3058_v23 }
 0x2c5   : > { %v3929_v5 = vpop.f32.mrf.mxu0 }
 0x2c6   : > { %v3966_v43 = vadd.f32 %v3926_v16, %v3632_v34 }
 0x2c8   : > { %v3998_v12 = vmax.f32 %v3966_v43, 0.0 }
 0x2c9   : > { %v3021_v52 = vpop.f32.mrf.mxu2  ;;  %v3595_v7 = vpop.f32.mrf.mxu3 }
 0x2ca   : > { %v4030_v25 = vpack.c.bf16 %v3998_v12, %v3998_v12  ;;  %v3059_v8 = vadd.f32 %v3021_v52, %v2722_v26  ;;  %v2686_v36 = vpop.f32.mrf.mxu1 }
 0x2cb   : > { %v2723_v62 = vadd.f32 %v2686_v36, %v6098_v30 }
 0x2cc   : > { %4063 = vst.msk [vmem:[%s6185_s8 + $0x6c] sm:$0xf] %vm4035_vm8, %v4030_v25  ;;  %v3633_v22 = vadd.f32 %v3595_v7, %v3059_v8 }
 0x2cd   : > { %v3931_v6 = vpop.f32.mrf.mxu0 }
 0x2ce   : > { %v3967_v56 = vadd.f32 %v3929_v5, %v3633_v22 }
 0x2d0   : > { %v3999_v45 = vmax.f32 %v3967_v56, 0.0 }
 0x2d1   : > { %v3023_v44 = vpop.f32.mrf.mxu2  ;;  %v3597_v49 = vpop.f32.mrf.mxu3 }
 0x2d2   : > { %v4031_v55 = vpack.c.bf16 %v3999_v45, %v3999_v45  ;;  %v3060_v53 = vadd.f32 %v3023_v44, %v2723_v62  ;;  %v2689_v46 = vpop.f32.mrf.mxu1 }
 0x2d3   : > { %v2724_v41 = vadd.f32 %v2689_v46, %v6750_v4 }
 0x2d4   : > { %4064 = vst.msk [vmem:[%s6185_s8 + $0x70] sm:$0xf] %vm4035_vm8, %v4031_v55  ;;  %v3634_v31 = vadd.f32 %v3597_v49, %v3060_v53 }
 0x2d5   : > { %v3934_v32 = vpop.f32.mrf.mxu0 }
 0x2d6   : > { %v3968_v15 = vadd.f32 %v3931_v6, %v3634_v31 }
 0x2d8   : > { %v4000_v42 = vmax.f32 %v3968_v15, 0.0 }
 0x2d9   : > { %v3026_v47 = vpop.f32.mrf.mxu2  ;;  %v3600_v13 = vpop.f32.mrf.mxu3 }
 0x2da   : > { %v4032_v9 = vpack.c.bf16 %v4000_v42, %v4000_v42  ;;  %v3061_v30 = vadd.f32 %v3026_v47, %v2724_v41  ;;  %v2691_v37 = vpop.f32.mrf.mxu1 }
 0x2db   : > { %v2725_v38 = vadd.f32 %v2691_v37, %v6751_v11 }
 0x2dc   : > { %4065 = vst.msk [vmem:[%s6185_s8 + $0x74] sm:$0xf] %vm4035_vm8, %v4032_v9  ;;  %v3635_v39 = vadd.f32 %v3600_v13, %v3061_v30 }
 0x2dd   : > { %v3936_v57 = vpop.f32.mrf.mxu0 }
 0x2de   : > { %v3969_v17 = vadd.f32 %v3934_v32, %v3635_v39 }
 0x2e0   : > { %v4001_v40 = vmax.f32 %v3969_v17, 0.0 }
 0x2e1   : > { %v3028_v61 = vpop.f32.mrf.mxu2  ;;  %v3602_v54 = vpop.f32.mrf.mxu3 }
 0x2e2   : > { %v4033_v3 = vpack.c.bf16 %v4001_v40, %v4001_v40  ;;  %v3062_v63 = vadd.f32 %v3028_v61, %v2725_v38 }
 0x2e4   : > { %4066 = vst.msk [vmem:[%s6185_s8 + $0x78] sm:$0xf] %vm4035_vm8, %v4033_v3  ;;  %v3636_v21 = vadd.f32 %v3602_v54, %v3062_v63 }
 0x2e6   : > { %v3970_v19 = vadd.f32 %v3936_v57, %v3636_v21 }
 0x2e8   : > { %v4002_v18 = vmax.f32 %v3970_v19, 0.0 }
 0x2ea   : > { %v4034_v20 = vpack.c.bf16 %v4002_v18, %v4002_v18 }
 0x2ec   : > { %4067 = vst.msk [vmem:[%s6185_s8 + $0x7c] sm:$0xf] %vm4035_vm8, %v4034_v20 }
 0x2ed   : > { %4590 = shalt.err (!%p4587_p6)
}
 0x2ee   : > { %s4659_s5 = smov 64   ;;  %s4660_s8 = smov 4  }
 0x2ef   : > { %4488 = dma.vmem_to_hbm [thread:$0]  (%p4732_p3), %s4086_s21, 2048, %s4088_s24, %s4069_s27, %s4659_s5, %s4659_s5, %s4660_s8  }
 0x2f0 PF: > { %p4494_p7 = scmp.ge.s32.totalorder %s4657_s19, 2  ;;  %s4102_s11 = sand.u32 1, %s4629_s12  }
 0x2f1   : > { %s4103_s15 = scalar_lea.sflag [#allocation3], %s4102_s11 }
 0x2f2   : > { %p4491_p9 = pnand %p4494_p7, %p4741_p8 }
 0x2f4   : > { %p4492_p10 = pneg %p4491_p9 }
 0x2f6   : > { %4624 = dma.done.wait (%p4492_p10), %s4103_s15, 2048  }
 0x2f7   : > { %4626 = vsyncadd (%p4492_p10), %s4103_s15, 4294965248  ;;  %s16_s19 = sadd.s32 1, %s4657_s19   ;;  %s6752_s12 = smov %s4633_s13 }
 0x2f8   : > { %p13_p11 = scmp.ge.s32.totalorder %s16_s19, 10   ;;  %s6753_s13 = smov %s4637_s14 }
 0x2f9   : > { %s6754_s14 = smov %s4750_s30  ;;  %s6755_s15 = smov %s4649_s17 }
 0x2fa   : > { %s6756_s16 = smov %s4653_s18  ;;  %s6757_s17 = smov %s6760_s22 }
 0x2fb   : > { %s6758_s18 = smov %s6764_s23  ;;  %15 = sbr.rel (!%p13_p11) target bundleno = 5 (0x5), region = 84 }
 0x300   :  { %4109 = vsyncpa [#allocation3], 1 }
 0x301   :  { %4111 = vsyncpa [#allocation3 + $0x1], 1 }

</bundles_post_ra>
